<compile_context>
chip_gen: v5e
topology: v5e:2x2
jax: 0.10.0
libtpu: 0.0.40
codegen_flags: <defaults>
</compile_context>

<pallas_src>
import functools

import jax
import jax.numpy as jnp
from jax import lax
from jax.experimental import pallas as pl
from jax.experimental.pallas import tpu as pltpu

MS_CFG = ((3, 1), (3, 2), (3, 3), (3, 4), ("max", 3), "1x1")
BN_EPS = 1e-5


# ----------------------------------------------------------------------------
# Pallas kernel
# ----------------------------------------------------------------------------
def _mstcn_kernel(x_ref, tidx_ref, w1_ref, wt_ref, wtr_ref, vec_ref, o_ref, *,
                  seq_len, dil_slices, cd, mid, tin, c_out):
    M = x_ref.shape[0]                          # B_NV * T rows

    def mm(a, w):
        # bf16 MXU operands, f32 accumulate.
        return jnp.dot(a.astype(jnp.bfloat16), w,
                       preferred_element_type=jnp.float32)

    x = x_ref[...]                              # (M, C_in) bf16
    tidx = tidx_ref[...]                        # (M, 1) i32: time index in sequence

    b1 = vec_ref[0:1, :tin]                     # fused 1x1 bias (BN folded)
    bt = vec_ref[1:2, :cd]                      # temporal-conv bias (BN folded)
    ts_max = vec_ref[2:3, :mid]                 # transform BN affine (max branch)
    tsh_max = vec_ref[2:3, mid:2 * mid]
    btr = vec_ref[3:4, :c_out]                  # transform bias (final BN folded)

    # (1) All six branch 1x1 convs as one lane-dense matmul.  Branch BN
    # (branches 0-4) / transform BN (branch 5) are folded into W1, so a
    # single ReLU serves as the branch ReLU (0-4) and transform ReLU (5).
    h = jnp.maximum(mm(x, w1_ref[...]) + b1, 0.0)          # (M, tin) f32

    h_dil = h[:, :cd]                                      # branches 0-3
    h_max = h[:, cd:cd + mid]                              # branch 4 ('max')
    f_1x1 = h[:, cd + mid:]                                # branch 5 ('1x1')

    cidx = lax.broadcasted_iota(jnp.int32, (1, cd), 1)

    # (2) "t-d" / "t+d" shifted copies of the concatenated dilation branches:
    # XLU rolls + VPU selects (zero padding along time).  Rolls are done on
    # the flattened (M, Cd) slab; rows that would leak across sequence
    # boundaries are exactly the masked (padded) ones.
    h_m = jnp.zeros_like(h_dil)
    h_p = jnp.zeros_like(h_dil)
    for d, c0, c1 in dil_slices:
        chan = (cidx >= c0) & (cidx < c1)
        h_m = jnp.where(chan & (tidx >= d),
                        pltpu.roll(h_dil, d, axis=0), h_m)
        h_p = jnp.where(chan & (tidx < seq_len - d),
                        pltpu.roll(h_dil, M - d, axis=0), h_p)

    # (3) The four k=3 temporal convs as three block-diagonal matmuls
    # (transform BN already folded into weights and bias).
    o_dil = mm(h_m, wt_ref[0]) + mm(h_dil, wt_ref[1]) + mm(h_p, wt_ref[2]) + bt
    f_dil = jnp.maximum(o_dil, 0.0)

    # (4) Max-pool branch (k=3, pad=1, stride=1): -inf padded window max, then
    # the transform BN affine (a possibly-negative scale cannot be folded
    # through max) and the transform ReLU.
    neg = jnp.float32(-jnp.inf)
    hm1 = jnp.where(tidx >= 1, pltpu.roll(h_max, 1, axis=0), neg)
    hp1 = jnp.where(tidx < seq_len - 1, pltpu.roll(h_max, M - 1, axis=0), neg)
    o_max = jnp.maximum(jnp.maximum(hm1, h_max), hp1)
    f_max = jnp.maximum(o_max * ts_max + tsh_max, 0.0)

    # (5) Transform 1x1 conv (final BN folded), split over the three feat
    # blocks so no lane-concat of feat is ever materialized.
    wtr = wtr_ref[...]
    y = (mm(f_dil, wtr[:cd])
         + mm(f_max, wtr[cd:cd + mid])
         + mm(f_1x1, wtr[cd + mid:])
         + btr)
    # TODO(synk): nn.Dropout(p=0.0) is an identity at inference; nothing to do.
    o_ref[...] = y.astype(o_ref.dtype)


# ----------------------------------------------------------------------------
# Parameter construction (PyTorch-module-style "raw" params, eval-mode BN)
# ----------------------------------------------------------------------------
def _affine(bn):
    g, b, m, v = bn
    s = g * lax.rsqrt(v + BN_EPS)
    return s, b - m * s


def init_mstcn_params(key, in_channels, out_channels, ms_cfg=MS_CFG):
    nb = len(ms_cfg)
    mid = out_channels // nb
    rem = out_channels - mid * (nb - 1)
    tin = mid * (nb - 1) + rem
    keys = iter(jax.random.split(key, 64))

    def conv(cin, cout):
        w = jax.random.normal(next(keys), (cin, cout), jnp.float32) / jnp.sqrt(float(cin))
        b = 0.1 * jax.random.normal(next(keys), (cout,), jnp.float32)
        return w, b

    def bn(c):
        g = 1.0 + 0.1 * jax.random.normal(next(keys), (c,), jnp.float32)
        b = 0.1 * jax.random.normal(next(keys), (c,), jnp.float32)
        m = 0.1 * jax.random.normal(next(keys), (c,), jnp.float32)
        v = 0.5 + jnp.abs(jax.random.normal(next(keys), (c,), jnp.float32))
        return (g, b, m, v)

    branches = []
    for i, cfg in enumerate(ms_cfg):
        cb = rem if i == 0 else mid
        if cfg == "1x1":
            branches.append(dict(kind="1x1", conv=conv(in_channels, cb)))
        elif cfg[0] == "max":
            branches.append(dict(kind="max", conv=conv(in_channels, cb), bn=bn(cb)))
        else:
            _, d = cfg
            wt = jax.random.normal(next(keys), (3, cb, cb), jnp.float32) / jnp.sqrt(3.0 * cb)
            bt = 0.1 * jax.random.normal(next(keys), (cb,), jnp.float32)
            branches.append(dict(kind="tcn", dilation=int(d),
                                 conv=conv(in_channels, cb), bn=bn(cb), tconv=(wt, bt)))
    return dict(branches=branches, bn_t=bn(tin), conv_t=conv(tin, out_channels),
                bn_f=bn(out_channels), mid=mid, rem=rem, tin=tin, c_out=out_channels)


# ----------------------------------------------------------------------------
# Host-side folding / packing into a few slabs
# ----------------------------------------------------------------------------
def pack_mstcn_params(raw):
    mid, rem, tin, c_out = raw["mid"], raw["rem"], raw["tin"], raw["c_out"]
    branches = raw["branches"]
    kinds = [b["kind"] for b in branches]
    assert kinds == ["tcn"] * (len(branches) - 2) + ["max", "1x1"]
    cb_list = [rem] + [mid] * (len(branches) - 1)
    cd = sum(cb for cb, k in zip(cb_list, kinds) if k == "tcn")

    ts, tsh = _affine(raw["bn_t"])          # transform BN, over tin
    fs, fsh = _affine(raw["bn_f"])          # final BN, over c_out

    w1_cols, b1_cols, dil_slices = [], [], []
    wm = jnp.zeros((cd, cd), jnp.float32)
    wc = jnp.zeros((cd, cd), jnp.float32)
    wp = jnp.zeros((cd, cd), jnp.float32)
    bt_all = jnp.zeros((cd,), jnp.float32)

    off = 0
    for br, cb in zip(branches, cb_list):
        w, b = br["conv"]
        if br["kind"] == "tcn":
            s, sh = _affine(br["bn"])                     # fold branch BN into 1x1
            w1_cols.append(w * s[None, :]); b1_cols.append(b * s + sh)
            wt, bt = br["tconv"]
            tsb, tshb = ts[off:off + cb], tsh[off:off + cb]  # fold transform BN into tcn
            wm = wm.at[off:off + cb, off:off + cb].set(wt[0] * tsb[None, :])
            wc = wc.at[off:off + cb, off:off + cb].set(wt[1] * tsb[None, :])
            wp = wp.at[off:off + cb, off:off + cb].set(wt[2] * tsb[None, :])
            bt_all = bt_all.at[off:off + cb].set(bt * tsb + tshb)
            dil_slices.append((int(br["dilation"]), off, off + cb))
        elif br["kind"] == "max":
            s, sh = _affine(br["bn"])                     # fold branch BN into 1x1
            w1_cols.append(w * s[None, :]); b1_cols.append(b * s + sh)
        else:  # '1x1': no branch BN/ReLU -> fold its transform-BN slice instead
            s5, sh5 = ts[off:off + cb], tsh[off:off + cb]
            w1_cols.append(w * s5[None, :]); b1_cols.append(b * s5 + sh5)
        off += cb

    w1_all = jnp.concatenate(w1_cols, axis=1)             # (C_in, tin)
    b1_all = jnp.concatenate(b1_cols, axis=0)              # (tin,)
    wt_all = jnp.stack([wm, wc, wp], axis=0)               # (3, cd, cd) block-diag

    w_tr, b_tr = raw["conv_t"]
    wtr = w_tr * fs[None, :]                                # fold final BN
    btr = b_tr * fs + fsh

    vw = max(tin, c_out, cd, 2 * mid)
    vec = jnp.zeros((4, vw), jnp.float32)
    vec = vec.at[0, :tin].set(b1_all)
    vec = vec.at[1, :cd].set(bt_all)
    vec = vec.at[2, :mid].set(ts[cd:cd + mid])
    vec = vec.at[2, mid:2 * mid].set(tsh[cd:cd + mid])
    vec = vec.at[3, :c_out].set(btr)

    slabs = (w1_all.astype(jnp.bfloat16),
             wt_all.astype(jnp.bfloat16),
             wtr.astype(jnp.bfloat16),
             vec)
    meta = dict(cd=int(cd), mid=int(mid), tin=int(tin), c_out=int(c_out),
                dil_slices=tuple(dil_slices))
    return slabs, meta


# ----------------------------------------------------------------------------
# Wrapper
# ----------------------------------------------------------------------------
def _pick_block_nv(nv, t):
    # ~512 matmul rows per grid step (bigger tiles amortize the ~0.35us/step
    # overhead) while keeping >=4 grid steps so 2-TC chips can split the grid.
    target = max(1, 512 // max(t, 1))
    blk = max(1, min(nv, target, max(1, nv // 4)))
    if (blk * t) % 8 != 0:                       # sublane-legal block or single block
        blk = nv
    return blk


def mstcn_forward(x, slabs, meta, *, block_nv=None):
    """x: (N, C, T, V) float32 -> (N, out_channels, T, V) float32."""
    w1, wt, wtr, vec = slabs
    N, C, T, V = x.shape
    c_out = meta["c_out"]
    nv = N * V

    if block_nv is None:
        block_nv = _pick_block_nv(nv, T)
    nv_pad = pl.cdiv(nv, block_nv) * block_nv

    xl = jnp.transpose(x, (0, 3, 2, 1)).reshape(nv, T, C)
    if nv_pad != nv:
        xl = jnp.concatenate(
            [xl, jnp.zeros((nv_pad - nv, T, C), xl.dtype)], axis=0)

    rows = nv_pad * T
    block_rows = block_nv * T
    x2 = xl.reshape(rows, C).astype(jnp.bfloat16)
    tidx = jnp.tile(jnp.arange(T, dtype=jnp.int32), block_nv).reshape(block_rows, 1)

    kernel = functools.partial(
        _mstcn_kernel, seq_len=T, dil_slices=meta["dil_slices"],
        cd=meta["cd"], mid=meta["mid"], tin=meta["tin"], c_out=c_out)

    y2 = pl.pallas_call(
        kernel,
        grid=(rows // block_rows,),
        in_specs=[
            pl.BlockSpec((block_rows, C), lambda m: (m, 0)),
            pl.BlockSpec((block_rows, 1), lambda m: (0, 0)),
            pl.BlockSpec(w1.shape, lambda m: (0, 0)),
            pl.BlockSpec(wt.shape, lambda m: (0, 0, 0)),
            pl.BlockSpec(wtr.shape, lambda m: (0, 0)),
            pl.BlockSpec(vec.shape, lambda m: (0, 0)),
        ],
        out_specs=pl.BlockSpec((block_rows, c_out), lambda m: (m, 0)),
        out_shape=jax.ShapeDtypeStruct((rows, c_out), jnp.float32),
        compiler_params=pltpu.CompilerParams(dimension_semantics=("parallel",)),
    )(x2, tidx, w1, wt, wtr, vec)

    y = y2.reshape(nv_pad, T, c_out)[:nv].reshape(N, V, T, c_out)
    return jnp.transpose(y, (0, 3, 2, 1))


# ----------------------------------------------------------------------------
# Pure-JAX reference (straightforward branch-by-branch math from raw params)
# ----------------------------------------------------------------------------
def mstcn_ref(x, raw, out_channels):
    N, C, T, V = x.shape
    xl = jnp.transpose(x, (0, 3, 2, 1)).reshape(N * V, T, C).astype(jnp.float32)
    mid, rem = raw["mid"], raw["rem"]
    cb_list = [rem] + [mid] * (len(raw["branches"]) - 1)

    def bn_apply(h, bn):
        s, sh = _affine(bn)
        return h * s + sh

    outs = []
    for br, cb in zip(raw["branches"], cb_list):
        w, b = br["conv"]
        o = jnp.einsum("mtc,cd->mtd", xl, w) + b
        if br["kind"] == "tcn":
            h = jnp.maximum(bn_apply(o, br["bn"]), 0.0)
            d = br["dilation"]
            z = jnp.zeros((h.shape[0], d, cb), jnp.float32)
            hm = jnp.concatenate([z, h[:, :T - d, :]], axis=1)
            hp = jnp.concatenate([h[:, d:, :], z], axis=1)
            wt, bt = br["tconv"]
            o = (jnp.einsum("mtc,cd->mtd", hm, wt[0])
                 + jnp.einsum("mtc,cd->mtd", h, wt[1])
                 + jnp.einsum("mtc,cd->mtd", hp, wt[2]) + bt)
        elif br["kind"] == "max":
            h = jnp.maximum(bn_apply(o, br["bn"]), 0.0)
            ninf = jnp.full((h.shape[0], 1, cb), -jnp.inf, jnp.float32)
            hm = jnp.concatenate([ninf, h[:, :T - 1, :]], axis=1)
            hp = jnp.concatenate([h[:, 1:, :], ninf], axis=1)
            o = jnp.maximum(jnp.maximum(hm, h), hp)
        outs.append(o)
    feat = jnp.concatenate(outs, axis=-1)
    feat = jnp.maximum(bn_apply(feat, raw["bn_t"]), 0.0)
    w_tr, b_tr = raw["conv_t"]
    y = jnp.einsum("mtc,cd->mtd", feat, w_tr) + b_tr
    y = bn_apply(y, raw["bn_f"])
    return jnp.transpose(y.reshape(N, V, T, out_channels), (0, 3, 2, 1))


if __name__ == "__main__":
    key = jax.random.PRNGKey(0)
    kx, kp = jax.random.split(key)
    N, C_in, T, V = 2, 16, 16, 16
    C_out = 24  # 6 branches -> mid = 4, rem = 4, tin = 24

    x = jax.random.normal(kx, (N, C_in, T, V), jnp.float32)
    raw = init_mstcn_params(kp, C_in, C_out)
    slabs, meta = pack_mstcn_params(raw)

    y = mstcn_forward(x, slabs, meta)
    y = jax.block_until_ready(y)
    assert y.shape == (N, C_out, T, V)

    y_ref = mstcn_ref(x, raw, C_out)
    # bf16 MXU operands in the kernel vs f32 reference -> loose-ish tolerance.
    assert jnp.allclose(y, y_ref, atol=5e-2, rtol=5e-2), float(jnp.max(jnp.abs(y - y_ref)))

    print("KERNEL_OK")
</pallas_src>

<mosaic_0001>
module attributes {stable_mosaic.version = 11 : i64} {
  func.func @_mstcn_kernel(%arg0: i32, %arg1: memref<128x16xbf16, #tpu.memory_space<vmem>>, %arg2: memref<128x1xi32, #tpu.memory_space<vmem>>, %arg3: memref<16x24xbf16, #tpu.memory_space<vmem>>, %arg4: memref<3x16x16xbf16, #tpu.memory_space<vmem>>, %arg5: memref<24x24xbf16, #tpu.memory_space<vmem>>, %arg6: memref<4x24xf32, #tpu.memory_space<vmem>>, %arg7: memref<128x24xf32, #tpu.memory_space<vmem>>) attributes {dimension_semantics = [#tpu.dimension_semantics<parallel>], iteration_bounds = array<i64: 4>, scalar_prefetch = 0 : i64, scratch_operands = 0 : i64, tpu.core_type = #tpu.core_type<tc>, window_params = [{transform_indices = @transform_0, window_bounds = array<i64: 128, 16>}, {pipeline_mode = #tpu.pipeline_mode<synchronous>, transform_indices = @transform_1, window_bounds = array<i64: 128, 1>}, {pipeline_mode = #tpu.pipeline_mode<synchronous>, transform_indices = @transform_2, window_bounds = array<i64: 16, 24>}, {pipeline_mode = #tpu.pipeline_mode<synchronous>, transform_indices = @transform_3, window_bounds = array<i64: 3, 16, 16>}, {pipeline_mode = #tpu.pipeline_mode<synchronous>, transform_indices = @transform_4, window_bounds = array<i64: 24, 24>}, {pipeline_mode = #tpu.pipeline_mode<synchronous>, transform_indices = @transform_5, window_bounds = array<i64: 4, 24>}, {transform_indices = @transform_6, window_bounds = array<i64: 128, 24>}]} {
    %c0 = arith.constant 0 : index
    %c0_0 = arith.constant 0 : index
    %0 = vector.load %arg1[%c0, %c0_0] : memref<128x16xbf16, #tpu.memory_space<vmem>>, vector<128x16xbf16>
    %c0_1 = arith.constant 0 : index
    %c0_2 = arith.constant 0 : index
    %1 = vector.load %arg2[%c0_1, %c0_2] : memref<128x1xi32, #tpu.memory_space<vmem>>, vector<128x1xi32>
    %c0_3 = arith.constant 0 : index
    %c0_4 = arith.constant 0 : index
    %2 = vector.load %arg6[%c0_3, %c0_4] : memref<4x24xf32, #tpu.memory_space<vmem>>, vector<1x24xf32>
    %c1 = arith.constant 1 : index
    %c0_5 = arith.constant 0 : index
    %3 = vector.load %arg6[%c1, %c0_5] : memref<4x24xf32, #tpu.memory_space<vmem>>, vector<1x16xf32>
    %c2 = arith.constant 2 : index
    %c0_6 = arith.constant 0 : index
    %4 = vector.load %arg6[%c2, %c0_6] : memref<4x24xf32, #tpu.memory_space<vmem>>, vector<1x4xf32>
    %c2_7 = arith.constant 2 : index
    %c4 = arith.constant 4 : index
    %5 = vector.load %arg6[%c2_7, %c4] : memref<4x24xf32, #tpu.memory_space<vmem>>, vector<1x4xf32>
    %c3 = arith.constant 3 : index
    %c0_8 = arith.constant 0 : index
    %6 = vector.load %arg6[%c3, %c0_8] : memref<4x24xf32, #tpu.memory_space<vmem>>, vector<1x24xf32>
    %c0_9 = arith.constant 0 : index
    %c0_10 = arith.constant 0 : index
    %7 = vector.load %arg3[%c0_9, %c0_10] : memref<16x24xbf16, #tpu.memory_space<vmem>>, vector<16x24xbf16>
    %cst = arith.constant dense<0.000000e+00> : vector<128x24xf32>
    %8 = tpu.matmul %0, %7, %cst {dimension_numbers = #tpu.dot_dimension_numbers<[1], [0], [0], [1], [0, 0, 1, 1], [], []>} : vector<128x16xbf16>, vector<16x24xbf16>, vector<128x24xf32> -> vector<128x24xf32>
    %9 = vector.broadcast %2 : vector<1x24xf32> to vector<128x24xf32>
    %10 = arith.addf %8, %9 : vector<128x24xf32>
    %cst_11 = arith.constant 0.000000e+00 : f32
    %11 = vector.broadcast %cst_11 : f32 to vector<128x24xf32>
    %12 = arith.maximumf %10, %11 : vector<128x24xf32>
    %13 = vector.extract_strided_slice %12 {offsets = [0, 0], sizes = [128, 16], strides = [1, 1]} : vector<128x24xf32> to vector<128x16xf32>
    %14 = vector.extract_strided_slice %12 {offsets = [0, 16], sizes = [128, 4], strides = [1, 1]} : vector<128x24xf32> to vector<128x4xf32>
    %15 = vector.extract_strided_slice %12 {offsets = [0, 20], sizes = [128, 4], strides = [1, 1]} : vector<128x24xf32> to vector<128x4xf32>
    %16 = tpu.iota {dimensions = array<i32: 1>} : vector<1x16xi32>
    %cst_12 = arith.constant 0.000000e+00 : f32
    %17 = vector.broadcast %cst_12 : f32 to vector<128x16xf32>
    %cst_13 = arith.constant 0.000000e+00 : f32
    %18 = vector.broadcast %cst_13 : f32 to vector<128x16xf32>
    %c0_i32 = arith.constant 0 : i32
    %19 = vector.broadcast %c0_i32 : i32 to vector<1x16xi32>
    %20 = arith.cmpi sge, %16, %19 : vector<1x16xi32>
    %c4_i32 = arith.constant 4 : i32
    %21 = vector.broadcast %c4_i32 : i32 to vector<1x16xi32>
    %22 = arith.cmpi slt, %16, %21 : vector<1x16xi32>
    %23 = arith.andi %20, %22 : vector<1x16xi1>
    %c1_i32 = arith.constant 1 : i32
    %24 = vector.broadcast %c1_i32 : i32 to vector<128x1xi32>
    %25 = arith.cmpi sge, %1, %24 : vector<128x1xi32>
    %26 = vector.broadcast %23 : vector<1x16xi1> to vector<128x16xi1>
    %27 = vector.broadcast %25 : vector<128x1xi1> to vector<128x16xi1>
    %28 = arith.andi %26, %27 : vector<128x16xi1>
    %c1_i32_14 = arith.constant 1 : i32
    %29 = tpu.dynamic_rotate %13 by %c1_i32_14 dim 0 : vector<128x16xf32>, i32 -> vector<128x16xf32>
    %30 = arith.select %28, %29, %17 : vector<128x16xi1>, vector<128x16xf32>
    %c15_i32 = arith.constant 15 : i32
    %31 = vector.broadcast %c15_i32 : i32 to vector<128x1xi32>
    %32 = arith.cmpi slt, %1, %31 : vector<128x1xi32>
    %33 = vector.broadcast %23 : vector<1x16xi1> to vector<128x16xi1>
    %34 = vector.broadcast %32 : vector<128x1xi1> to vector<128x16xi1>
    %35 = arith.andi %33, %34 : vector<128x16xi1>
    %c127_i32 = arith.constant 127 : i32
    %36 = tpu.dynamic_rotate %13 by %c127_i32 dim 0 : vector<128x16xf32>, i32 -> vector<128x16xf32>
    %37 = arith.select %35, %36, %18 : vector<128x16xi1>, vector<128x16xf32>
    %c4_i32_15 = arith.constant 4 : i32
    %38 = vector.broadcast %c4_i32_15 : i32 to vector<1x16xi32>
    %39 = arith.cmpi sge, %16, %38 : vector<1x16xi32>
    %c8_i32 = arith.constant 8 : i32
    %40 = vector.broadcast %c8_i32 : i32 to vector<1x16xi32>
    %41 = arith.cmpi slt, %16, %40 : vector<1x16xi32>
    %42 = arith.andi %39, %41 : vector<1x16xi1>
    %c2_i32 = arith.constant 2 : i32
    %43 = vector.broadcast %c2_i32 : i32 to vector<128x1xi32>
    %44 = arith.cmpi sge, %1, %43 : vector<128x1xi32>
    %45 = vector.broadcast %42 : vector<1x16xi1> to vector<128x16xi1>
    %46 = vector.broadcast %44 : vector<128x1xi1> to vector<128x16xi1>
    %47 = arith.andi %45, %46 : vector<128x16xi1>
    %c2_i32_16 = arith.constant 2 : i32
    %48 = tpu.dynamic_rotate %13 by %c2_i32_16 dim 0 : vector<128x16xf32>, i32 -> vector<128x16xf32>
    %49 = arith.select %47, %48, %30 : vector<128x16xi1>, vector<128x16xf32>
    %c14_i32 = arith.constant 14 : i32
    %50 = vector.broadcast %c14_i32 : i32 to vector<128x1xi32>
    %51 = arith.cmpi slt, %1, %50 : vector<128x1xi32>
    %52 = vector.broadcast %42 : vector<1x16xi1> to vector<128x16xi1>
    %53 = vector.broadcast %51 : vector<128x1xi1> to vector<128x16xi1>
    %54 = arith.andi %52, %53 : vector<128x16xi1>
    %c126_i32 = arith.constant 126 : i32
    %55 = tpu.dynamic_rotate %13 by %c126_i32 dim 0 : vector<128x16xf32>, i32 -> vector<128x16xf32>
    %56 = arith.select %54, %55, %37 : vector<128x16xi1>, vector<128x16xf32>
    %c8_i32_17 = arith.constant 8 : i32
    %57 = vector.broadcast %c8_i32_17 : i32 to vector<1x16xi32>
    %58 = arith.cmpi sge, %16, %57 : vector<1x16xi32>
    %c12_i32 = arith.constant 12 : i32
    %59 = vector.broadcast %c12_i32 : i32 to vector<1x16xi32>
    %60 = arith.cmpi slt, %16, %59 : vector<1x16xi32>
    %61 = arith.andi %58, %60 : vector<1x16xi1>
    %c3_i32 = arith.constant 3 : i32
    %62 = vector.broadcast %c3_i32 : i32 to vector<128x1xi32>
    %63 = arith.cmpi sge, %1, %62 : vector<128x1xi32>
    %64 = vector.broadcast %61 : vector<1x16xi1> to vector<128x16xi1>
    %65 = vector.broadcast %63 : vector<128x1xi1> to vector<128x16xi1>
    %66 = arith.andi %64, %65 : vector<128x16xi1>
    %c3_i32_18 = arith.constant 3 : i32
    %67 = tpu.dynamic_rotate %13 by %c3_i32_18 dim 0 : vector<128x16xf32>, i32 -> vector<128x16xf32>
    %68 = arith.select %66, %67, %49 : vector<128x16xi1>, vector<128x16xf32>
    %c13_i32 = arith.constant 13 : i32
    %69 = vector.broadcast %c13_i32 : i32 to vector<128x1xi32>
    %70 = arith.cmpi slt, %1, %69 : vector<128x1xi32>
    %71 = vector.broadcast %61 : vector<1x16xi1> to vector<128x16xi1>
    %72 = vector.broadcast %70 : vector<128x1xi1> to vector<128x16xi1>
    %73 = arith.andi %71, %72 : vector<128x16xi1>
    %c125_i32 = arith.constant 125 : i32
    %74 = tpu.dynamic_rotate %13 by %c125_i32 dim 0 : vector<128x16xf32>, i32 -> vector<128x16xf32>
    %75 = arith.select %73, %74, %56 : vector<128x16xi1>, vector<128x16xf32>
    %c12_i32_19 = arith.constant 12 : i32
    %76 = vector.broadcast %c12_i32_19 : i32 to vector<1x16xi32>
    %77 = arith.cmpi sge, %16, %76 : vector<1x16xi32>
    %c16_i32 = arith.constant 16 : i32
    %78 = vector.broadcast %c16_i32 : i32 to vector<1x16xi32>
    %79 = arith.cmpi slt, %16, %78 : vector<1x16xi32>
    %80 = arith.andi %77, %79 : vector<1x16xi1>
    %c4_i32_20 = arith.constant 4 : i32
    %81 = vector.broadcast %c4_i32_20 : i32 to vector<128x1xi32>
    %82 = arith.cmpi sge, %1, %81 : vector<128x1xi32>
    %83 = vector.broadcast %80 : vector<1x16xi1> to vector<128x16xi1>
    %84 = vector.broadcast %82 : vector<128x1xi1> to vector<128x16xi1>
    %85 = arith.andi %83, %84 : vector<128x16xi1>
    %c4_i32_21 = arith.constant 4 : i32
    %86 = tpu.dynamic_rotate %13 by %c4_i32_21 dim 0 : vector<128x16xf32>, i32 -> vector<128x16xf32>
    %87 = arith.select %85, %86, %68 : vector<128x16xi1>, vector<128x16xf32>
    %c12_i32_22 = arith.constant 12 : i32
    %88 = vector.broadcast %c12_i32_22 : i32 to vector<128x1xi32>
    %89 = arith.cmpi slt, %1, %88 : vector<128x1xi32>
    %90 = vector.broadcast %80 : vector<1x16xi1> to vector<128x16xi1>
    %91 = vector.broadcast %89 : vector<128x1xi1> to vector<128x16xi1>
    %92 = arith.andi %90, %91 : vector<128x16xi1>
    %c124_i32 = arith.constant 124 : i32
    %93 = tpu.dynamic_rotate %13 by %c124_i32 dim 0 : vector<128x16xf32>, i32 -> vector<128x16xf32>
    %94 = arith.select %92, %93, %75 : vector<128x16xi1>, vector<128x16xf32>
    %c0_23 = arith.constant 0 : index
    %c0_24 = arith.constant 0 : index
    %c0_25 = arith.constant 0 : index
    %95 = vector.load %arg4[%c0_23, %c0_24, %c0_25] : memref<3x16x16xbf16, #tpu.memory_space<vmem>>, vector<1x16x16xbf16>
    %96 = vector.shape_cast %95 : vector<1x16x16xbf16> to vector<16x16xbf16>
    %97 = arith.truncf %87 : vector<128x16xf32> to vector<128x16xbf16>
    %cst_26 = arith.constant dense<0.000000e+00> : vector<128x16xf32>
    %98 = tpu.matmul %97, %96, %cst_26 {dimension_numbers = #tpu.dot_dimension_numbers<[1], [0], [0], [1], [0, 0, 1, 1], [], []>} : vector<128x16xbf16>, vector<16x16xbf16>, vector<128x16xf32> -> vector<128x16xf32>
    %c1_27 = arith.constant 1 : index
    %c0_28 = arith.constant 0 : index
    %c0_29 = arith.constant 0 : index
    %99 = vector.load %arg4[%c1_27, %c0_28, %c0_29] : memref<3x16x16xbf16, #tpu.memory_space<vmem>>, vector<1x16x16xbf16>
    %100 = vector.shape_cast %99 : vector<1x16x16xbf16> to vector<16x16xbf16>
    %101 = arith.truncf %13 : vector<128x16xf32> to vector<128x16xbf16>
    %cst_30 = arith.constant dense<0.000000e+00> : vector<128x16xf32>
    %102 = tpu.matmul %101, %100, %cst_30 {dimension_numbers = #tpu.dot_dimension_numbers<[1], [0], [0], [1], [0, 0, 1, 1], [], []>} : vector<128x16xbf16>, vector<16x16xbf16>, vector<128x16xf32> -> vector<128x16xf32>
    %103 = arith.addf %98, %102 : vector<128x16xf32>
    %c2_31 = arith.constant 2 : index
    %c0_32 = arith.constant 0 : index
    %c0_33 = arith.constant 0 : index
    %104 = vector.load %arg4[%c2_31, %c0_32, %c0_33] : memref<3x16x16xbf16, #tpu.memory_space<vmem>>, vector<1x16x16xbf16>
    %105 = vector.shape_cast %104 : vector<1x16x16xbf16> to vector<16x16xbf16>
    %106 = arith.truncf %94 : vector<128x16xf32> to vector<128x16xbf16>
    %cst_34 = arith.constant dense<0.000000e+00> : vector<128x16xf32>
    %107 = tpu.matmul %106, %105, %cst_34 {dimension_numbers = #tpu.dot_dimension_numbers<[1], [0], [0], [1], [0, 0, 1, 1], [], []>} : vector<128x16xbf16>, vector<16x16xbf16>, vector<128x16xf32> -> vector<128x16xf32>
    %108 = arith.addf %103, %107 : vector<128x16xf32>
    %109 = vector.broadcast %3 : vector<1x16xf32> to vector<128x16xf32>
    %110 = arith.addf %108, %109 : vector<128x16xf32>
    %cst_35 = arith.constant 0.000000e+00 : f32
    %111 = vector.broadcast %cst_35 : f32 to vector<128x16xf32>
    %112 = arith.maximumf %110, %111 : vector<128x16xf32>
    %c1_i32_36 = arith.constant 1 : i32
    %113 = vector.broadcast %c1_i32_36 : i32 to vector<128x1xi32>
    %114 = arith.cmpi sge, %1, %113 : vector<128x1xi32>
    %c1_i32_37 = arith.constant 1 : i32
    %115 = tpu.dynamic_rotate %14 by %c1_i32_37 dim 0 : vector<128x4xf32>, i32 -> vector<128x4xf32>
    %cst_38 = arith.constant 0xFF800000 : f32
    %116 = vector.shape_cast %114 : vector<128x1xi1> to vector<128x1xi1>
    %117 = vector.broadcast %116 : vector<128x1xi1> to vector<128x4xi1>
    %118 = vector.broadcast %cst_38 : f32 to vector<128x4xf32>
    %119 = arith.select %117, %115, %118 : vector<128x4xi1>, vector<128x4xf32>
    %c15_i32_39 = arith.constant 15 : i32
    %120 = vector.broadcast %c15_i32_39 : i32 to vector<128x1xi32>
    %121 = arith.cmpi slt, %1, %120 : vector<128x1xi32>
    %c127_i32_40 = arith.constant 127 : i32
    %122 = tpu.dynamic_rotate %14 by %c127_i32_40 dim 0 : vector<128x4xf32>, i32 -> vector<128x4xf32>
    %cst_41 = arith.constant 0xFF800000 : f32
    %123 = vector.shape_cast %121 : vector<128x1xi1> to vector<128x1xi1>
    %124 = vector.broadcast %123 : vector<128x1xi1> to vector<128x4xi1>
    %125 = vector.broadcast %cst_41 : f32 to vector<128x4xf32>
    %126 = arith.select %124, %122, %125 : vector<128x4xi1>, vector<128x4xf32>
    %127 = arith.maximumf %119, %14 : vector<128x4xf32>
    %128 = arith.maximumf %127, %126 : vector<128x4xf32>
    %129 = vector.broadcast %4 : vector<1x4xf32> to vector<128x4xf32>
    %130 = arith.mulf %128, %129 : vector<128x4xf32>
    %131 = vector.broadcast %5 : vector<1x4xf32> to vector<128x4xf32>
    %132 = arith.addf %130, %131 : vector<128x4xf32>
    %cst_42 = arith.constant 0.000000e+00 : f32
    %133 = vector.broadcast %cst_42 : f32 to vector<128x4xf32>
    %134 = arith.maximumf %132, %133 : vector<128x4xf32>
    %c0_43 = arith.constant 0 : index
    %c0_44 = arith.constant 0 : index
    %135 = vector.load %arg5[%c0_43, %c0_44] : memref<24x24xbf16, #tpu.memory_space<vmem>>, vector<24x24xbf16>
    %136 = vector.extract_strided_slice %135 {offsets = [0, 0], sizes = [16, 24], strides = [1, 1]} : vector<24x24xbf16> to vector<16x24xbf16>
    %137 = arith.truncf %112 : vector<128x16xf32> to vector<128x16xbf16>
    %cst_45 = arith.constant dense<0.000000e+00> : vector<128x24xf32>
    %138 = tpu.matmul %137, %136, %cst_45 {dimension_numbers = #tpu.dot_dimension_numbers<[1], [0], [0], [1], [0, 0, 1, 1], [], []>} : vector<128x16xbf16>, vector<16x24xbf16>, vector<128x24xf32> -> vector<128x24xf32>
    %139 = vector.extract_strided_slice %135 {offsets = [16, 0], sizes = [4, 24], strides = [1, 1]} : vector<24x24xbf16> to vector<4x24xbf16>
    %140 = arith.truncf %134 : vector<128x4xf32> to vector<128x4xbf16>
    %cst_46 = arith.constant dense<0.000000e+00> : vector<128x24xf32>
    %141 = tpu.matmul %140, %139, %cst_46 {dimension_numbers = #tpu.dot_dimension_numbers<[1], [0], [0], [1], [0, 0, 1, 1], [], []>} : vector<128x4xbf16>, vector<4x24xbf16>, vector<128x24xf32> -> vector<128x24xf32>
    %142 = arith.addf %138, %141 : vector<128x24xf32>
    %143 = vector.extract_strided_slice %135 {offsets = [20, 0], sizes = [4, 24], strides = [1, 1]} : vector<24x24xbf16> to vector<4x24xbf16>
    %144 = arith.truncf %15 : vector<128x4xf32> to vector<128x4xbf16>
    %cst_47 = arith.constant dense<0.000000e+00> : vector<128x24xf32>
    %145 = tpu.matmul %144, %143, %cst_47 {dimension_numbers = #tpu.dot_dimension_numbers<[1], [0], [0], [1], [0, 0, 1, 1], [], []>} : vector<128x4xbf16>, vector<4x24xbf16>, vector<128x24xf32> -> vector<128x24xf32>
    %146 = arith.addf %142, %145 : vector<128x24xf32>
    %147 = vector.broadcast %6 : vector<1x24xf32> to vector<128x24xf32>
    %148 = arith.addf %146, %147 : vector<128x24xf32>
    %c0_48 = arith.constant 0 : index
    %c0_49 = arith.constant 0 : index
    %149 = vector.load %arg7[%c0_48, %c0_49] : memref<128x24xf32, #tpu.memory_space<vmem>>, vector<128x24xf32>
    tpu.vector_store %arg7[%c0_48, %c0_49], %148 {strides = array<i32>} : memref<128x24xf32, #tpu.memory_space<vmem>>, vector<128x24xf32>,
    return
  }
  func.func @transform_0(%arg0: i32) -> (i32, i32) {
    %c0_i32 = arith.constant 0 : i32
    %c0_i32_0 = arith.constant 0 : i32
    return %arg0, %c0_i32 : i32, i32
  }
  func.func @transform_1(%arg0: i32) -> (i32, i32) {
    %c0_i32 = arith.constant 0 : i32
    %c0_i32_0 = arith.constant 0 : i32
    %c0_i32_1 = arith.constant 0 : i32
    return %c0_i32, %c0_i32_0 : i32, i32
  }
  func.func @transform_2(%arg0: i32) -> (i32, i32) {
    %c0_i32 = arith.constant 0 : i32
    %c0_i32_0 = arith.constant 0 : i32
    %c0_i32_1 = arith.constant 0 : i32
    return %c0_i32, %c0_i32_0 : i32, i32
  }
  func.func @transform_3(%arg0: i32) -> (i32, i32, i32) {
    %c0_i32 = arith.constant 0 : i32
    %c0_i32_0 = arith.constant 0 : i32
    %c0_i32_1 = arith.constant 0 : i32
    %c0_i32_2 = arith.constant 0 : i32
    return %c0_i32, %c0_i32_0, %c0_i32_1 : i32, i32, i32
  }
  func.func @transform_4(%arg0: i32) -> (i32, i32) {
    %c0_i32 = arith.constant 0 : i32
    %c0_i32_0 = arith.constant 0 : i32
    %c0_i32_1 = arith.constant 0 : i32
    return %c0_i32, %c0_i32_0 : i32, i32
  }
  func.func @transform_5(%arg0: i32) -> (i32, i32) {
    %c0_i32 = arith.constant 0 : i32
    %c0_i32_0 = arith.constant 0 : i32
    %c0_i32_1 = arith.constant 0 : i32
    return %c0_i32, %c0_i32_0 : i32, i32
  }
  func.func @transform_6(%arg0: i32) -> (i32, i32) {
    %c0_i32 = arith.constant 0 : i32
    %c0_i32_0 = arith.constant 0 : i32
    return %arg0, %c0_i32 : i32, i32
  }
}

</mosaic_0001>

<bundles_post_ra>
// kernel: tpu_custom_call.1
= control target key start
LH: loop header
LB: loop body
LE: loop exit
PB: predicated region body
PF: predicated region fallthrough
CT: control target
= control target key end

     0   :  { %s2872_s21 = smov 0   ;;  %s5641_s0 = inlined_call_operand.vmem [shape: bf16[512,16], index: 0, kind: input, shape index: {}]   ;;  %s5642_s1 = inlined_call_operand.vmem [shape: s32[128,1], index: 1, kind: input, shape index: {}]   ;;  %s5643_s2 = inlined_call_operand.vmem [shape: bf16[16,24], index: 2, kind: input, shape index: {}]   ;;  %s5644_s3 = inlined_call_operand.vmem [shape: bf16[3,16,16], index: 3, kind: input, shape index: {}]   ;;  %s5645_s4 = inlined_call_operand.vmem [shape: bf16[24,24], index: 4, kind: input, shape index: {}]   ;;  %s5646_s5 = inlined_call_operand.vmem [shape: f32[4,24], index: 5, kind: input, shape index: {}]   ;;  %s5647_s6 = inlined_call_operand.vmem [shape: f32[512,24], index: 6, kind: output, shape index: {}]  }
   0x1 LB: > { %s2659_s22 = sadd.s32 4294967295, %s2831_s21   ;;  %p2663_p0 = scmp.ge.s32.totalorder %s2831_s21, 1  ;;  %s2831_s21 = sphi %s2872_s21, %s16_s21  }
   0x2   : > { %p213_p1 = scmp.lt.s32.totalorder %s2831_s21, 5 }
   0x4   : > { %p214_p2 = pnand %p2663_p0, %p213_p1 }
   0x6   : > { %217 = sbr.rel (%p214_p2) target bundleno = 770 (0x302), region = 44 }
   0xb   : > { %v2883_v0 = vld [vmem:[%s5642_s1 + $0x20] sm:$0xff]  ;;  %v2888_v1 = vld [vmem:[%s5642_s1 + $0x10] sm:$0xff]  ;;  %s2664_s29 = sshll.u32 %s2659_s22, 4  ;;  %v5658_v3 = vmov 0   ;;  %v2910_v8 = vld [vmem:[%s5642_s1 + $0x28] sm:$0xff]  ;;  %vm5696_vm5 = vcmask 130048  }
   0xc   : > { %v2893_v2 = vld [vmem:[%s5642_s1] sm:$0xff]  ;;  %2812 = vset.pattern.permute.xlu2 %v5658_v3  ;;  %2811 = vset.pattern.permute.xlu1 %v5658_v3  ;;  %vm440_vm0 = vcmp.ge.s32.totalorder %v2883_v0, 1  ;;  %vm438_vm1 = vcmp.ge.s32.totalorder %v2888_v1, 1  ;;  %p244_p3 = scmp.lt.s32.totalorder %s2664_s29, 63  ;;  %v2915_v9 = vld [vmem:[%s5642_s1 + $0x18] sm:$0xff]  ;;  %v2922_v10 = vld [vmem:[%s5642_s1 + $0x8] sm:$0xff] }
   0xd   : > { %vm436_vm2 = vcmp.ge.s32.totalorder %v2893_v2, 1  ;;  %v2790_v4 = vld [vmem:[%s5643_s2] sm:$0xff]  ;;  %2810 = vset.pattern.permute.xlu0 %v5658_v3  ;;  %v458_v5 = vsel %vm440_vm0, 1, %v5658_v3  ;;  %v456_v6 = vsel %vm438_vm1, 1, %v5658_v3  ;;  %vm441_vm3 = vcmp.ge.s32.totalorder %v2910_v8, 1  ;;  %v2948_v17 = vld [vmem:[%s5642_s1 + $0x38] sm:$0xff] }
   0xe   : > { %v454_v7 = vsel %vm436_vm2, 1, %v5658_v3  ;;  %483 = vperm.xlu2 %2812, %v458_v5   ;;  %477 = vperm.xlu1 %2811, %v456_v6   ;;  %s6286_s29 = smov (!%p244_p3, %s2664_s29), 63  ;;  %vm439_vm4 = vcmp.ge.s32.totalorder %v2915_v9, 1  ;;  %vm437_vm6 = vcmp.ge.s32.totalorder %v2922_v10, 1  ;;  %v459_v13 = vsel %vm441_vm3, 1, %v5658_v3  ;;  %v2943_v16 = vld [vmem:[%s5642_s1 + $0x40] sm:$0xff] }
   0xf   : > { %471 = vperm.xlu0 %2810, %v454_v7   ;;  %373 = vmatpush.bf16.msra.mxu0 %v2790_v4  ;;  %s2665_s14 = sshll.u32 %s6286_s29, 2  ;;  %v457_v14 = vsel %vm439_vm4, 1, %v5658_v3  ;;  %v455_v15 = vsel %vm437_vm6, 1, %v5658_v3  ;;  %v2953_v18 = vld [vmem:[%s5642_s1 + $0x30] sm:$0xff]  ;;  %vm444_vm7 = vcmp.ge.s32.totalorder %v2943_v16, 1  ;;  %vm443_vm8 = vcmp.ge.s32.totalorder %v2948_v17, 1 }
  0x10   : > { %2795 = vmatpush.bf16.msra.mxu3 %v2790_v4  ;;  %s2930_s17 = scalar_lea.vmem %s5641_s0, %s2665_s14  ;;  %vm442_vm9 = vcmp.ge.s32.totalorder %v2953_v18, 1  ;;  %v462_v19 = vsel %vm444_vm7, 1, %v5658_v3  ;;  %v461_v20 = vsel %vm443_vm8, 1, %v5658_v3  ;;  %v2964_v22 = vld [vmem:[%s5642_s1 + $0x58] sm:$0xff]  ;;  %v2969_v23 = vld [vmem:[%s5642_s1 + $0x50] sm:$0xff]  ;;  %v2974_v24 = vld [vmem:[%s5642_s1 + $0x48] sm:$0xff] }
  0x11   : > { %v2782_v11 = vld [vmem:[%s2930_s17] sm:$0xff]  ;;  %v2788_v12 = vld [vmem:[%s2930_s17 + $0x30] sm:$0xff]  ;;  %v460_v21 = vsel %vm442_vm9, 1, %v5658_v3  ;;  %v2783_v25 = vld [vmem:[%s2930_s17 + $0x8] sm:$0xff]  ;;  %vm447_vm10 = vcmp.ge.s32.totalorder %v2964_v22, 1  ;;  %vm446_vm11 = vcmp.ge.s32.totalorder %v2969_v23, 1 }
  0x12   : > { %2704 = vmatmul.msk.bf16.vlgmr.msra.gmra.mxu0 %vm5696_vm5, %v2782_v11  ;;  %v2789_v26 = vld [vmem:[%s2930_s17 + $0x38] sm:$0xff]  ;;  %vm445_vm12 = vcmp.ge.s32.totalorder %v2974_v24, 1  ;;  %v465_v27 = vsel %vm447_vm10, 1, %v5658_v3  ;;  %v464_v28 = vsel %vm446_vm11, 1, %v5658_v3  ;;  %v2989_v30 = vld [vmem:[%s5642_s1 + $0x70] sm:$0xff]  ;;  %v2994_v31 = vld [vmem:[%s5642_s1 + $0x68] sm:$0xff] }
  0x13   : > { %2710 = vmatmul.msk.bf16.vlgmr.msra.gmra.mxu3 %vm5696_vm5, %v2788_v12  ;;  %v463_v29 = vsel %vm445_vm12, 1, %v5658_v3  ;;  %v2999_v32 = vld [vmem:[%s5642_s1 + $0x60] sm:$0xff]  ;;  %vm450_vm13 = vcmp.ge.s32.totalorder %v2989_v30, 1  ;;  %vm449_vm14 = vcmp.ge.s32.totalorder %v2994_v31, 1  ;;  %v3010_v36 = vld [vmem:[%s5642_s1 + $0x78] sm:$0xff]  ;;  %v2784_v37 = vld [vmem:[%s2930_s17 + $0x10] sm:$0xff] }
  0x14   : > { %vm448_vm15 = vcmp.ge.s32.totalorder %v2999_v32, 1  ;;  %v468_v33 = vsel %vm450_vm13, 1, %v5658_v3  ;;  %v467_v34 = vsel %vm449_vm14, 1, %v5658_v3  ;;  %vm602_vm0 = vcmp.lt.s32.totalorder %v2922_v10, 15  ;;  %v2785_v44 = vld [vmem:[%s2930_s17 + $0x18] sm:$0xff]  ;;  %v2786_v51 = vld [vmem:[%s2930_s17 + $0x20] sm:$0xff] }
  0x15   : > { %v466_v35 = vsel %vm448_vm15, 1, %v5658_v3  ;;  %vm601_vm1 = vcmp.lt.s32.totalorder %v2893_v2, 15  ;;  %vm451_vm2 = vcmp.ge.s32.totalorder %v3010_v36, 1  ;;  %v618_v38 = vsel %vm602_vm0, 1, %v5658_v3  ;;  %v2787_v58 = vld [vmem:[%s2930_s17 + $0x28] sm:$0xff]  ;;  %s2834_s16 = smov 112  }
  0x16   : > { %486 = vperm.xlu2 %2812, %v459_v13   ;;  %480 = vperm.xlu1 %2811, %v457_v14   ;;  %v617_v39 = vsel %vm601_vm1, 1, %v5658_v3  ;;  %v469_v40 = vsel %vm451_vm2, 1, %v5658_v3  ;;  %vm605_vm3 = vcmp.lt.s32.totalorder %v2883_v0, 15  ;;  %vm604_vm4 = vcmp.lt.s32.totalorder %v2915_v9, 15  ;;  %s2835_s19 = smov 108   ;;  %s2836_s20 = smov 124  }
  0x17   : > { %474 = vperm.xlu0 %2810, %v455_v15   ;;  %vm603_vm6 = vcmp.lt.s32.totalorder %v2888_v1, 15  ;;  %v621_v41 = vsel %vm605_vm3, 1, %v5658_v3  ;;  %v620_v42 = vsel %vm604_vm4, 1, %v5658_v3  ;;  %vm608_vm7 = vcmp.lt.s32.totalorder %v2948_v17, 15  ;;  %s2667_s7 = sshll.u32 %s6286_s29, 3 }
  0x18   : > { %v619_v43 = vsel %vm603_vm6, 1, %v5658_v3  ;;  %vm607_vm8 = vcmp.lt.s32.totalorder %v2953_v18, 15  ;;  %vm606_vm9 = vcmp.lt.s32.totalorder %v2910_v8, 15  ;;  %v624_v45 = vsel %vm608_vm7, 1, %v5658_v3  ;;  %s5587_s12 = scalar_lea.vmem %s5647_s6, %s2667_s7 }
  0x19   : > { %v623_v46 = vsel %vm607_vm8, 1, %v5658_v3  ;;  %v622_v47 = vsel %vm606_vm9, 1, %v5658_v3  ;;  %vm611_vm10 = vcmp.lt.s32.totalorder %v2969_v23, 15  ;;  %vm610_vm11 = vcmp.lt.s32.totalorder %v2974_v24, 15 }
  0x1a   : > { %vm609_vm12 = vcmp.lt.s32.totalorder %v2943_v16, 15  ;;  %v627_v48 = vsel %vm611_vm10, 1, %v5658_v3  ;;  %v626_v49 = vsel %vm610_vm11, 1, %v5658_v3  ;;  %vm614_vm13 = vcmp.lt.s32.totalorder %v2994_v31, 15 }
  0x1b   : > { %v625_v50 = vsel %vm609_vm12, 1, %v5658_v3  ;;  %vm613_vm14 = vcmp.lt.s32.totalorder %v2999_v32, 15  ;;  %vm612_vm15 = vcmp.lt.s32.totalorder %v2964_v22, 15  ;;  %v630_v52 = vsel %vm614_vm13, 1, %v5658_v3 }
  0x1c   : > { %v629_v53 = vsel %vm613_vm14, 1, %v5658_v3  ;;  %v628_v54 = vsel %vm612_vm15, 1, %v5658_v3  ;;  %vm765_vm0 = vcmp.ge.s32.totalorder %v2893_v2, 2  ;;  %vm616_vm1 = vcmp.lt.s32.totalorder %v3010_v36, 15 }
  0x1d   : > { %vm615_vm2 = vcmp.lt.s32.totalorder %v2989_v30, 15  ;;  %v783_v55 = vsel %vm765_vm0, 1, %v5658_v3  ;;  %v632_v56 = vsel %vm616_vm1, 1, %v5658_v3  ;;  %vm768_vm3 = vcmp.ge.s32.totalorder %v2915_v9, 2 }
  0x1e   : > { %495 = vperm.xlu2 %2812, %v462_v19   ;;  %492 = vperm.xlu1 %2811, %v461_v20   ;;  %v631_v57 = vsel %vm615_vm2, 1, %v5658_v3  ;;  %vm767_vm4 = vcmp.ge.s32.totalorder %v2888_v1, 2  ;;  %vm766_vm6 = vcmp.ge.s32.totalorder %v2922_v10, 2  ;;  %v786_v59 = vsel %vm768_vm3, 1, %v5658_v3 }
  0x1f   : > { %489 = vperm.xlu0 %2810, %v460_v21   ;;  %v785_v60 = vsel %vm767_vm4, 1, %v5658_v3  ;;  %v784_v61 = vsel %vm766_vm6, 1, %v5658_v3  ;;  %vm771_vm7 = vcmp.ge.s32.totalorder %v2953_v18, 2  ;;  %vm770_vm8 = vcmp.ge.s32.totalorder %v2910_v8, 2 }
  0x20   : > { %vm769_vm9 = vcmp.ge.s32.totalorder %v2883_v0, 2  ;;  %v789_v63 = vsel %vm771_vm7, 1, %v5658_v3  ;;  %v788_v4 = vsel %vm770_vm8, 1, %v5658_v3  ;;  %vm774_vm10 = vcmp.ge.s32.totalorder %v2974_v24, 2 }
  0x21   : > { %v787_v5 = vsel %vm769_vm9, 1, %v5658_v3  ;;  %vm773_vm11 = vcmp.ge.s32.totalorder %v2943_v16, 2  ;;  %vm772_vm12 = vcmp.ge.s32.totalorder %v2948_v17, 2  ;;  %v792_v7 = vsel %vm774_vm10, 1, %v5658_v3 }
  0x22   : > { %2705 = vmatmul.msk.bf16.gmra.mxu0 %vm5696_vm5, %v2783_v25  ;;  %v791_v11 = vsel %vm773_vm11, 1, %v5658_v3  ;;  %v790_v12 = vsel %vm772_vm12, 1, %v5658_v3  ;;  %vm777_vm13 = vcmp.ge.s32.totalorder %v2999_v32, 2  ;;  %vm776_vm14 = vcmp.ge.s32.totalorder %v2964_v22, 2 }
  0x23   : > { %2711 = vmatmul.msk.bf16.gmra.mxu3 %vm5696_vm5, %v2789_v26  ;;  %vm775_vm15 = vcmp.ge.s32.totalorder %v2969_v23, 2  ;;  %v795_v14 = vsel %vm777_vm13, 1, %v5658_v3  ;;  %v794_v15 = vsel %vm776_vm14, 1, %v5658_v3  ;;  %vm780_vm0 = vcmp.ge.s32.totalorder %v3010_v36, 2 }
  0x24   : > { %v793_v19 = vsel %vm775_vm15, 1, %v5658_v3  ;;  %vm779_vm1 = vcmp.ge.s32.totalorder %v2989_v30, 2  ;;  %vm778_vm2 = vcmp.ge.s32.totalorder %v2994_v31, 2  ;;  %v798_v26 = vsel %vm780_vm0, 1, %v5658_v3 }
  0x25   : > { %vm930_vm3 = vcmp.lt.s32.totalorder %v2888_v1, 14  ;;  %vm929_vm4 = vcmp.lt.s32.totalorder %v2922_v10, 14  ;;  %vm928_vm6 = vcmp.lt.s32.totalorder %v2893_v2, 14  ;;  %vm933_vm7 = vcmp.lt.s32.totalorder %v2910_v8, 14 }
  0x26   : > { %504 = vperm.xlu2 %2812, %v465_v27   ;;  %501 = vperm.xlu1 %2811, %v464_v28   ;;  %v797_v27 = vsel %vm779_vm1, 1, %v5658_v3  ;;  %v796_v28 = vsel %vm778_vm2, 1, %v5658_v3  ;;  %vm932_vm8 = vcmp.lt.s32.totalorder %v2883_v0, 14  ;;  %vm931_vm9 = vcmp.lt.s32.totalorder %v2915_v9, 14 }
  0x27   : > { %498 = vperm.xlu0 %2810, %v463_v29   ;;  %vm936_vm10 = vcmp.lt.s32.totalorder %v2943_v16, 14  ;;  %vm935_vm11 = vcmp.lt.s32.totalorder %v2948_v17, 14  ;;  %vm934_vm12 = vcmp.lt.s32.totalorder %v2953_v18, 14  ;;  %vm939_vm13 = vcmp.lt.s32.totalorder %v2964_v22, 14 }
  0x28   : > { %vm938_vm14 = vcmp.lt.s32.totalorder %v2969_v23, 14  ;;  %vm937_vm15 = vcmp.lt.s32.totalorder %v2974_v24, 14  ;;  %vm1105_vm0 = vcmp.ge.s32.totalorder %v2994_v31, 3  ;;  %vm1104_vm1 = vcmp.ge.s32.totalorder %v2999_v32, 3 }
  0x29   : > { %vm940_vm2 = vcmp.lt.s32.totalorder %v2999_v32, 14 }
  0x2e   : > { %513 = vperm.xlu2 %2812, %v468_v33   ;;  %510 = vperm.xlu1 %2811, %v467_v34  }
  0x2f   : > { %507 = vperm.xlu0 %2810, %v466_v35   ;;  %v946_v35 = vsel %vm930_vm3, 1, %v5658_v3  ;;  %vm1106_vm3 = vcmp.ge.s32.totalorder %v2989_v30, 3 }
  0x32   : > { %2706 = vmatmul.msk.bf16.gmra.mxu0 %vm5696_vm5, %v2784_v37  ;;  %v945_v37 = vsel %vm929_vm4, 1, %v5658_v3  ;;  %vm1432_vm4 = vcmp.ge.s32.totalorder %v2994_v31, 4 }
  0x36   : > { %637 = vperm.xlu2 %2812, %v618_v38   ;;  %634 = vperm.xlu1 %2811, %v617_v39   ;;  %v944_v38 = vsel %vm928_vm6, 1, %v5658_v3  ;;  %vm1431_vm6 = vcmp.ge.s32.totalorder %v2999_v32, 4 }
  0x37   : > { %516 = vperm.xlu0 %2810, %v469_v40  }
  0x3e   : > { %646 = vperm.xlu2 %2812, %v621_v41   ;;  %643 = vperm.xlu1 %2811, %v620_v42  }
  0x3f   : > { %640 = vperm.xlu0 %2810, %v619_v43   ;;  %v949_v43 = vsel %vm933_vm7, 1, %v5658_v3  ;;  %vm1434_vm7 = vcmp.ge.s32.totalorder %v3010_v36, 4 }
  0x42   : > { %2707 = vmatmul.msk.bf16.gmra.mxu0 %vm5696_vm5, %v2785_v44  ;;  %v948_v44 = vsel %vm932_vm8, 1, %v5658_v3  ;;  %vm1433_vm8 = vcmp.ge.s32.totalorder %v2989_v30, 4  ;;  %v2792_v30 = vld [vmem:[%s5644_s3 + $0x8] sm:$0xff] }
  0x43   : > { %1768 = vmatpush.bf16.msra.mxu1 %v2792_v30  ;;  %2796 = vmatpush.bf16.msrb.mxu3 %v2792_v30 }
  0x46   : > { %655 = vperm.xlu2 %2812, %v624_v45   ;;  %652 = vperm.xlu1 %2811, %v623_v46   ;;  %v947_v45 = vsel %vm931_vm9, 1, %v5658_v3  ;;  %vm1107_vm9 = vcmp.ge.s32.totalorder %v3010_v36, 3 }
  0x47   : > { %649 = vperm.xlu0 %2810, %v622_v47  }
  0x4e   : > { %664 = vperm.xlu2 %2812, %v627_v48   ;;  %661 = vperm.xlu1 %2811, %v626_v49  }
  0x4f   : > { %658 = vperm.xlu0 %2810, %v625_v50   ;;  %v952_v50 = vsel %vm936_vm10, 1, %v5658_v3  ;;  %vm1419_vm10 = vcmp.ge.s32.totalorder %v2893_v2, 4 }
  0x52   : > { %2708 = vmatmul.msk.bf16.gmra.mxu0 %vm5696_vm5, %v2786_v51  ;;  %v951_v51 = vsel %vm935_vm11, 1, %v5658_v3  ;;  %vm1093_vm11 = vcmp.ge.s32.totalorder %v2922_v10, 3 }
  0x56   : > { %673 = vperm.xlu2 %2812, %v630_v52   ;;  %670 = vperm.xlu1 %2811, %v629_v53   ;;  %v950_v52 = vsel %vm934_vm12, 1, %v5658_v3  ;;  %vm1092_vm12 = vcmp.ge.s32.totalorder %v2893_v2, 3 }
  0x57   : > { %667 = vperm.xlu0 %2810, %v628_v54  }
  0x5e   : > { %800 = vperm.xlu2 %2812, %v783_v55   ;;  %679 = vperm.xlu1 %2811, %v632_v56  }
  0x5f   : > { %676 = vperm.xlu0 %2810, %v631_v57   ;;  %v955_v57 = vsel %vm939_vm13, 1, %v5658_v3  ;;  %vm1256_vm13 = vcmp.lt.s32.totalorder %v2922_v10, 13 }
  0x62   : > { %2709 = vmatmul.msk.bf16.gmra.mxu0 %vm5696_vm5, %v2787_v58  ;;  %v954_v58 = vsel %vm938_vm14, 1, %v5658_v3  ;;  %vm1255_vm14 = vcmp.lt.s32.totalorder %v2893_v2, 13 }
  0x66   : > { %809 = vperm.xlu2 %2812, %v786_v59   ;;  %806 = vperm.xlu1 %2811, %v785_v60   ;;  %v953_v59 = vsel %vm937_vm15, 1, %v5658_v3  ;;  %vm1420_vm15 = vcmp.ge.s32.totalorder %v2922_v10, 4 }
  0x67   : > { %803 = vperm.xlu0 %2810, %v784_v61  }
  0x68   : > { %v3062_v62 = vpop.permute.xlu2 %483 }
  0x6e   : > { %818 = vperm.xlu2 %2812, %v789_v63   ;;  %815 = vperm.xlu1 %2811, %v788_v4   ;;  %v1123_v63 = vsel %vm1105_vm0, 1, %v5658_v3  ;;  %v1122_v4 = vsel %vm1104_vm1, 1, %v5658_v3  ;;  %vm1094_vm0 = vcmp.ge.s32.totalorder %v2888_v1, 3  ;;  %vm1583_vm1 = vcmp.lt.s32.totalorder %v2922_v10, 12 }
  0x6f   : > { %812 = vperm.xlu0 %2810, %v787_v5   ;;  %v956_v5 = vsel %vm940_vm2, 1, %v5658_v3  ;;  %vm1582_vm2 = vcmp.lt.s32.totalorder %v2893_v2, 12 }
  0x70   : > { %v3070_v6 = vpop.permute.xlu2 %486 }
  0x76   : > { %827 = vperm.xlu2 %2812, %v792_v7   ;;  %824 = vperm.xlu1 %2811, %v791_v11  }
  0x77   : > { %821 = vperm.xlu0 %2810, %v790_v12  }
  0x78   : > { %v3078_v13 = vpop.permute.xlu2 %495 }
  0x79   : > { %5756 = vst [vmem:[#allocation2_spill] sm:$0xff] %v3078_v13 }
  0x7e   : > { %836 = vperm.xlu2 %2812, %v795_v14   ;;  %833 = vperm.xlu1 %2811, %v794_v15   ;;  %v1124_v15 = vsel %vm1106_vm3, 1, %v5658_v3  ;;  %vm1422_vm3 = vcmp.ge.s32.totalorder %v2915_v9, 4 }
  0x7f   : > { %830 = vperm.xlu0 %2810, %v793_v19   ;;  %v1450_v19 = vsel %vm1432_vm4, 1, %v5658_v3  ;;  %vm1421_vm4 = vcmp.ge.s32.totalorder %v2888_v1, 4 }
  0x80   : > { %v3086_v20 = vpop.permute.xlu2 %504  ;;  %v3088_v21 = vpop.permute.xlu1 %477 }
  0x81   : > { %5757 = vst [vmem:[#allocation3_spill] sm:$0xff] %v3086_v20  ;;  %v3092_v25 = vpop.permute.xlu0 %471 }
  0x86   : > { %845 = vperm.xlu2 %2812, %v798_v26   ;;  %842 = vperm.xlu1 %2811, %v797_v27   ;;  %v1449_v26 = vsel %vm1431_vm6, 1, %v5658_v3  ;;  %v3181_v27 = vld [vmem:[%s5646_s5] ss:$0 sm:$0xff]  ;;  %vm1095_vm6 = vcmp.ge.s32.totalorder %v2915_v9, 3 }
  0x87   : > { %839 = vperm.xlu0 %2810, %v796_v28  }
  0x88   : > { %v3098_v29 = vpop.permute.xlu2 %513  ;;  %v3100_v33 = vpop.permute.xlu1 %480 }
  0x89   : > { %5758 = vst [vmem:[#allocation4_spill] sm:$0xff] %v3098_v29  ;;  %v3104_v34 = vpop.permute.xlu0 %474 }
  0x8a   : > { %5759 = vst [vmem:[#allocation5_spill] sm:$0xff] %v3104_v34 }
  0x8e   : > { %967 = vperm.xlu2 %2812, %v946_v35   ;;  %964 = vperm.xlu1 %2811, %v945_v37  }
  0x8f   : > { %961 = vperm.xlu0 %2810, %v944_v38   ;;  %v3118_v42 = vpop.f32.mrf.mxu0 }
  0x90   : > { %v3110_v39 = vpop.permute.xlu1 %492  ;;  %v3112_v40 = vpop.permute.xlu2 %637  ;;  %v376_v37 = vadd.f32 %v3181_v27, %v3118_v42 }
  0x91   : > { %5760 = vst [vmem:[#allocation6_spill] sm:$0xff] %v3110_v39  ;;  %v3116_v41 = vpop.permute.xlu0 %489 }
  0x92   : > { %5761 = vst [vmem:[#allocation7_spill] sm:$0xff] %v3116_v41 }
  0x96   : > { %976 = vperm.xlu2 %2812, %v949_v43   ;;  %973 = vperm.xlu1 %2811, %v948_v44   ;;  %v1452_v43 = vsel %vm1434_vm7, 1, %v5658_v3  ;;  %v1451_v44 = vsel %vm1433_vm8, 1, %v5658_v3  ;;  %v405_v10 = vpop.f32.mrf.mxu3  ;;  %vm1584_vm7 = vcmp.lt.s32.totalorder %v2888_v1, 12  ;;  %vm1258_vm8 = vcmp.lt.s32.totalorder %v2915_v9, 13 }
  0x97   : > { %970 = vperm.xlu0 %2810, %v947_v45   ;;  %v377_v49 = vpop.f32.mrf.mxu0  ;;  %v1125_v45 = vsel %vm1107_vm9, 1, %v5658_v3  ;;  %vm1257_vm9 = vcmp.lt.s32.totalorder %v2888_v1, 13 }
  0x98   : > { %v3124_v46 = vpop.permute.xlu1 %501  ;;  %v3126_v47 = vpop.permute.xlu2 %646  ;;  %v378_v38 = vadd.f32 %v3181_v27, %v377_v49 }
  0x99   : > { %5762 = vst [vmem:[#allocation8_spill] sm:$0xff] %v3124_v46  ;;  %v3130_v48 = vpop.permute.xlu0 %498 }
  0x9a   : > { %5763 = vst [vmem:[#allocation9_spill] sm:$0xff] %v3126_v47 }
  0x9b   : > { %5764 = vst [vmem:[#allocation10_spill] sm:$0xff] %v3130_v48 }
  0x9e   : > { %985 = vperm.xlu2 %2812, %v952_v50   ;;  %982 = vperm.xlu1 %2811, %v951_v51   ;;  %v3203_v50 = vmax.f32 %v376_v37, 0.0  ;;  %v3205_v51 = vmax.f32 %v378_v38, 0.0  ;;  %v1272_v38 = vsel %vm1256_vm13, 1, %v5658_v3 }
  0x9f   : > { %979 = vperm.xlu0 %2810, %v950_v52   ;;  %v3144_v56 = vpop.f32.mrf.mxu0 }
  0xa0   : > { %v3136_v53 = vpop.permute.xlu1 %510  ;;  %v3138_v54 = vpop.permute.xlu2 %655  ;;  %v3215_v49 = vpack.c.bf16 %v3205_v51, %v3203_v50 }
  0xa1   : > { %5765 = vst [vmem:[#allocation11_spill] sm:$0xff] %v3136_v53  ;;  %v3142_v55 = vpop.permute.xlu0 %507 }
  0xa2   : > { %5766 = vst [vmem:[#allocation12_spill] sm:$0xff] %v3138_v54  ;;  %2718 = vmatmul.msk.bf16.vlgmr.msra.gmra.mxu1 %vm5696_vm5, %v3215_v49  ;;  %v5788_v54 = vmov 0  }
  0xa3   : > { %5767 = vst [vmem:[#allocation13_spill] sm:$0xff] %v3142_v55 }
  0xa4   : > { %5774 = vst [vmem:[#allocation20_spill] sm:$0xff] %v3215_v49 }
  0xa6   : > { %994 = vperm.xlu2 %2812, %v955_v57   ;;  %991 = vperm.xlu1 %2811, %v954_v58   ;;  %v1437_v58 = vsel %vm1419_vm10, 1, %v5658_v3  ;;  %vm1097_vm10 = vcmp.ge.s32.totalorder %v2910_v8, 3 }
  0xa7   : > { %988 = vperm.xlu0 %2810, %v953_v59   ;;  %v3158_v61 = vpop.f32.mrf.mxu0  ;;  %v1111_v59 = vsel %vm1093_vm11, 1, %v5658_v3  ;;  %vm1096_vm11 = vcmp.ge.s32.totalorder %v2883_v0, 3 }
  0xa8   : > { %v3150_v60 = vpop.permute.xlu2 %664  ;;  %v3152_v22 = vpop.permute.xlu1 %634  ;;  %v383_v37 = vadd.f32 %v3181_v27, %v3158_v61 }
  0xa9   : > { %5768 = vst [vmem:[#allocation14_spill] sm:$0xff] %v3150_v60  ;;  %v3156_v23 = vpop.permute.xlu0 %516 }
  0xaa   : > { %5769 = vst [vmem:[#allocation15_spill] sm:$0xff] %v3156_v23  ;;  %v3247_v30 = vmax.f32 %v383_v37, 0.0  ;;  %v1599_v37 = vsel %vm1583_vm1, 1, %v5658_v3 }
  0xae   : > { %1166 = vperm.xlu2 %2812, %v1123_v63   ;;  %1163 = vperm.xlu1 %2811, %v1122_v4   ;;  %v1110_v63 = vsel %vm1092_vm12, 1, %v5658_v3  ;;  %vm1585_vm12 = vcmp.lt.s32.totalorder %v2915_v9, 12 }
  0xaf   : > { %997 = vperm.xlu0 %2810, %v956_v5   ;;  %v3172_v14 = vpop.f32.mrf.mxu0 }
  0xb0   : > { %v3164_v7 = vpop.permute.xlu2 %673  ;;  %v3166_v11 = vpop.permute.xlu1 %643 }
  0xb1   : > { %5770 = vst [vmem:[#allocation16_spill] sm:$0xff] %v3164_v7  ;;  %v3170_v12 = vpop.permute.xlu0 %640 }
  0xb6   : > { %1169 = vperm.xlu2 %2812, %v1124_v15   ;;  %1493 = vperm.xlu1 %2811, %v1450_v19  }
  0xb7   : > { %1490 = vperm.xlu0 %2810, %v1449_v26   ;;  %v3191_v35 = vpop.f32.mrf.mxu0  ;;  %v381_v26 = vadd.f32 %v3181_v27, %v3144_v56 }
  0xb8   : > { %v3183_v31 = vpop.permute.xlu2 %800  ;;  %v3185_v28 = vpop.permute.xlu1 %652 }
  0xb9   : > { %5771 = vst [vmem:[#allocation17_spill] sm:$0xff] %v3185_v28  ;;  %v3189_v32 = vpop.permute.xlu0 %649 }
  0xba   : > { %5772 = vst [vmem:[#allocation18_spill] sm:$0xff] %v3189_v32 }
  0xbe   : > { %1499 = vperm.xlu2 %2812, %v1452_v43   ;;  %1496 = vperm.xlu1 %2811, %v1451_v44   ;;  %v1271_v43 = vsel %vm1255_vm14, 1, %v5658_v3  ;;  %v1438_v44 = vsel %vm1420_vm15, 1, %v5658_v3  ;;  %vm5695_vm14 = vcmp.eq.s32.totalorder %v3086_v20, 1 }
  0xbf   : > { %1172 = vperm.xlu0 %2810, %v1125_v45   ;;  %v3219_v57 = vpop.f32.mrf.mxu0  ;;  %v3245_v45 = vmax.f32 %v381_v26, 0.0  ;;  %v1112_v26 = vsel %vm1094_vm0, 1, %v5658_v3 }
  0xc0   : > { %v3207_v36 = vpop.permute.xlu2 %809  ;;  %v3209_v42 = vpop.permute.xlu1 %661 }
  0xc1   : > { %5773 = vst [vmem:[#allocation19_spill] sm:$0xff] %v3209_v42  ;;  %v3217_v52 = vpop.permute.xlu0 %658  ;;  %v3257_v56 = vpack.c.bf16 %v3247_v30, %v3245_v45 }
  0xc2   : > { %5775 = vst [vmem:[#allocation21_spill] sm:$0xff] %v3217_v52  ;;  %v1273_v52 = vsel %vm1257_vm9, 1, %v5658_v3 }
  0xc3   : > { %5781 = vst [vmem:[#allocation27_spill] sm:$0xff] %v3257_v56  ;;  %2719 = vmatmul.msk.bf16.gmra.mxu1 %vm5696_vm5, %v3257_v56 }
  0xc6   : > { %1454 = vperm.xlu2 %2812, %v1437_v58   ;;  %1130 = vperm.xlu1 %2811, %v1111_v59  }
  0xc7   : > { %1127 = vperm.xlu0 %2810, %v1110_v63   ;;  %v3235_v19 = vpop.f32.mrf.mxu0 }
  0xc8   : > { %v3227_v4 = vpop.permute.xlu2 %818  ;;  %v3229_v5 = vpop.permute.xlu1 %670 }
  0xc9   : > { %5776 = vst [vmem:[#allocation22_spill] sm:$0xff] %v3227_v4  ;;  %v3233_v15 = vpop.permute.xlu0 %667 }
  0xca   : > { %5777 = vst [vmem:[#allocation23_spill] sm:$0xff] %v3229_v5  ;;  %v1113_v5 = vsel %vm1095_vm6, 1, %v5658_v3  ;;  %vm1424_vm6 = vcmp.ge.s32.totalorder %v2910_v8, 4 }
  0xcb   : > { %5778 = vst [vmem:[#allocation24_spill] sm:$0xff] %v3233_v15 }
  0xce   : > { %1291 = vperm.xlu2 %2812, %v1272_v38   ;;  %1288 = vperm.xlu1 %2811, %v1271_v43   ;;  %v1598_v38 = vsel %vm1582_vm2, 1, %v5658_v3 }
  0xcf   : > { %1457 = vperm.xlu0 %2810, %v1438_v44   ;;  %v3261_v63 = vpop.f32.mrf.mxu0 }
  0xd0   : > { %v3249_v58 = vpop.permute.xlu2 %827  ;;  %v3251_v59 = vpop.permute.xlu1 %679 }
  0xd1   : > { %5779 = vst [vmem:[#allocation25_spill] sm:$0xff] %v3249_v58  ;;  %v3259_v61 = vpop.permute.xlu0 %676 }
  0xd2   : > { %5780 = vst [vmem:[#allocation26_spill] sm:$0xff] %v3251_v59  ;;  %v1440_v59 = vsel %vm1422_vm3, 1, %v5658_v3 }
  0xd3   : > { %5782 = vst [vmem:[#allocation28_spill] sm:$0xff] %v3259_v61 }
  0xd6   : > { %1133 = vperm.xlu2 %2812, %v1112_v26   ;;  %1618 = vperm.xlu1 %2811, %v1599_v37   ;;  %v1439_v26 = vsel %vm1421_vm4, 1, %v5658_v3  ;;  %v386_v37 = vadd.f32 %v3181_v27, %v3172_v14  ;;  %vm1259_vm4 = vcmp.lt.s32.totalorder %v2883_v0, 13 }
  0xd7   : > { %1615 = vperm.xlu0 %2810, %v1598_v38   ;;  %v3277_v61 = vpop.f32.mrf.mxu0  ;;  %v388_v38 = vadd.f32 %v3181_v27, %v3191_v35 }
  0xd8   : > { %v3269_v43 = vpop.permute.xlu2 %836  ;;  %v3271_v44 = vpop.permute.xlu1 %806  ;;  %v3287_v7 = vmax.f32 %v386_v37, 0.0  ;;  %v1600_v37 = vsel %vm1584_vm7, 1, %v5658_v3 }
  0xd9   : > { %v3275_v2 = vpop.permute.xlu0 %803  ;;  %v3289_v15 = vmax.f32 %v388_v38, 0.0  ;;  %v1274_v38 = vsel %vm1258_vm8, 1, %v5658_v3  ;;  %v406_v3 = vadd.f32 %v3181_v27, %v405_v10  ;;  %v1115_v10 = vsel %vm1097_vm10, 1, %v5788_v54 }
  0xda   : > { %vm1423_vm8 = vcmp.ge.s32.totalorder %v2883_v0, 4 }
  0xde   : > { %1463 = vperm.xlu2 %2812, %v1440_v59   ;;  %1460 = vperm.xlu1 %2811, %v1439_v26   ;;  %v407_v59 = vpop.f32.mrf.mxu3  ;;  %v431_v26 = vlaneseq }
  0xdf   : > { %1136 = vperm.xlu0 %2810, %v1113_v5   ;;  %v400_v35 = vpop.f32.mrf.mxu0  ;;  %v3302_v5 = vpack.c.bf16 %v3289_v15, %v3287_v7  ;;  %v408_v13 = vadd.f32 %v3181_v27, %v407_v59  ;;  %v1114_v59 = vsel %vm1096_vm11, 1, %v5788_v54  ;;  %vm1587_vm11 = vcmp.lt.s32.totalorder %v2910_v8, 12 }
  0xe0   : > { %v3291_v60 = vpop.permute.xlu2 %845  ;;  %v3293_v46 = vpop.permute.xlu1 %815  ;;  %v401_v42 = vadd.f32 %v3181_v27, %v400_v35  ;;  %v3310_v1 = vand.u32 127, %v431_v26  ;;  %v3320_v28 = vshrl.u32 %v431_v26, 7 }
  0xe1   : > { %v3297_v14 = vpop.permute.xlu0 %812  ;;  %5784 = vst [vmem:[#allocation30_spill] sm:$0xff] %v3302_v5  ;;  %2720 = vmatmul.msk.bf16.gmra.mxu1 %vm5696_vm5, %v3302_v5  ;;  %v393_v5 = vadd.f32 %v3181_v27, %v3235_v19 }
  0xe2   : > { %5783 = vst [vmem:[#allocation29_spill] sm:$0xff] %v3297_v14  ;;  %vm5697_vm13 = vcmp.lt.s32.totalorder %v3310_v1, 4  ;;  %vm5704_vm15 = vcmp.lt.s32.totalorder %v3320_v28, 1  ;;  %vm762_vm0 = vcmp.ge.s32.totalorder %v3310_v1, 4  ;;  %vm763_vm1 = vcmp.lt.s32.totalorder %v3310_v1, 8 }
  0xe3   : > { %vm5699_vm2 = vcmp.lt.s32.totalorder %v3320_v28, 2  ;;  %vm3361_vm3 = vmand %vm5697_vm13, %vm5695_vm14  ;;  %vm1416_vm14 = vcmp.ge.s32.totalorder %v3310_v1, 12 }
  0xe4   : > { %vm3394_vm9 = vmand %vm762_vm0, %vm763_vm1  ;;  %vm1260_vm0 = vcmp.lt.s32.totalorder %v2910_v8, 13  ;;  %vm1425_vm1 = vcmp.ge.s32.totalorder %v2953_v18, 4 }
  0xe6   : > { %1621 = vperm.xlu2 %2812, %v1600_v37   ;;  %1297 = vperm.xlu1 %2811, %v1274_v38   ;;  %v410_v26 = vpop.f32.mrf.mxu3 }
  0xe7   : > { %1294 = vperm.xlu0 %2810, %v1273_v52   ;;  %v402_v37 = vpop.f32.mrf.mxu0  ;;  %v3325_v52 = vmax.f32 %v401_v42, 0.0  ;;  %v1601_v42 = vsel %vm1585_vm12, 1, %v5788_v54  ;;  %vm1586_vm12 = vcmp.lt.s32.totalorder %v2883_v0, 12  ;;  %v396_v0 = vadd.f32 %v3181_v27, %v3261_v63 }
  0xe8   : > { %v3312_v58 = vpop.permute.xlu2 %967  ;;  %v3314_v48 = vpop.permute.xlu1 %824  ;;  %v403_v38 = vadd.f32 %v3181_v27, %v402_v37  ;;  %v3339_v37 = vmax.f32 %v406_v3, 0.0  ;;  %v1443_v63 = vsel %vm1425_vm1, 1, %v5788_v54  ;;  %vm1427_vm1 = vcmp.ge.s32.totalorder %v2943_v16, 4 }
  0xe9   : > { %5785 = vst [vmem:[#allocation31_spill] sm:$0xff] %v3314_v48  ;;  %v3322_v35 = vpop.permute.xlu0 %821  ;;  %v391_v48 = vadd.f32 %v3181_v27, %v3219_v57  ;;  %v5669_v4 = vrot.slane %v3325_v52, 7  ;;  %v5798_v20 = vrot.slane %v3325_v52, 6 }
  0xea   : > { %5786 = vst [vmem:[#allocation32_spill] sm:$0xff] %v3322_v35  ;;  %v3336_v9 = vmax.f32 %v403_v38, 0.0  ;;  %v3341_v35 = vmax.f32 %v408_v13, 0.0 }
  0xeb   : > { %5787 = vst [vmem:[#allocation33_spill] sm:$0xff] %v3325_v52  ;;  %v3351_v3 = vmax.f32 %v391_v48, 0.0 }
  0xec   : > { %5789 = vst [vmem:[#allocation34_spill] sm:$0xff] %v3336_v9  ;;  %v5670_v19 = vrot.slane %v3336_v9, 7  ;;  %v3355_v13 = vpack.c.bf16 %v3341_v35, %v3339_v37  ;;  %v5822_v56 = vrot.slane %v3341_v35, 7  ;;  %v5823_v32 = vrot.slane %v3341_v35, 6 }
  0xed   : > { %5790 = vst [vmem:[#allocation35_spill] sm:$0xff] %v3339_v37 }
  0xee   : > { %1142 = vperm.xlu2 %2812, %v1115_v10   ;;  %1139 = vperm.xlu1 %2811, %v1114_v59   ;;  %5791 = vst [vmem:[#allocation36_spill] sm:$0xff] %v3351_v3  ;;  %v3365_v59 = vmax.f32 %v393_v5, 0.0  ;;  %v573_v48 = vsel %vm5704_vm15, %v5669_v4, %v5670_v19  ;;  %v5797_v5 = vrot.slane %v3336_v9, 6  ;;  %v1442_v10 = vsel %vm1424_vm6, 1, %v5788_v54  ;;  %v412_v19 = vpop.f32.mrf.mxu3 }
  0xef   : > { %1624 = vperm.xlu0 %2810, %v1601_v42   ;;  %5792 = vst [vmem:[#allocation37_spill] sm:$0xff] %v3355_v13  ;;  %v596_v42 = vsel %vm3361_vm3, %v573_v48, 0.0  ;;  %2724 = vmatmul.msk.bf16.vlgmr.msrb.gmra.mxu3 %vm5696_vm5, %v3355_v13  ;;  %v1441_v4 = vsel %vm1423_vm8, 1, %v5788_v54  ;;  %vm1099_vm3 = vcmp.ge.s32.totalorder %v2948_v17, 3  ;;  %vm1262_vm6 = vcmp.lt.s32.totalorder %v2948_v17, 13 }
  0xf0   : > { %5795 = vst [vmem:[#allocation38_spill] sm:$0xff] %v3365_v59  ;;  %v3367_v57 = vpop.permute.xlu2 %976  ;;  %v834_v38 = vpop.permute.xlu1 %833  ;;  %v900_v39 = vsel %vm5699_vm2, %v5798_v20, %v5797_v5  ;;  %v1275_v20 = vsel %vm1259_vm4, 1, %v5788_v54  ;;  %v3404_v48 = vpack.c.bf16 %v3365_v59, %v3351_v3  ;;  %vm1098_vm4 = vcmp.ge.s32.totalorder %v2953_v18, 3  ;;  %v2819_v3 = vld [vmem:[%s5642_s1 + $0x48] sm:$0xff] }
  0xf1   : > { %5796 = vst [vmem:[#allocation39_spill] sm:$0xff] %v3367_v57  ;;  %vm858_vm7 = vcmp.eq.s32.totalorder %v834_v38, 1  ;;  %v3385_v41 = vpop.permute.xlu0 %830  ;;  %vm1426_vm8 = vcmp.ge.s32.totalorder %v2948_v17, 4 }
  0xf2   : > { %5799 = vst [vmem:[#allocation40_spill] sm:$0xff] %v3385_v41  ;;  %vm874_vm10 = vmand %vm3394_vm9, %vm858_vm7  ;;  %2721 = vmatmul.msk.bf16.gmra.mxu1 %vm5696_vm5, %v3404_v48  ;;  %vm1261_vm7 = vcmp.lt.s32.totalorder %v2953_v18, 13 }
  0xf3   : > { %5802 = vst [vmem:[#allocation41_spill] sm:$0xff] %v3404_v48  ;;  %v3406_v5 = vsel %vm874_vm10, %v900_v39, %v596_v42  ;;  %v411_v39 = vadd.f32 %v3181_v27, %v410_v26  ;;  %v413_v42 = vadd.f32 %v3181_v27, %v412_v19  ;;  %v398_v26 = vadd.f32 %v3181_v27, %v3277_v61 }
  0xf4   : > { %5803 = vst [vmem:[#allocation42_spill] sm:$0xff] %v3406_v5  ;;  %v3448_v27 = vmax.f32 %v396_v0, 0.0  ;;  %vm1100_vm10 = vcmp.ge.s32.totalorder %v2943_v16, 3 }
  0xf5   : > { %v3427_v48 = vmax.f32 %v413_v42, 0.0  ;;  %v3450_v61 = vmax.f32 %v398_v26, 0.0  ;;  %v1117_v42 = vsel %vm1099_vm3, 1, %v5788_v54  ;;  %vm1101_vm3 = vcmp.ge.s32.totalorder %v2974_v24, 3 }
  0xf6   : > { %1300 = vperm.xlu2 %2812, %v1275_v20   ;;  %1469 = vperm.xlu1 %2811, %v1442_v10   ;;  %v1603_v20 = vsel %vm1587_vm11, 1, %v5788_v54  ;;  %v1276_v10 = vsel %vm1260_vm0, 1, %v5788_v54  ;;  %5807 = vst [vmem:[#allocation46_spill] sm:$0xff] %v3448_v27  ;;  %vm1589_vm11 = vcmp.lt.s32.totalorder %v2948_v17, 12  ;;  %vm1428_vm0 = vcmp.ge.s32.totalorder %v2974_v24, 4 }
  0xf7   : > { %1466 = vperm.xlu0 %2810, %v1441_v4   ;;  %v1602_v4 = vsel %vm1586_vm12, 1, %v5788_v54  ;;  %5808 = vst [vmem:[#allocation47_spill] sm:$0xff] %v3450_v61  ;;  %vm1588_vm12 = vcmp.lt.s32.totalorder %v2953_v18, 12 }
  0xf8   : > { %v3411_v41 = vpop.permute.xlu2 %985  ;;  %v3413_v13 = vpop.permute.xlu1 %842 }
  0xf9   : > { %5804 = vst [vmem:[#allocation43_spill] sm:$0xff] %v3411_v41  ;;  %v3419_v5 = vpop.permute.xlu0 %839  ;;  %v3425_v41 = vmax.f32 %v411_v39, 0.0 }
  0xfb   : > { %v3435_v8 = vpack.c.bf16 %v3427_v48, %v3425_v41 }
  0xfd   : > { %5805 = vst [vmem:[#allocation44_spill] sm:$0xff] %v3435_v8 }
  0xfe   : > { %1630 = vperm.xlu2 %2812, %v1603_v20   ;;  %1627 = vperm.xlu1 %2811, %v1602_v4   ;;  %v1116_v20 = vsel %vm1098_vm4, 1, %v5788_v54  ;;  %v3457_v4 = vpack.c.bf16 %v3450_v61, %v3448_v27  ;;  %v1605_v27 = vsel %vm1589_vm11, 1, %v5788_v54  ;;  %vm5686_vm4 = vcmp.eq.s32.totalorder %v3136_v53, 1 }
  0xff   : > { %1303 = vperm.xlu0 %2810, %v1276_v10   ;;  %2725 = vmatmul.msk.bf16.gmra.mxu3 %vm5696_vm5, %v3435_v8  ;;  %v2791_v10 = vld [vmem:[%s5644_s3] sm:$0xff]  ;;  %vm1089_vm11 = vcmp.ge.s32.totalorder %v3310_v1, 8 }
 0x100   : > { %v3437_v19 = vpop.permute.xlu2 %994  ;;  %v3439_v59 = vpop.permute.xlu1 %964  ;;  %5809 = vst [vmem:[#allocation48_spill] sm:$0xff] %v3457_v4  ;;  %2797 = vmatpush.bf16.msra.mxu3 %v2791_v10  ;;  %1847 = vmatpush.bf16.msra.mxu2 %v2791_v10  ;;  %v1118_v10 = vsel %vm1100_vm10, 1, %v5788_v54  ;;  %vm1263_vm10 = vcmp.lt.s32.totalorder %v2943_v16, 13 }
 0x101   : > { %5806 = vst [vmem:[#allocation45_spill] sm:$0xff] %v3437_v19  ;;  %v3443_v39 = vpop.permute.xlu0 %961 }
 0x102   : > { %2722 = vmatmul.msk.bf16.gmra.mxu1 %vm5696_vm5, %v3457_v4 }
 0x106   : > { %1472 = vperm.xlu2 %2812, %v1443_v63   ;;  %1148 = vperm.xlu1 %2811, %v1117_v42   ;;  %v1278_v63 = vsel %vm1262_vm6, 1, %v5788_v54  ;;  %v1277_v42 = vsel %vm1261_vm7, 1, %v5788_v54  ;;  %vm1590_vm6 = vcmp.lt.s32.totalorder %v2943_v16, 12  ;;  %vm1264_vm7 = vcmp.lt.s32.totalorder %v2974_v24, 13 }
 0x107   : > { %1145 = vperm.xlu0 %2810, %v1116_v20   ;;  %v1444_v20 = vsel %vm1426_vm8, 1, %v5788_v54  ;;  %vm5694_vm8 = vcmp.eq.s32.totalorder %v3142_v55, 1  ;;  %v1218_v16 = vrot.slane %v3339_v37, 5 }
 0x108   : > { %v3464_v0 = vpop.permute.xlu2 %1166  ;;  %v3466_v26 = vpop.permute.xlu1 %973 }
 0x109   : > { %5810 = vst [vmem:[#allocation49_spill] sm:$0xff] %v3466_v26  ;;  %v3470_v19 = vpop.permute.xlu0 %970 }
 0x10e   : > { %1309 = vperm.xlu2 %2812, %v1278_v63   ;;  %1306 = vperm.xlu1 %2811, %v1277_v42   ;;  %v1604_v63 = vsel %vm1588_vm12, 1, %v5788_v54  ;;  %v3490_v42 = vpack.c.bf16 %v3336_v9, %v3325_v52  ;;  %v1446_v52 = vsel %vm1428_vm0, 1, %v5788_v54  ;;  %vm1090_vm12 = vcmp.lt.s32.totalorder %v3310_v1, 12  ;;  %vm3528_vm0 = vmand %vm5697_vm13, %vm5686_vm4 }
 0x10f   : > { %1475 = vperm.xlu0 %2810, %v1444_v20   ;;  %vm860_vm4 = vcmp.eq.s32.totalorder %v3419_v5, 1 }
 0x110   : > { %v3476_v8 = vpop.permute.xlu2 %1169  ;;  %v3478_v4 = vpop.permute.xlu1 %982  ;;  %5813 = vst [vmem:[#allocation52_spill] sm:$0xff] %v3490_v42 }
 0x111   : > { %5811 = vst [vmem:[#allocation50_spill] sm:$0xff] %v3478_v4  ;;  %v3482_v61 = vpop.permute.xlu0 %979  ;;  %v1279_v4 = vsel %vm1263_vm10, 1, %v5788_v54 }
 0x112   : > { %5812 = vst [vmem:[#allocation51_spill] sm:$0xff] %v3482_v61  ;;  %2723 = vmatmul.msk.bf16.gmra.mxu1 %vm5696_vm5, %v3490_v42  ;;  %v562_v42 = vrot.slane %v3339_v37, 7  ;;  %vm1417_vm5 = vcmp.lt.s32.totalorder %v3310_v1, 16 }
 0x114   : > { %v571_v55 = vsel %vm5704_vm15, %v562_v42, %v5822_v56  ;;  %v5839_v56 = vrot.slane %v3341_v35, 4 }
 0x116   : > { %1151 = vperm.xlu2 %2812, %v1118_v10   ;;  %1636 = vperm.xlu1 %2811, %v1605_v27   ;;  %v1445_v27 = vsel %vm1427_vm1, 1, %v5788_v54  ;;  %v1119_v10 = vsel %vm1101_vm3, 1, %v5788_v54  ;;  %vm859_vm1 = vcmp.eq.s32.totalorder %v3269_v43, 1  ;;  %vm3540_vm3 = vmand %vm5697_vm13, %vm5694_vm8  ;;  %v5821_v43 = vrot.slane %v3336_v9, 7 }
 0x117   : > { %1633 = vperm.xlu0 %2810, %v1604_v63   ;;  %vm1187_vm8 = vcmp.eq.s32.totalorder %v3464_v0, 1  ;;  %vm3567_vm10 = vmand %vm3394_vm9, %vm859_vm1 }
 0x118   : > { %v3494_v17 = vpop.permute.xlu2 %1499  ;;  %v3496_v20 = vpop.permute.xlu1 %991 }
 0x119   : > { %5814 = vst [vmem:[#allocation53_spill] sm:$0xff] %v3496_v20  ;;  %v3500_v18 = vpop.permute.xlu0 %988  ;;  %v891_v20 = vrot.slane %v3339_v37, 6 }
 0x11a   : > { %5815 = vst [vmem:[#allocation54_spill] sm:$0xff] %v3500_v18 }
 0x11b   : > { %v898_v49 = vsel %vm5699_vm2, %v891_v20, %v5823_v32  ;;  %v5833_v32 = vrot.slane %v3341_v35, 5 }
 0x11e   : > { %1481 = vperm.xlu2 %2812, %v1446_v52   ;;  %1478 = vperm.xlu1 %2811, %v1445_v27   ;;  %v1280_v27 = vsel %vm1264_vm7, 1, %v5788_v54  ;;  %vm5709_vm7 = vcmp.lt.s32.totalorder %v3320_v28, 3 }
 0x11f   : > { %1154 = vperm.xlu0 %2810, %v1119_v10   ;;  %v1606_v10 = vsel %vm1590_vm6, 1, %v5788_v54  ;;  %vm3559_vm6 = vmand %vm1089_vm11, %vm1090_vm12 }
 0x120   : > { %v3510_v18 = vpop.permute.xlu2 %1454  ;;  %v1164_v61 = vpop.permute.xlu1 %1163  ;;  %vm3578_vm11 = vmand %vm3394_vm9, %vm860_vm4 }
 0x121   : > { %v3517_v63 = vpop.permute.xlu0 %997  ;;  %vm1186_vm13 = vcmp.eq.s32.totalorder %v1164_v61, 1  ;;  %vm3592_vm12 = vmand %vm3559_vm6, %vm1187_vm8 }
 0x122   : > { %5816 = vst [vmem:[#allocation55_spill] sm:$0xff] %v3517_v63  ;;  %v572_v63 = vsel %vm5704_vm15, %v5821_v43, %v562_v42  ;;  %v5830_v42 = vrot.slane %v3336_v9, 6  ;;  %vm3623_vm1 = vmand %vm3559_vm6, %vm1186_vm13  ;;  %vm1591_vm15 = vcmp.lt.s32.totalorder %v2819_v3, 12  ;;  %v564_v3 = vrot.slane %v3425_v41, 7 }
 0x123   : > { %v597_v0 = vsel %vm3540_vm3, %v572_v63, 0.0  ;;  %v1225_v63 = vsel %vm5709_vm7, %v1218_v16, %v5833_v32  ;;  %v2793_v32 = vld [vmem:[%s5644_s3 + $0x10] sm:$0xff]  ;;  %vm5708_vm3 = vcmp.lt.s32.totalorder %v3320_v28, 4  ;;  %vm3637_vm13 = vmand %vm1416_vm14, %vm1417_vm5  ;;  %vm5706_vm14 = vcmp.eq.s32.totalorder %v3104_v34, 1 }
 0x124   : > { %v899_v53 = vsel %vm5699_vm2, %v5830_v42, %v891_v20  ;;  %v3606_v20 = vld [vmem:[%s5642_s1 + $0x58] sm:$0xff]  ;;  %v3612_v42 = vld [vmem:[%s5642_s1 + $0x50] sm:$0xff]  ;;  %1937 = vmatpush.bf16.msrb.mxu3 %v2793_v32  ;;  %v565_v32 = vrot.slane %v3427_v48, 7 }
 0x125   : > { %vm1103_vm4 = vcmp.ge.s32.totalorder %v3606_v20, 3  ;;  %vm1102_vm8 = vcmp.ge.s32.totalorder %v3612_v42, 3  ;;  %v924_v61 = vsel %vm3567_vm10, %v899_v53, %v597_v0  ;;  %v5841_v0 = vrot.slane %v3336_v9, 4 }
 0x126   : > { %1639 = vperm.xlu2 %2812, %v1606_v10   ;;  %1315 = vperm.xlu1 %2811, %v1280_v27   ;;  %v1545_v10 = vrot.slane %v3339_v37, 4  ;;  %v1121_v53 = vsel %vm1103_vm4, 1, %v5788_v54  ;;  %vm5845_vm10 = vcmp.lt.s32.totalorder %v3320_v28, 1  ;;  %vm5847_vm4 = vcmp.lt.s32.totalorder %v3310_v1, 4 }
 0x127   : > { %1312 = vperm.xlu0 %2810, %v1279_v4   ;;  %v598_v4 = vsel %vm3528_vm0, %v571_v55, 0.0 }
 0x128   : > { %v3600_v52 = vpop.permute.xlu2 %1291  ;;  %v1494_v26 = vpop.permute.xlu1 %1493  ;;  %v925_v24 = vsel %vm3578_vm11, %v898_v49, %v598_v4  ;;  %v3655_v4 = vsel %vm5708_vm3, %v1545_v10, %v5839_v56  ;;  %v3672_v5 = vsel %vm5708_vm3, %v5841_v0, %v1545_v10 }
 0x129   : > { %vm1514_vm2 = vcmp.eq.s32.totalorder %v1494_v26, 1  ;;  %v1491_v37 = vpop.permute.xlu0 %1490  ;;  %v5838_v26 = vrot.slane %v3336_v9, 5  ;;  %v1252_v49 = vsel %vm3592_vm12, %v1225_v63, %v925_v24  ;;  %5840 = vst [vmem:[#allocation56_spill] sm:$0xff] %v3655_v4  ;;  %v1607_v63 = vsel %vm1591_vm15, 1, %v5788_v54 }
 0x12a   : > { %vm1513_vm0 = vcmp.eq.s32.totalorder %v1491_v37, 1  ;;  %vm1530_vm11 = vmand %vm3637_vm13, %vm1514_vm2  ;;  %v1120_v37 = vsel %vm1102_vm8, 1, %v5788_v54  ;;  %5842 = vst [vmem:[#allocation57_spill] sm:$0xff] %v3672_v5  ;;  %vm5707_vm2 = vcmp.lt.s32.totalorder %v3320_v28, 7  ;;  %v5843_v24 = vrot.slane %v3205_v51, 7 }
 0x12b   : > { %v1226_v47 = vsel %vm5709_vm7, %v5838_v26, %v1218_v16  ;;  %v1579_v43 = vsel %vm1530_vm11, %v3655_v4, %v1252_v49  ;;  %vm1529_vm5 = vmand %vm3637_vm13, %vm1513_vm0  ;;  %vm5721_vm15 = vcmp.eq.s32.totalorder %v3098_v29, 1  ;;  %v5846_v49 = vrot.slane %v3203_v50, 1 }
 0x12c   : > { %v1251_v16 = vsel %vm3623_vm1, %v1226_v47, %v924_v61  ;;  %v5711_v47 = vrot.slane %v3205_v51, 1  ;;  %v5844_v61 = vrot.slane %v3203_v50, 7  ;;  %vm3705_vm8 = vmand %vm5847_vm4, %vm5706_vm14  ;;  %vm5720_vm1 = vcmp.eq.s32.totalorder %v3156_v23, 1 }
 0x12d   : > { %v1578_v27 = vsel %vm1529_vm5, %v3672_v5, %v1251_v16  ;;  %vm5850_vm0 = vcmask 130048   ;;  %vm1265_vm11 = vcmp.lt.s32.totalorder %v3612_v42, 13  ;;  %vm1430_vm5 = vcmp.ge.s32.totalorder %v3606_v20, 4 }
 0x12e   : > { %v3687_v10 = vsel %vm5845_vm10, %v5844_v61, %v5843_v24  ;;  %v1718_v26 = vpack.c.bf16 %v1579_v43, %v1578_v27  ;;  %1160 = vperm.xlu2 %2812, %v1121_v53   ;;  %1157 = vperm.xlu1 %2811, %v1120_v37   ;;  %v3697_v56 = vsel %vm5707_vm2, %v5846_v49, %v5711_v47  ;;  %v5848_v53 = vmov 0 }
 0x12f   : > { %1642 = vperm.xlu0 %2810, %v1607_v63   ;;  %v5849_v53 = vsel %vm3705_vm8, 4294967295, %v5848_v53  ;;  %v893_v37 = vrot.slane %v3425_v41, 6  ;;  %vm862_vm10 = vcmp.eq.s32.totalorder %v3291_v60, 1  ;;  %vm1429_vm4 = vcmp.ge.s32.totalorder %v3612_v42, 4 }
 0x130   : > { %2736 = vmatmul.msk.bf16.vlgmr.msra.gmra.mxu3 %vm5850_vm0, %v1718_v26  ;;  %v3712_v43 = vpop.permute.xlu2 %1133  ;;  %v1497_v0 = vpop.permute.xlu1 %1496  ;;  %vm5851_vm0 = vcmp.lt.s32.totalorder %v3310_v1, 4  ;;  %v894_v26 = vrot.slane %v3427_v48, 6  ;;  %vm5854_vm2 = vcmp.lt.s32.totalorder %v3320_v28, 1  ;;  %v5855_v27 = vrot.slane %v3341_v35, 7 }
 0x131   : > { %v1173_v24 = vpop.permute.xlu0 %1172  ;;  %vm3726_vm14 = vmand %vm5851_vm0, %vm5721_vm15  ;;  %v569_v49 = vsel %vm5854_vm2, %v564_v3, %v565_v32  ;;  %v1220_v63 = vrot.slane %v3425_v41, 5  ;;  %v1281_v16 = vsel %vm1265_vm11, 1, %v5788_v54  ;;  %v1448_v29 = vsel %vm1430_vm5, 1, %v5788_v54 }
 0x132   : > { %vm5856_vm12 = vmmov %vm5854_vm2  ;;  %vm1189_vm3 = vcmp.eq.s32.totalorder %v1173_v24, 1  ;;  %v1447_v24 = vsel %vm1429_vm4, 1, %v5788_v54  ;;  %v5863_v23 = vrot.slane %v3203_v50, 7  ;;  %vm5864_vm11 = vcmp.lt.s32.totalorder %v3320_v28, 1 }
 0x133   : > { %v570_v60 = vsel %vm5856_vm12, %v5855_v27, %v564_v3  ;;  %vm5857_vm7 = vmmov %vm5851_vm0  ;;  %vm861_vm0 = vcmp.eq.s32.totalorder %v3413_v13, 1  ;;  %vm1188_vm12 = vcmp.eq.s32.totalorder %v3476_v8, 1  ;;  %vm1515_vm5 = vcmp.eq.s32.totalorder %v1497_v0, 1 }
 0x134   : > { %vm3741_vm8 = vmand %vm5857_vm7, %vm5720_vm1  ;;  %vm5862_vm7 = vcmp.lt.s32.totalorder %v3320_v28, 2  ;;  %v584_v4 = vsel %vm5864_vm11, %v565_v32, %v5863_v23  ;;  %v599_v34 = vsel %vm3726_vm14, %v570_v60, 0.0  ;;  %v1221_v9 = vrot.slane %v3427_v48, 5 }
 0x135   : > { %vm3752_vm2 = vmand %vm3394_vm9, %vm862_vm10  ;;  %v896_v27 = vsel %vm5862_vm7, %v893_v37, %v894_v26  ;;  %vm847_vm7 = vcmp.eq.s32.totalorder %v3183_v31, 1  ;;  %v600_v14 = vsel %vm3741_vm8, %v569_v49, 0.0  ;;  %v5869_v32 = vrot.slane %v3341_v35, 6 }
 0x136   : > { %vm3768_vm10 = vmand %vm3559_vm6, %vm1189_vm3  ;;  %vm5870_vm3 = vcmp.lt.s32.totalorder %v3320_v28, 2  ;;  %v1547_v60 = vrot.slane %v3425_v41, 4  ;;  %1318 = vperm.xlu2 %2812, %v1281_v16   ;;  %1487 = vperm.xlu1 %2811, %v1448_v29   ;;  %v927_v47 = vsel %vm3752_vm2, %v896_v27, %v600_v14  ;;  %v5873_v49 = vrot.slane %v3341_v35, 5 }
 0x137   : > { %vm3780_vm4 = vmand %vm3394_vm9, %vm861_vm0  ;;  %v897_v61 = vsel %vm5870_vm3, %v5869_v32, %v893_v37  ;;  %vm5874_vm8 = vcmp.lt.s32.totalorder %v3320_v28, 3  ;;  %vm1516_vm0 = vcmp.eq.s32.totalorder %v3494_v17, 1  ;;  %1484 = vperm.xlu0 %2810, %v1447_v24   ;;  %vm1592_vm3 = vcmp.lt.s32.totalorder %v3612_v42, 12 }
 0x138   : > { %vm3795_vm14 = vmand %vm3559_vm6, %vm1188_vm12  ;;  %v1224_v37 = vsel %vm5874_vm8, %v5873_v49, %v1220_v63  ;;  %v3817_v16 = vpop.permute.xlu2 %1463  ;;  %v1131_v3 = vpop.permute.xlu1 %1130  ;;  %vm1593_vm12 = vcmp.lt.s32.totalorder %v3606_v20, 12  ;;  %v5880_v5 = vrot.slane %v3203_v50, 6  ;;  %v5722_v24 = vrot.slane %v3205_v51, 6 }
 0x139   : > { %vm5875_vm11 = vmmov %vm5874_vm8  ;;  %v926_v32 = vsel %vm3780_vm4, %v897_v61, %v599_v34  ;;  %vm1266_vm8 = vcmp.lt.s32.totalorder %v3606_v20, 13  ;;  %vm5883_vm1 = vcmp.lt.s32.totalorder %v3320_v28, 4  ;;  %vm5885_vm15 = vcmp.eq.s32.totalorder %v3092_v25, 1 }
 0x13a   : > { %v1223_v29 = vsel %vm5875_vm11, %v1220_v63, %v1221_v9  ;;  %vm3811_vm2 = vmand %vm3637_vm13, %vm1515_vm5  ;;  %v1548_v63 = vrot.slane %v3427_v48, 4  ;;  %v1253_v31 = vsel %vm3795_vm14, %v1224_v37, %v926_v32  ;;  %vm5886_vm14 = vcmp.lt.s32.totalorder %v3310_v1, 4 }
 0x13b   : > { %v1254_v8 = vsel %vm3768_vm10, %v1223_v29, %v927_v47  ;;  %vm3826_vm5 = vmand %vm3394_vm9, %vm847_vm7  ;;  %vm5881_vm10 = vcmp.lt.s32.totalorder %v3320_v28, 2  ;;  %v1128_v47 = vpop.permute.xlu0 %1127  ;;  %vm848_vm7 = vcmp.eq.s32.totalorder %v3275_v2, 1  ;;  %v1609_v61 = vsel %vm1593_vm12, 1, %v5788_v54 }
 0x13c   : > { %v911_v27 = vsel %vm5881_vm10, %v894_v26, %v5880_v5  ;;  %vm1532_vm10 = vmand %vm3637_vm13, %vm1516_vm0  ;;  %v5882_v26 = vrot.slane %v3341_v35, 4  ;;  %v1608_v13 = vsel %vm1592_vm3, 1, %v5788_v54  ;;  %vm1174_vm0 = vcmp.eq.s32.totalorder %v1128_v47, 1  ;;  %v3920_v47 = vld [vmem:[%s5642_s1 + $0x68] sm:$0xff] }
 0x13d   : > { %vm5884_vm4 = vmmov %vm5883_vm1  ;;  %v1282_v37 = vsel %vm1266_vm8, 1, %v5788_v54  ;;  %v5887_v20 = vmov %v5880_v5  ;;  %v5889_v42 = vrot.slane %v3245_v45, 1  ;;  %v1206_v5 = vrot.slane %v3203_v50, 5 }
 0x13e   : > { %v3850_v34 = vsel %vm5883_vm1, %v5882_v26, %v1547_v60  ;;  %v3856_v23 = vsel %vm5884_vm4, %v1547_v60, %v1548_v63  ;;  %vm534_vm11 = vmand %vm5886_vm14, %vm5885_vm15  ;;  %vm5723_vm1 = vcmp.eq.s32.totalorder %v3152_v22, 1  ;;  %vm5888_vm15 = vcmp.lt.s32.totalorder %v3320_v28, 2  ;;  %1648 = vperm.xlu2 %2812, %v1609_v61   ;;  %1645 = vperm.xlu1 %2811, %v1608_v13  }
 0x13f   : > { %v1580_v17 = vsel %vm3811_vm2, %v3850_v34, %v1253_v31  ;;  %v1581_v60 = vsel %vm1532_vm10, %v3856_v23, %v1254_v8  ;;  %v585_v49 = vsel %vm534_vm11, %v584_v4, 0.0  ;;  %v910_v14 = vsel %vm5888_vm15, %v5887_v20, %v5722_v24  ;;  %vm3895_vm12 = vmand %vm3394_vm9, %vm848_vm7  ;;  %1321 = vperm.xlu0 %2810, %v1282_v37  }
 0x140   : > { %v912_v29 = vsel %vm3826_vm5, %v911_v27, %v585_v49  ;;  %v5890_v8 = vrot.slane %v3205_v51, 1  ;;  %vm5891_vm2 = vcmp.lt.s32.totalorder %v3320_v28, 7  ;;  %v1207_v27 = vrot.slane %v3205_v51, 5  ;;  %vm3907_vm8 = vmand %vm3559_vm6, %vm1174_vm0  ;;  %v1289_v61 = vpop.permute.xlu1 %1288 }
 0x141   : > { %vm1175_vm5 = vcmp.eq.s32.totalorder %v1131_v3, 1  ;;  %v1719_v32 = vpack.c.bf16 %v1581_v60, %v1580_v17  ;;  %v1042_v31 = vrot.slane %v3245_v45, 2  ;;  %v1533_v20 = vrot.slane %v3203_v50, 4  ;;  %v3914_v17 = vpop.permute.xlu2 %1621  ;;  %v3926_v60 = vld [vmem:[%s5642_s1 + $0x60] sm:$0xff] }
 0x142   : > { %v3888_v4 = vsel %vm5891_vm2, %v5890_v8, %v5889_v42  ;;  %vm1501_vm11 = vcmp.eq.s32.totalorder %v3510_v18, 1  ;;  %vm5896_vm7 = vcmask 130048   ;;  %v1534_v13 = vrot.slane %v3205_v51, 4  ;;  %vm3934_vm0 = vmand %vm3559_vm6, %vm1175_vm5 }
 0x143   : > { %2737 = vmatmul.msk.bf16.gmra.mxu3 %vm5896_vm7, %v1719_v32  ;;  %vm1268_vm10 = vcmp.lt.s32.totalorder %v3920_v47, 13  ;;  %vm1267_vm4 = vcmp.lt.s32.totalorder %v3926_v60, 13  ;;  %v1368_v37 = vrot.slane %v3205_v51, 3  ;;  %vm5899_vm15 = vcmp.lt.s32.totalorder %v3320_v28, 3  ;;  %v1458_v32 = vpop.permute.xlu0 %1457  ;;  %vm5900_vm7 = vmmov %vm5886_vm14 }
 0x144   : > { %v1238_v8 = vsel %vm5899_vm15, %v1221_v9, %v1206_v5  ;;  %vm941_vm2 = vcmp.lt.s32.totalorder %v3920_v47, 14  ;;  %vm3947_vm14 = vmand %vm5900_vm7, %vm5723_vm1  ;;  %vm5903_vm5 = vnez %v5849_v53  ;;  %v1237_v9 = vsel %vm5899_vm15, %v1206_v5, %v1207_v27 }
 0x145   : > { %v5904_v24 = vsel %vm5903_vm5, %v3687_v10, 0.0  ;;  %v1239_v26 = vsel %vm3907_vm8, %v1238_v8, %v912_v29  ;;  %vm1502_vm3 = vcmp.eq.s32.totalorder %v1458_v32, 1  ;;  %vm1009_vm7 = vcmp.eq.s32.totalorder %v3439_v59, 1  ;;  %vm1517_vm1 = vmand %vm3637_vm13, %vm1501_vm11 }
 0x146   : > { %v913_v2 = vsel %vm3895_vm12, %v910_v14, %v5904_v24  ;;  %v1284_v10 = vsel %vm1268_vm10, 1, %v5788_v54  ;;  %v1283_v53 = vsel %vm1267_vm4, 1, %v5788_v54  ;;  %vm5905_vm12 = vcmp.lt.s32.totalorder %v3320_v28, 4  ;;  %vm1518_vm11 = vmand %vm3637_vm13, %vm1502_vm3 }
 0x147   : > { %v3976_v24 = vsel %vm5905_vm12, %v1548_v63, %v1533_v20  ;;  %vm1008_vm8 = vcmp.eq.s32.totalorder %v3443_v39, 1  ;;  %v1240_v18 = vsel %vm3934_vm0, %v1237_v9, %v913_v2  ;;  %vm5906_vm5 = vmmov %vm5905_vm12  ;;  %v957_v14 = vsel %vm941_vm2, 1, %v5788_v54  ;;  %1327 = vperm.xlu2 %2812, %v1284_v10   ;;  %1324 = vperm.xlu1 %2811, %v1283_v53   ;;  %v4051_v63 = vld [vmem:[%s5642_s1 + $0x70] sm:$0xff] }
 0x148   : > { %v1564_v29 = vsel %vm5906_vm5, %v1533_v20, %v1534_v13  ;;  %vm5907_vm10 = vcmp.eq.s32.totalorder %v3112_v40, 1  ;;  %vm5908_vm4 = vcmp.lt.s32.totalorder %v3310_v1, 4  ;;  %vm1336_vm12 = vcmp.eq.s32.totalorder %v3600_v52, 1  ;;  %vm4001_vm3 = vmand %vm3394_vm9, %vm1009_vm7  ;;  %1000 = vperm.xlu0 %2810, %v957_v14   ;;  %v1619_v14 = vpop.permute.xlu1 %1618 }
 0x149   : > { %vm3990_vm15 = vmand %vm5908_vm4, %vm5907_vm10  ;;  %v1369_v5 = vrot.slane %v3245_v45, 3  ;;  %v1567_v0 = vsel %vm1518_vm11, %v1564_v29, %v1240_v18  ;;  %v1566_v2 = vsel %vm1517_vm1, %v3976_v24, %v1239_v26  ;;  %vm1335_vm0 = vcmp.eq.s32.totalorder %v1289_v61, 1 }
 0x14a   : > { %v5732_v20 = vrot.slane %v3203_v50, 3  ;;  %v1712_v42 = vpack.c.bf16 %v1567_v0, %v1566_v2  ;;  %v1535_v8 = vrot.slane %v3245_v45, 4  ;;  %vm5724_vm2 = vcmp.eq.s32.totalorder %v3088_v21, 1  ;;  %vm4026_vm7 = vmand %vm3394_vm9, %vm1008_vm8 }
 0x14b   : > { %v746_v59 = vsel %vm3947_vm14, %v3697_v56, 0.0  ;;  %v5913_v26 = vrot.slane %v3245_v45, 7  ;;  %v5914_v32 = vrot.slane %v3205_v51, 7  ;;  %vm5915_vm1 = vcmp.lt.s32.totalorder %v3320_v28, 1  ;;  %vm4041_vm11 = vmand %vm3559_vm6, %vm1336_vm12 }
 0x14c   : > { %v747_v10 = vsel %vm3990_vm15, %v3888_v4, 0.0  ;;  %v553_v56 = vrot.slane %v3247_v30, 7  ;;  %v5918_v3 = vrot.slane %v3205_v51, 2  ;;  %vm5919_vm14 = vcmp.lt.s32.totalorder %v3320_v28, 6  ;;  %v4046_v4 = vpop.permute.xlu2 %1142  ;;  %vm4068_vm12 = vmand %vm3559_vm6, %vm1335_vm0 }
 0x14d   : > { %v4017_v9 = vsel %vm5915_vm1, %v5914_v32, %v5913_v26  ;;  %vm5922_vm8 = vcmask 130048   ;;  %vm942_vm5 = vcmp.lt.s32.totalorder %v4051_v63, 14  ;;  %vm1595_vm10 = vcmp.lt.s32.totalorder %v3920_v47, 12  ;;  %vm5925_vm4 = vmmov %vm5919_vm14  ;;  %v1616_v47 = vpop.permute.xlu0 %1615 }
 0x14e   : > { %v1070_v18 = vsel %vm5919_vm14, %v5918_v3, %v1042_v31  ;;  %2730 = vmatmul.msk.bf16.vlgmr.msra.gmra.mxu2 %vm5922_vm8, %v1712_v42  ;;  %v5923_v52 = vmov %v5918_v3  ;;  %v5924_v0 = vrot.slane %v3203_v50, 2  ;;  %vm5926_vm15 = vcmp.lt.s32.totalorder %v3320_v28, 5 }
 0x14f   : > { %v1397_v42 = vsel %vm5926_vm15, %v1368_v37, %v1369_v5  ;;  %vm1663_vm1 = vcmp.eq.s32.totalorder %v1619_v14, 1  ;;  %vm1594_vm14 = vcmp.lt.s32.totalorder %v3926_v60, 12  ;;  %v1074_v32 = vsel %vm4001_vm3, %v1070_v18, %v747_v10  ;;  %vm5929_vm8 = vmmov %vm5926_vm15 }
 0x150   : > { %v1071_v2 = vsel %vm5925_vm4, %v5924_v0, %v5923_v52  ;;  %v1398_v3 = vsel %vm5929_vm8, %v5732_v20, %v1368_v37  ;;  %vm5930_vm4 = vcmp.lt.s32.totalorder %v3320_v28, 4  ;;  %vm1662_vm0 = vcmp.eq.s32.totalorder %v1616_v47, 1  ;;  %vm1679_vm3 = vmand %vm3637_vm13, %vm1663_vm1 }
 0x151   : > { %v1563_v61 = vsel %vm5930_vm4, %v1534_v13, %v1535_v8  ;;  %v1073_v14 = vsel %vm4026_vm7, %v1071_v2, %v746_v59  ;;  %v1401_v60 = vsel %vm4041_vm11, %v1397_v42, %v1074_v32  ;;  %v958_v49 = vsel %vm942_vm5, 1, %v5788_v54  ;;  %vm1678_vm7 = vmand %vm3637_vm13, %vm1662_vm0 }
 0x152   : > { %v1611_v37 = vsel %vm1595_vm10, 1, %v5788_v54  ;;  %vm849_vm15 = vcmp.eq.s32.totalorder %v3271_v44, 1  ;;  %v1400_v13 = vsel %vm4068_vm12, %v1398_v3, %v1073_v14  ;;  %v1695_v10 = vsel %vm1679_vm3, %v1563_v61, %v1401_v60  ;;  %1003 = vperm.xlu2 %2812, %v958_v49   ;;  %v1461_v3 = vpop.permute.xlu1 %1460  ;;  %v2823_v60 = vld [vmem:[%s5642_s1 + $0x78] sm:$0xff] }
 0x153   : > { %v1610_v59 = vsel %vm1594_vm14, 1, %v5788_v54  ;;  %v881_v53 = vrot.slane %v3245_v45, 6  ;;  %v882_v18 = vrot.slane %v3247_v30, 6  ;;  %vm1176_vm11 = vcmp.eq.s32.totalorder %v3712_v43, 1  ;;  %1654 = vperm.xlu1 %2811, %v1611_v37   ;;  %vm4120_vm14 = vmand %vm3394_vm9, %vm849_vm15 }
 0x154   : > { %v1694_v39 = vsel %vm1678_vm7, %v1564_v29, %v1400_v13  ;;  %vm5931_vm5 = vcmp.lt.s32.totalorder %v3310_v1, 4  ;;  %vm850_vm12 = vcmp.eq.s32.totalorder %v3207_v36, 1  ;;  %v1208_v0 = vrot.slane %v3245_v45, 5  ;;  %1651 = vperm.xlu0 %2810, %v1610_v59   ;;  %vm4136_vm0 = vmand %vm3559_vm6, %vm1176_vm11  ;;  %v4141_v32 = vpop.permute.xlu2 %1300 }
 0x155   : > { %vm4106_vm10 = vmand %vm5931_vm5, %vm5724_vm2  ;;  %v1892_v2 = vpack.c.bf16 %v1695_v10, %v1694_v39  ;;  %vm521_vm1 = vcmp.eq.s32.totalorder %v3100_v33, 1  ;;  %v5936_v42 = vrot.slane %v3205_v51, 6  ;;  %vm5937_vm8 = vcmp.lt.s32.totalorder %v3320_v28, 2  ;;  %v1137_v13 = vpop.permute.xlu0 %1136 }
 0x156   : > { %v587_v43 = vsel %vm4106_vm10, %v4017_v9, 0.0  ;;  %v5938_v47 = vrot.slane %v3245_v45, 7  ;;  %vm5939_vm4 = vcmp.lt.s32.totalorder %v3320_v28, 1  ;;  %vm5942_vm3 = vcmask 130048   ;;  %vm4152_vm11 = vmand %vm3394_vm9, %vm850_vm12 }
 0x157   : > { %v909_v26 = vsel %vm5937_vm8, %v5936_v42, %v881_v53  ;;  %2744 = vmatmul.msk.bf16.vlgmr.msrb.gmra.mxu3 %vm5942_vm3, %v1892_v2  ;;  %v1209_v14 = vrot.slane %v3247_v30, 5  ;;  %vm1270_vm15 = vcmp.lt.s32.totalorder %v2823_v60, 13  ;;  %vm1269_vm7 = vcmp.lt.s32.totalorder %v4051_v63, 13  ;;  %vm5945_vm5 = vmmov %vm5937_vm8 }
 0x158   : > { %v581_v9 = vsel %vm5939_vm4, %v5938_v47, %v553_v56  ;;  %v908_v37 = vsel %vm5945_vm5, %v881_v53, %v882_v18  ;;  %vm1503_vm10 = vcmp.eq.s32.totalorder %v1461_v3, 1  ;;  %v1536_v10 = vrot.slane %v3247_v30, 4 }
 0x159   : > { %vm5946_vm4 = vcmp.lt.s32.totalorder %v3310_v1, 4  ;;  %v914_v36 = vsel %vm4120_vm14, %v909_v26, %v587_v43  ;;  %vm5947_vm12 = vcmp.lt.s32.totalorder %v3320_v28, 3  ;;  %vm1504_vm5 = vcmp.eq.s32.totalorder %v3817_v16, 1  ;;  %vm1519_vm8 = vmand %vm3637_vm13, %vm1503_vm10 }
 0x15a   : > { %vm537_vm3 = vmand %vm5946_vm4, %vm521_vm1  ;;  %v1236_v59 = vsel %vm5947_vm12, %v1207_v27, %v1208_v0  ;;  %vm1177_vm2 = vcmp.eq.s32.totalorder %v1137_v13, 1  ;;  %v1286_v52 = vsel %vm1270_vm15, 1, %v5788_v54  ;;  %v1285_v2 = vsel %vm1269_vm7, 1, %v5788_v54 }
 0x15b   : > { %v588_v53 = vsel %vm537_vm3, %v581_v9, 0.0  ;;  %v1241_v39 = vsel %vm4136_vm0, %v1236_v59, %v914_v36  ;;  %vm1193_vm14 = vmand %vm3559_vm6, %vm1177_vm2  ;;  %vm5949_vm10 = vcmp.lt.s32.totalorder %v2823_v60, 14  ;;  %vm5950_vm7 = vcmp.lt.s32.totalorder %v3320_v28, 4  ;;  %1333 = vperm.xlu2 %2812, %v1286_v52   ;;  %1330 = vperm.xlu1 %2811, %v1285_v2   ;;  %v1298_v9 = vpop.permute.xlu1 %1297 }
 0x15c   : > { %v915_v27 = vsel %vm4152_vm11, %v908_v37, %v588_v53  ;;  %v1568_v43 = vsel %vm1519_vm8, %v1563_v61, %v1241_v39  ;;  %vm5948_vm0 = vmmov %vm5947_vm12  ;;  %v959_v29 = vsel %vm5949_vm10, 1, %v5788_v54  ;;  %v4199_v61 = vsel %vm5950_vm7, %v1535_v8, %v1536_v10  ;;  %v4202_v47 = vpop.permute.xlu2 %1630 }
 0x15d   : > { %v1235_v16 = vsel %vm5948_vm0, %v1208_v0, %v1209_v14  ;;  %vm1520_vm15 = vmand %vm3637_vm13, %vm1504_vm5  ;;  %1006 = vperm.xlu0 %2810, %v959_v29   ;;  %vm1597_vm2 = vcmp.lt.s32.totalorder %v2823_v60, 12  ;;  %vm5725_vm11 = vcmp.eq.s32.totalorder %v3166_v11, 1  ;;  %v716_v44 = vrot.slane %v3247_v30, 1  ;;  %v1295_v3 = vpop.permute.xlu0 %1294 }
 0x15e   : > { %v1242_v42 = vsel %vm1193_vm14, %v1235_v16, %v915_v27  ;;  %vm5951_vm8 = vcmask 130048   ;;  %vm1596_vm4 = vcmp.lt.s32.totalorder %v4051_v63, 12  ;;  %vm5754_vm3 = vcmp.eq.s32.totalorder %v3170_v12, 1 }
 0x15f   : > { %v1569_v26 = vsel %vm1520_vm15, %v4199_v61, %v1242_v42  ;;  %v1043_v8 = vrot.slane %v3247_v30, 2  ;;  %v717_v49 = vrot.slane %v3287_v7, 1  ;;  %vm1010_vm12 = vcmp.eq.s32.totalorder %v3312_v58, 1 }
 0x160   : > { %v1713_v0 = vpack.c.bf16 %v1569_v26, %v1568_v43  ;;  %v1613_v37 = vsel %vm1597_vm2, 1, %v5788_v54  ;;  %vm5952_vm5 = vcmp.lt.s32.totalorder %v3310_v1, 4  ;;  %vm1337_vm0 = vcmp.eq.s32.totalorder %v1295_v3, 1 }
 0x161   : > { %vm4217_vm14 = vmand %vm5952_vm5, %vm5725_vm11  ;;  %v1612_v63 = vsel %vm1596_vm4, 1, %v5788_v54  ;;  %v5958_v58 = vrot.slane %v3245_v45, 1  ;;  %vm5959_vm7 = vcmp.lt.s32.totalorder %v3320_v28, 7  ;;  %v554_v59 = vrot.slane %v3287_v7, 7  ;;  %v5977_v54 = vld [vmem:[#allocation29_spill] sm:$0xff] }
 0x162   : > { %2731 = vmatmul.msk.bf16.gmra.mxu2 %vm5951_vm8, %v1713_v0  ;;  %vm5955_vm10 = vmmov %vm5952_vm5  ;;  %vm1011_vm2 = vcmp.eq.s32.totalorder %v3470_v19, 1  ;;  %v1370_v53 = vrot.slane %v3247_v30, 3  ;;  %vm5962_vm4 = vcmp.lt.s32.totalorder %v3320_v28, 6  ;;  %v1044_v52 = vrot.slane %v3287_v7, 2 }
 0x163   : > { %vm4226_vm15 = vmand %vm5955_vm10, %vm5754_vm3  ;;  %v742_v36 = vsel %vm5959_vm7, %v5958_v58, %v716_v44  ;;  %v1069_v39 = vsel %vm5962_vm4, %v1042_v31, %v1043_v8  ;;  %vm1338_vm10 = vcmp.eq.s32.totalorder %v1298_v9, 1  ;;  %1660 = vperm.xlu1 %2811, %v1613_v37   ;;  %2044 = vrot.lane.b32.xlu2 %v3203_v50, %s2834_s16  ;;  %v1371_v27 = vrot.slane %v3287_v7, 3  ;;  %v1140_v42 = vpop.permute.xlu1 %1139 }
 0x164   : > { %vm4239_vm8 = vmand %vm3394_vm9, %vm1010_vm12  ;;  %vm5726_vm12 = vcmp.eq.s32.totalorder %v3062_v62, 1  ;;  %vm5728_vm4 = vcmp.eq.s32.totalorder %v3070_v6, 1  ;;  %v748_v43 = vsel %vm4226_vm15, %v742_v36, 0.0  ;;  %vm1664_vm11 = vcmp.eq.s32.totalorder %v3914_v17, 1  ;;  %v4275_v29 = vpop.permute.xlu2 %1472 }
 0x165   : > { %vm5963_vm5 = vmmov %vm5959_vm7  ;;  %1657 = vperm.xlu0 %2810, %v1612_v63   ;;  %v1537_v26 = vrot.slane %v3287_v7, 4  ;;  %v1075_v19 = vsel %vm4239_vm8, %v1069_v39, %v748_v43  ;;  %v1625_v63 = vpop.permute.xlu0 %1624  ;;  %vm5972_vm8 = vcmp.lt.s32.totalorder %v3310_v1, 4  ;;  %v555_v9 = vrot.slane %v3289_v15, 7 }
 0x166   : > { %v741_v2 = vsel %vm5963_vm5, %v716_v44, %v717_v49  ;;  %vm4259_vm7 = vmand %vm3559_vm6, %vm1337_vm0  ;;  %vm5968_vm0 = vcmp.lt.s32.totalorder %v3320_v28, 1  ;;  %v884_v36 = vrot.slane %v3289_v15, 6  ;;  %v1045_v16 = vrot.slane %v3289_v15, 2 }
 0x167   : > { %vm4270_vm5 = vmand %vm3394_vm9, %vm1011_vm2  ;;  %v580_v0 = vsel %vm5968_vm0, %v553_v56, %v554_v59  ;;  %v749_v44 = vsel %vm4217_vm14, %v741_v2, 0.0  ;;  %vm5971_vm2 = vcmp.lt.s32.totalorder %v3320_v28, 5  ;;  %vm5975_vm14 = vcmp.lt.s32.totalorder %v3320_v28, 6 }
 0x168   : > { %vm4289_vm15 = vmand %vm3559_vm6, %vm1338_vm10  ;;  %v1396_v37 = vsel %vm5971_vm2, %v1369_v5, %v1370_v53  ;;  %v1068_v60 = vsel %vm5975_vm14, %v1043_v8, %v1044_v52  ;;  %vm1665_vm10 = vcmp.eq.s32.totalorder %v1625_v63, 1  ;;  %vm852_vm2 = vcmp.eq.s32.totalorder %v3293_v46, 1 }
 0x169   : > { %vm4301_vm0 = vmand %vm5972_vm8, %vm5726_vm12  ;;  %v1402_v13 = vsel %vm4259_vm7, %v1396_v37, %v1075_v19  ;;  %v883_v5 = vrot.slane %v3287_v7, 6  ;;  %v1076_v58 = vsel %vm4270_vm5, %v1068_v60, %v749_v44  ;;  %vm5976_vm14 = vcmp.lt.s32.totalorder %v3320_v28, 5  ;;  %v5992_v60 = vld [vmem:[#allocation9_spill] sm:$0xff]  ;;  %v6006_v37 = vld [vmem:[#allocation18_spill] sm:$0xff] }
 0x16a   : > { %vm1680_vm8 = vmand %vm3637_vm13, %vm1664_vm11  ;;  %v1395_v8 = vsel %vm5976_vm14, %v1370_v53, %v1371_v27  ;;  %vm851_vm7 = vcmp.eq.s32.totalorder %v5977_v54, 1  ;;  %vm5978_vm5 = vcmp.lt.s32.totalorder %v3320_v28, 4  ;;  %vm5979_vm12 = vcmp.lt.s32.totalorder %v3310_v1, 4  ;;  %v5999_v53 = vld [vmem:[#allocation36_spill] sm:$0xff] }
 0x16b   : > { %v1403_v39 = vsel %vm4289_vm15, %v1395_v8, %v1076_v58  ;;  %v1561_v17 = vsel %vm5978_vm5, %v1536_v10, %v1537_v26  ;;  %vm1681_vm11 = vmand %vm3637_vm13, %vm1665_vm10  ;;  %v718_v2 = vrot.slane %v3289_v15, 1  ;;  %vm1179_vm15 = vcmp.eq.s32.totalorder %v4046_v4, 1  ;;  %2074 = vrot.lane.b32.xlu1 %v3427_v48, %s2834_s16  ;;  %2048 = vrot.lane.b32.xlu2 %v3245_v45, %s2834_s16 }
 0x16c   : > { %vm4338_vm14 = vmand %vm5979_vm12, %vm5728_vm4  ;;  %v1697_v31 = vsel %vm1681_vm11, %v1561_v17, %v1403_v39  ;;  %v1696_v43 = vsel %vm1680_vm8, %v4199_v61, %v1402_v13  ;;  %vm5982_vm5 = vcmp.lt.s32.totalorder %v3320_v28, 1  ;;  %v1211_v19 = vrot.slane %v3289_v15, 5  ;;  %v4391_v63 = vpop.permute.xlu2 %1309  ;;  %v4432_v39 = vld [vmem:[%s5646_s5 + $0x2] ss:$0 sm:$0xff] }
 0x16d   : > { %v579_v10 = vsel %vm5982_vm5, %v554_v59, %v555_v9  ;;  %vm4353_vm12 = vmand %vm3394_vm9, %vm852_vm2  ;;  %vm1178_vm10 = vcmp.eq.s32.totalorder %v1140_v42, 1  ;;  %v1893_v61 = vpack.c.bf16 %v1697_v31, %v1696_v43  ;;  %vm5985_vm8 = vcmp.lt.s32.totalorder %v3320_v28, 2  ;;  %2046 = vrot.lane.b32.xlu0 %v3205_v51, %s2834_s16  ;;  %v1470_v51 = vpop.permute.xlu1 %1469  ;;  %v6000_v43 = vld [vmem:[#allocation49_spill] sm:$0xff]  ;;  %v6004_v59 = vld [vmem:[#allocation39_spill] sm:$0xff] }
 0x16e   : > { %v906_v46 = vsel %vm5985_vm8, %v883_v5, %v884_v36  ;;  %vm4370_vm2 = vmand %vm3394_vm9, %vm851_vm7  ;;  %v1210_v44 = vrot.slane %v3287_v7, 5  ;;  %v1538_v45 = vrot.slane %v3289_v15, 4  ;;  %vm5991_vm5 = vcmask 130048  }
 0x16f   : > { %vm5988_vm11 = vmmov %vm5985_vm8  ;;  %2745 = vmatmul.msk.bf16.gmra.mxu3 %vm5991_vm5, %v1893_v61  ;;  %vm5727_vm8 = vcmp.eq.s32.totalorder %v5992_v60, 1  ;;  %v590_v13 = vsel %vm4338_vm14, %v579_v10, 0.0  ;;  %vm5995_vm5 = vcmp.lt.s32.totalorder %v3320_v28, 7  ;;  %v719_v31 = vrot.slane %v5999_v53, 1 }
 0x170   : > { %v907_v3 = vsel %vm5988_vm11, %v882_v18, %v883_v5  ;;  %vm4386_vm7 = vmand %vm3559_vm6, %vm1179_vm15  ;;  %v589_v18 = vsel %vm4301_vm0, %v580_v0, 0.0  ;;  %vm1506_vm11 = vcmp.eq.s32.totalorder %v1470_v51, 1  ;;  %v1467_v5 = vpop.permute.xlu0 %1466  ;;  %v917_v58 = vsel %vm4353_vm12, %v906_v46, %v590_v13  ;;  %v6020_v46 = vld [vmem:[#allocation7_spill] sm:$0xff] }
 0x171   : > { %vm4401_vm15 = vmand %vm3559_vm6, %vm1178_vm10  ;;  %v740_v8 = vsel %vm5995_vm5, %v717_v49, %v718_v2  ;;  %vm5996_vm0 = vcmp.lt.s32.totalorder %v3320_v28, 3  ;;  %vm1505_vm14 = vcmp.eq.s32.totalorder %v1467_v5, 1  ;;  %v916_v0 = vsel %vm4370_vm2, %v907_v3, %v589_v18  ;;  %v6005_v3 = vld [vmem:[#allocation20_spill] sm:$0xff] }
 0x172   : > { %v1233_v42 = vsel %vm5996_vm0, %v1210_v44, %v1211_v19  ;;  %vm5997_vm12 = vmmov %vm5996_vm0  ;;  %vm5998_vm5 = vcmp.lt.s32.totalorder %v3320_v28, 4  ;;  %vm1012_vm2 = vcmp.eq.s32.totalorder %v6000_v43, 1  ;;  %vm6001_vm0 = vcmp.lt.s32.totalorder %v3310_v1, 4 }
 0x173   : > { %v1244_v56 = vsel %vm4386_vm7, %v1233_v42, %v917_v58  ;;  %v1234_v54 = vsel %vm5997_vm12, %v1209_v14, %v1210_v44  ;;  %vm1522_vm10 = vmand %vm3637_vm13, %vm1506_vm11  ;;  %v1560_v49 = vsel %vm5998_vm5, %v1537_v26, %v1538_v45  ;;  %v1046_v26 = vrot.slane %v5999_v53, 2  ;;  %2050 = vrot.lane.b32.xlu2 %v3247_v30, %s2834_s16  ;;  %2457 = vrot.lane.b32.xlu1 %v6005_v3, %s2835_s19 }
 0x174   : > { %v1243_v14 = vsel %vm4401_vm15, %v1234_v54, %v916_v0  ;;  %v1571_v10 = vsel %vm1522_vm10, %v1560_v49, %v1244_v56  ;;  %vm1521_vm7 = vmand %vm3637_vm13, %vm1505_vm14  ;;  %vm1339_vm11 = vcmp.eq.s32.totalorder %v4141_v32, 1  ;;  %vm1013_vm15 = vcmp.eq.s32.totalorder %v6004_v59, 1  ;;  %v4482_v4 = vpop.permute.xlu2 %1151 }
 0x175   : > { %v1570_v61 = vsel %vm1521_vm7, %v1561_v17, %v1243_v14  ;;  %vm4447_vm12 = vmand %vm6001_vm0, %vm5727_vm8  ;;  %v1372_v44 = vrot.slane %v3289_v15, 3  ;;  %vm5731_vm14 = vcmp.eq.s32.totalorder %v6006_v37, 1  ;;  %2238 = vrot.lane.b32.xlu0 %v4432_v39, %s2836_s20  ;;  %vm6009_vm5 = vcmp.lt.s32.totalorder %v3320_v28, 7  ;;  %v1628_v5 = vpop.permute.xlu1 %1627 }
 0x176   : > { %v1714_v17 = vpack.c.bf16 %v1571_v10, %v1570_v61  ;;  %vm4462_vm10 = vmand %vm3394_vm9, %vm1012_vm2  ;;  %v739_v30 = vsel %vm6009_vm5, %v718_v2, %v719_v31  ;;  %v750_v13 = vsel %vm4447_vm12, %v740_v8, 0.0  ;;  %vm6012_vm2 = vcmask 130048  }
 0x177   : > { %vm4477_vm7 = vmand %vm3559_vm6, %vm1339_vm11  ;;  %v5734_v58 = vrot.slane %v5999_v53, 3  ;;  %vm6013_vm12 = vcmp.lt.s32.totalorder %v3320_v28, 6  ;;  %vm1666_vm5 = vcmp.eq.s32.totalorder %v1628_v5, 1  ;;  %v1539_v42 = vrot.slane %v5999_v53, 4 }
 0x178   : > { %2732 = vmatmul.msk.bf16.gmra.mxu2 %vm6012_vm2, %v1714_v17  ;;  %vm1029_vm0 = vmand %vm3394_vm9, %vm1013_vm15  ;;  %v1066_v32 = vsel %vm6013_vm12, %v1045_v16, %v1046_v26  ;;  %v1304_v8 = vpop.permute.xlu0 %1303  ;;  %vm6015_vm2 = vcmp.lt.s32.totalorder %v3310_v1, 4  ;;  %vm6016_vm15 = vcmp.lt.s32.totalorder %v3320_v28, 5  ;;  %v556_v43 = vrot.slane %v5999_v53, 7 }
 0x179   : > { %vm6014_vm11 = vmmov %vm6013_vm12  ;;  %v1394_v56 = vsel %vm6016_vm15, %v1371_v27, %v1372_v44  ;;  %vm1667_vm12 = vcmp.eq.s32.totalorder %v4202_v47, 1  ;;  %v885_v59 = vrot.slane %v5999_v53, 6 }
 0x17a   : > { %v1067_v2 = vsel %vm6014_vm11, %v1044_v52, %v1045_v16  ;;  %vm702_vm8 = vmand %vm6015_vm2, %vm5731_vm14  ;;  %vm1340_vm11 = vcmp.eq.s32.totalorder %v1304_v8, 1  ;;  %vm6045_vm14 = vcmp.lt.s32.totalorder %v3320_v28, 2 }
 0x17b   : > { %v1077_v0 = vsel %vm4462_vm10, %v1067_v2, %v750_v13  ;;  %v751_v52 = vsel %vm702_vm8, %v739_v30, 0.0  ;;  %vm1682_vm4 = vmand %vm3637_vm13, %vm1666_vm5  ;;  %2054 = vrot.lane.b32.xlu2 %v3289_v15, %s2834_s16  ;;  %vm6022_vm5 = vcmask 130048   ;;  %v2275_v30 = vld [vmem:[%s5645_s4 + $0x8] sm:$0xf]  ;;  %v6023_v13 = vld [vmem:[#allocation6_spill] sm:$0xff] }
 0x17c   : > { %v1404_v54 = vsel %vm4477_vm7, %v1394_v56, %v1077_v0  ;;  %v1078_v14 = vsel %vm1029_vm0, %v1066_v32, %v751_v52  ;;  %vm1356_vm10 = vmand %vm3559_vm6, %vm1340_vm11  ;;  %vm6018_vm7 = vcmp.lt.s32.totalorder %v3320_v28, 4  ;;  %vm6021_vm0 = vcmp.lt.s32.totalorder %v3320_v28, 1  ;;  %v4543_v3 = vpop.permute.xlu2 %1481  ;;  %v6028_v2 = vld [vmem:[#allocation22_spill] sm:$0xff] }
 0x17d   : > { %v1698_v10 = vsel %vm1682_vm4, %v1560_v49, %v1404_v54  ;;  %vm6017_vm2 = vmmov %vm6016_vm15  ;;  %v4528_v16 = vsel %vm6018_vm7, %v1538_v45, %v1539_v42  ;;  %v6019_v49 = vld [vmem:[#allocation27_spill] sm:$0xff]  ;;  %vm5730_vm4 = vcmp.eq.s32.totalorder %v6020_v46, 1  ;;  %2052 = vrot.lane.b32.xlu0 %v3287_v7, %s2834_s16  ;;  %v578_v45 = vsel %vm6021_vm0, %v555_v9, %v556_v43  ;;  %v1149_v17 = vpop.permute.xlu1 %1148  ;;  %v6027_v9 = vld [vmem:[#allocation38_spill] sm:$0xff] }
 0x17e   : > { %v1393_v47 = vsel %vm6017_vm2, %v1372_v44, %v5734_v58  ;;  %vm1683_vm8 = vmand %vm3637_vm13, %vm1667_vm12  ;;  %2459 = vrot.lane.b32.xlu1 %v6019_v49, %s2835_s19  ;;  %vm5729_vm15 = vcmp.eq.s32.totalorder %v6023_v13, 1  ;;  %vm6024_vm12 = vcmp.lt.s32.totalorder %v3310_v1, 4  ;;  %v5733_v18 = vrot.slane %v6027_v9, 7  ;;  %v6033_v54 = vld [vmem:[#allocation32_spill] sm:$0xff] }
 0x17f   : > { %v1405_v27 = vsel %vm1356_vm10, %v1393_v47, %v1078_v14  ;;  %vm4554_vm11 = vmand %vm6024_vm12, %vm5730_vm4  ;;  %v2474_v5 = vunpack.c.l.b16 %v2275_v30  ;;  %vm853_vm10 = vcmp.eq.s32.totalorder %v6028_v2, 1  ;;  %vm6029_vm2 = vcmp.lt.s32.totalorder %v3320_v28, 2  ;;  %v2794_v47 = vld [vmem:[%s5645_s4] sm:$0xff]  ;;  %v6039_v7 = vld [vmem:[#allocation12_spill] sm:$0xff] }
 0x180   : > { %v1699_v61 = vsel %vm1683_vm8, %v4528_v16, %v1405_v27  ;;  %v1146_v51 = vpop.permute.xlu0 %1145  ;;  %v591_v32 = vsel %vm4554_vm11, %v578_v45, 0.0  ;;  %v905_v8 = vsel %vm6029_vm2, %v884_v36, %v885_v59  ;;  %v5735_v0 = vrot.slane %v6027_v9, 6  ;;  %vm6030_vm0 = vmmov %vm6024_vm12  ;;  %v6038_v45 = vld [vmem:[#allocation30_spill] sm:$0xff]  ;;  %2407 = vmatpush.bf16.msrb.mxu1 %v2794_v47 }
 0x181   : > { %v1894_v44 = vpack.c.bf16 %v1699_v61, %v1698_v10  ;;  %vm1180_vm8 = vcmp.eq.s32.totalorder %v1146_v51, 1  ;;  %vm2317_vm7 = vcmask 1041408   ;;  %v2475_v56 = vpack.c.b16 %v2474_v5, %v2474_v5  ;;  %vm4584_vm11 = vmand %vm3394_vm9, %vm853_vm10  ;;  %v6037_v61 = vld [vmem:[#allocation46_spill] sm:$0xff]  ;;  %v6040_v5 = vld [vmem:[#allocation17_spill] sm:$0xff] }
 0x182   : > { %vm854_vm12 = vcmp.eq.s32.totalorder %v6033_v54, 1  ;;  %v720_v14 = vrot.slane %v6027_v9, 1  ;;  %v1212_v10 = vrot.slane %v5999_v53, 5  ;;  %v2319_v36 = vsel %vm2317_vm7, %v2275_v30, 0  ;;  %v6054_v47 = vld [vmem:[#allocation50_spill] sm:$0xff] }
 0x183   : > { %2746 = vmatmul.msk.bf16.gmra.mxu3 %vm6022_vm5, %v1894_v44  ;;  %vm4571_vm5 = vmand %vm6030_vm0, %vm5729_vm15  ;;  %vm6036_vm2 = vcmp.lt.s32.totalorder %v3320_v28, 1  ;;  %v5740_v44 = vrot.slane %v6037_v61, 1  ;;  %vm1181_vm0 = vcmp.eq.s32.totalorder %v1149_v17, 1  ;;  %2058 = vrot.lane.b32.xlu2 %v6027_v9, %s2834_s16  ;;  %v2476_v30 = vrot.slane %v2475_v56, 2  ;;  %v6061_v56 = vld [vmem:[#allocation2_spill] sm:$0xff] }
 0x184   : > { %v577_v49 = vsel %vm6036_vm2, %v556_v43, %v5733_v18  ;;  %vm5736_vm10 = vcmp.eq.s32.totalorder %v6039_v7, 1  ;;  %vm5737_vm15 = vcmp.eq.s32.totalorder %v6040_v5, 1  ;;  %v1213_v2 = vrot.slane %v6027_v9, 5  ;;  %vm4603_vm2 = vmand %vm3559_vm6, %vm1180_vm8  ;;  %2328 = vmatpush.bf16.msrb.mxu0 %v2319_v36 }
 0x185   : > { %2056 = vrot.lane.b32.xlu0 %v5999_v53, %s2834_s16  ;;  %vm4613_vm4 = vmand %vm3394_vm9, %vm854_vm12  ;;  %v904_v51 = vsel %vm6045_vm14, %v885_v59, %v5735_v0  ;;  %vm1507_vm8 = vcmp.eq.s32.totalorder %v4275_v29, 1  ;;  %v1307_v20 = vpop.permute.xlu1 %1306  ;;  %v1540_v36 = vrot.slane %v6027_v9, 4  ;;  %v2502_v54 = vsel %vm2317_vm7, %v2476_v30, 0 }
 0x186   : > { %2461 = vrot.lane.b32.xlu1 %v6038_v45, %s2835_s19  ;;  %v4622_v45 = vpop.permute.xlu2 %1639  ;;  %v918_v18 = vsel %vm4584_vm11, %v905_v8, %v591_v32  ;;  %v592_v58 = vsel %vm4571_vm5, %v577_v49, 0.0  ;;  %vm6046_vm14 = vcmp.lt.s32.totalorder %v3320_v28, 7  ;;  %vm4637_vm12 = vmand %vm3559_vm6, %vm1181_vm0  ;;  %vm6049_vm7 = vcmp.lt.s32.totalorder %v3320_v28, 3  ;;  %2511 = vmatpush.bf16.msrb.mxu2 %v2502_v54  ;;  %v6056_v49 = vld [vmem:[#allocation51_spill] sm:$0xff]  ;;  %v6065_v54 = vld [vmem:[#allocation41_spill] sm:$0xff] }
 0x187   : > { %v738_v59 = vsel %vm6046_vm14, %v719_v31, %v720_v14  ;;  %v1232_v32 = vsel %vm6049_vm7, %v1211_v19, %v1212_v10  ;;  %vm6050_vm5 = vcmp.lt.s32.totalorder %v3310_v1, 4  ;;  %v5738_v17 = vrot.slane %v6037_v61, 2  ;;  %vm6053_vm0 = vmmov %vm6046_vm14 }
 0x188   : > { %v1476_v8 = vpop.permute.xlu0 %1475  ;;  %vm4649_vm11 = vmand %vm6050_vm5, %vm5736_vm10  ;;  %v737_v15 = vsel %vm6053_vm0, %v720_v14, %v5740_v44  ;;  %v1245_v19 = vsel %vm4603_vm2, %v1232_v32, %v918_v18  ;;  %v919_v52 = vsel %vm4613_vm4, %v904_v51, %v592_v58  ;;  %vm1015_vm7 = vcmp.eq.s32.totalorder %v6054_v47, 1  ;;  %v6064_v51 = vld [vmem:[#allocation47_spill] sm:$0xff] }
 0x189   : > { %vm1508_vm14 = vcmp.eq.s32.totalorder %v1476_v8, 1  ;;  %v1047_v27 = vrot.slane %v6027_v9, 2  ;;  %vm1523_vm5 = vmand %vm3637_vm13, %vm1507_vm8  ;;  %vm6055_vm0 = vcmp.lt.s32.totalorder %v3320_v28, 3  ;;  %vm1014_vm2 = vcmp.eq.s32.totalorder %v6056_v49, 1  ;;  %v6066_v8 = vld [vmem:[#allocation10_spill] sm:$0xff] }
 0x18a   : > { %v1231_v14 = vsel %vm6055_vm0, %v1212_v10, %v1213_v2  ;;  %v1374_v18 = vrot.slane %v6027_v9, 3  ;;  %vm1524_vm4 = vmand %vm3637_vm13, %vm1508_vm14  ;;  %vm6057_vm8 = vcmp.lt.s32.totalorder %v3320_v28, 4  ;;  %vm6058_vm0 = vcmp.lt.s32.totalorder %v3310_v1, 4 }
 0x18b   : > { %v1246_v58 = vsel %vm4637_vm12, %v1231_v14, %v919_v52  ;;  %v1558_v29 = vsel %vm6057_vm8, %v1539_v42, %v1540_v36  ;;  %vm4688_vm10 = vmand %vm6058_vm0, %vm5737_vm15  ;;  %vm1342_vm12 = vcmp.eq.s32.totalorder %v4391_v63, 1  ;;  %v5739_v0 = vrot.slane %v6037_v61, 3  ;;  %2062 = vrot.lane.b32.xlu2 %v6064_v51, %s2834_s16  ;;  %v6085_v42 = vld [vmem:[#allocation42_spill] sm:$0xff]  ;;  %v4791_v52 = vpop.f32.mrf.mxu3 }
 0x18c   : > { %v1573_v30 = vsel %vm1524_vm4, %v1558_v29, %v1246_v58  ;;  %v1572_v43 = vsel %vm1523_vm5, %v4528_v16, %v1245_v19  ;;  %vm5742_vm14 = vcmp.eq.s32.totalorder %v6061_v56, 1  ;;  %vm4700_vm8 = vmand %vm3394_vm9, %vm1015_vm7  ;;  %vm1341_vm0 = vcmp.eq.s32.totalorder %v1307_v20, 1 }
 0x18d   : > { %v1715_v32 = vpack.c.bf16 %v1573_v30, %v1572_v43  ;;  %vm5741_vm5 = vcmp.eq.s32.totalorder %v6066_v8, 1  ;;  %vm6067_vm4 = vcmp.lt.s32.totalorder %v3320_v28, 6  ;;  %v752_v19 = vsel %vm4688_vm10, %v738_v59, 0.0  ;;  %vm4719_vm7 = vmand %vm3394_vm9, %vm1014_vm2  ;;  %2060 = vrot.lane.b32.xlu0 %v6037_v61, %s2834_s16  ;;  %v6074_v30 = vld [vmem:[#allocation33_spill] sm:$0xff]  ;;  %v1637_v31 = vpop.permute.xlu1 %1636 }
 0x18e   : > { %2463 = vrot.lane.b32.xlu1 %v6065_v54, %s2835_s19  ;;  %v1064_v16 = vsel %vm6067_vm4, %v1047_v27, %v5738_v17  ;;  %v1541_v47 = vrot.slane %v6037_v61, 4  ;;  %v558_v14 = vrot.slane %v6037_v61, 7  ;;  %v753_v58 = vsel %vm4649_vm11, %v737_v15, 0.0  ;;  %vm6070_vm10 = vmmov %vm6067_vm4  ;;  %v1161_v10 = vpop.permute.xlu2 %1160 }
 0x18f   : > { %v1065_v59 = vsel %vm6070_vm10, %v1046_v26, %v1047_v27  ;;  %vm4737_vm2 = vmand %vm3559_vm6, %vm1342_vm12  ;;  %vm6073_vm4 = vcmask 130048   ;;  %v5745_v43 = vrot.slane %v6074_v30, 5  ;;  %v5748_v15 = vrot.slane %v6064_v51, 7 }
 0x190   : > { %2733 = vmatmul.msk.bf16.gmra.mxu2 %vm6073_vm4, %v1715_v32  ;;  %vm6075_vm11 = vcmp.lt.s32.totalorder %v3320_v28, 5  ;;  %vm4751_vm12 = vmand %vm3559_vm6, %vm1341_vm0  ;;  %vm1185_vm10 = vcmp.eq.s32.totalorder %v1161_v10, 1  ;;  %vm1669_vm4 = vcmp.eq.s32.totalorder %v1637_v31, 1  ;;  %v1634_v27 = vpop.permute.xlu0 %1633  ;;  %v1080_v54 = vsel %vm4700_vm8, %v1064_v16, %v753_v58 }
 0x191   : > { %v1391_v26 = vsel %vm6075_vm11, %v1374_v18, %v5739_v0  ;;  %v6078_v32 = vrot.slane %v5999_v53, 3  ;;  %vm6079_vm15 = vmmov %vm6075_vm11  ;;  %v6082_v0 = vld [vmem:[#allocation34_spill] sm:$0xff]  ;;  %vm6084_vm0 = vcmp.lt.s32.totalorder %v3320_v28, 3  ;;  %vm1668_vm8 = vcmp.eq.s32.totalorder %v1634_v27, 1 }
 0x192   : > { %vm4763_vm11 = vmand %vm3559_vm6, %vm1185_vm10  ;;  %v6083_v44 = vrot.slane %v6082_v0, 5  ;;  %v1079_v53 = vsel %vm4719_vm7, %v1065_v59, %v752_v19  ;;  %v6087_v19 = vld [vmem:[#allocation31_spill] sm:$0xff]  ;;  %v887_v58 = vrot.slane %v6037_v61, 6  ;;  %v6091_v31 = vrot.slane %v6027_v9, 7 }
 0x193   : > { %v1392_v17 = vsel %vm6079_vm15, %v6078_v32, %v1374_v18  ;;  %v1407_v18 = vsel %vm4737_vm2, %v1391_v26, %v1080_v54  ;;  %vm6086_vm15 = vcmp.lt.s32.totalorder %v3320_v28, 4  ;;  %vm1685_vm10 = vmand %vm3637_vm13, %vm1669_vm4  ;;  %vm855_vm7 = vcmp.eq.s32.totalorder %v6087_v19, 1  ;;  %2066 = vrot.lane.b32.xlu2 %v6082_v0, %s2834_s16  ;;  %v6096_v32 = vld [vmem:[#allocation48_spill] sm:$0xff] }
 0x194   : > { %v4773_v10 = vsel %vm6084_vm0, %v5745_v43, %v6083_v44  ;;  %v1557_v44 = vsel %vm6086_vm15, %v1540_v36, %v1541_v47  ;;  %v1406_v59 = vsel %vm4751_vm12, %v1392_v17, %v1079_v53  ;;  %vm1684_vm2 = vmand %vm3637_vm13, %vm1668_vm8  ;;  %vm6088_vm0 = vcmp.lt.s32.totalorder %v3310_v1, 4 }
 0x195   : > { %v1701_v49 = vsel %vm1685_vm10, %v1557_v44, %v1407_v18  ;;  %vm4803_vm15 = vmand %vm6088_vm0, %vm5742_vm14  ;;  %vm6092_vm4 = vcmp.lt.s32.totalorder %v3320_v28, 1  ;;  %v5746_v63 = vrot.slane %v6064_v51, 6  ;;  %vm1182_vm12 = vcmp.eq.s32.totalorder %v4482_v4, 1  ;;  %2064 = vrot.lane.b32.xlu0 %v6074_v30, %s2834_s16  ;;  %v1479_v19 = vpop.permute.xlu1 %1478 }
 0x196   : > { %v576_v26 = vsel %vm6092_vm4, %v6091_v31, %v558_v14  ;;  %v1700_v17 = vsel %vm1684_vm2, %v1558_v29, %v1406_v59  ;;  %vm6093_vm8 = vmmov %vm6088_vm0  ;;  %v1214_v54 = vrot.slane %v6037_v61, 5  ;;  %2465 = vrot.lane.b32.xlu1 %v6096_v32, %s2835_s19  ;;  %v6098_v29 = vld [vmem:[#allocation25_spill] sm:$0xff]  ;;  %v6099_v18 = vrot.slane %v6027_v9, 6 }
 0x197   : > { %vm4817_vm10 = vmand %vm6093_vm8, %vm5741_vm5  ;;  %v1895_v53 = vpack.c.bf16 %v1701_v49, %v1700_v17  ;;  %vm856_vm0 = vcmp.eq.s32.totalorder %v6098_v29, 1  ;;  %vm6100_vm8 = vcmp.lt.s32.totalorder %v3320_v28, 2  ;;  %v593_v49 = vsel %vm4803_vm15, %v576_v26, 0.0 }
 0x198   : > { %vm6097_vm2 = vmmov %vm6092_vm4  ;;  %v903_v59 = vsel %vm6100_vm8, %v6099_v18, %v887_v58  ;;  %vm6103_vm5 = vcmask 130048   ;;  %v5744_v31 = vrot.slane %v6064_v51, 5  ;;  %v1155_v17 = vpop.permute.xlu0 %1154  ;;  %v5749_v26 = vrot.slane %v6064_v51, 4  ;;  %v6108_v18 = vld [vmem:[#allocation52_spill] sm:$0xff] }
 0x199   : > { %v575_v4 = vsel %vm6097_vm2, %v558_v14, %v5748_v15  ;;  %vm871_vm4 = vmand %vm3394_vm9, %vm855_vm7  ;;  %2747 = vmatmul.msk.bf16.gmra.mxu3 %vm6103_vm5, %v1895_v53  ;;  %vm1509_vm7 = vcmp.eq.s32.totalorder %v1479_v19, 1  ;;  %vm6105_vm5 = vcmp.lt.s32.totalorder %v3320_v28, 3  ;;  %vm1183_vm14 = vcmp.eq.s32.totalorder %v1155_v17, 1  ;;  %v6110_v17 = vld [vmem:[#allocation19_spill] sm:$0xff] }
 0x19a   : > { %vm4845_vm2 = vmand %vm3559_vm6, %vm1182_vm12  ;;  %v594_v32 = vsel %vm4817_vm10, %v575_v4, 0.0  ;;  %v920_v29 = vsel %vm871_vm4, %v903_v59, %v593_v49  ;;  %v1230_v53 = vsel %vm6105_vm5, %v1213_v2, %v1214_v54  ;;  %v4889_v59 = vpop.permute.xlu2 %1318  ;;  %v6109_v49 = vld [vmem:[#allocation35_spill] sm:$0xff]  ;;  %v1377_v43 = vrot.slane %v6074_v30, 3 }
 0x19b   : > { %vm6104_vm15 = vmmov %vm6100_vm8  ;;  %vm1510_vm8 = vcmp.eq.s32.totalorder %v4543_v3, 1  ;;  %v1247_v27 = vsel %vm4845_vm2, %v1230_v53, %v920_v29  ;;  %vm6107_vm2 = vcmp.lt.s32.totalorder %v3320_v28, 4  ;;  %2070 = vrot.lane.b32.xlu2 %v3341_v35, %s2834_s16  ;;  %v1049_v29 = vrot.slane %v6064_v51, 2  ;;  %v6113_v53 = vld [vmem:[#allocation43_spill] sm:$0xff] }
 0x19c   : > { %v902_v36 = vsel %vm6104_vm15, %v887_v58, %v5746_v63  ;;  %vm872_vm12 = vmand %vm3394_vm9, %vm856_vm0  ;;  %v1556_v2 = vsel %vm6107_vm2, %v1541_v47, %v5749_v26  ;;  %v722_v47 = vrot.slane %v6064_v51, 1  ;;  %vm6121_vm2 = vcmp.lt.s32.totalorder %v3320_v28, 7 }
 0x19d   : > { %vm1525_vm10 = vmand %vm3637_vm13, %vm1509_vm7  ;;  %v921_v4 = vsel %vm872_vm12, %v902_v36, %v594_v32  ;;  %2068 = vrot.lane.b32.xlu0 %v6109_v49, %s2834_s16  ;;  %v1316_v19 = vpop.permute.xlu1 %1315  ;;  %vm6111_vm7 = vcmask 130048   ;;  %v6112_v36 = vld [vmem:[#allocation21_spill] sm:$0xff] }
 0x19e   : > { %v1574_v58 = vsel %vm1525_vm10, %v1557_v44, %v1247_v27  ;;  %vm1199_vm0 = vmand %vm3559_vm6, %vm1183_vm14  ;;  %v4883_v44 = vpop.f32.mrf.mxu3  ;;  %2467 = vrot.lane.b32.xlu1 %v6108_v18, %s2835_s19  ;;  %vm5751_vm14 = vcmp.eq.s32.totalorder %v6110_v17, 1  ;;  %vm5743_vm12 = vcmp.eq.s32.totalorder %v6112_v36, 1  ;;  %v5747_v27 = vrot.slane %v6074_v30, 1 }
 0x19f   : > { %vm6106_vm4 = vmmov %vm6105_vm5  ;;  %vm1016_vm5 = vcmp.eq.s32.totalorder %v6113_v53, 1  ;;  %v6125_v53 = vrot.slane %v6037_v61, 2 }
 0x1a0   : > { %v1229_v9 = vsel %vm6106_vm4, %v1214_v54, %v5744_v31  ;;  %vm1526_vm15 = vmand %vm3637_vm13, %vm1510_vm8  ;;  %v1313_v32 = vpop.permute.xlu0 %1312  ;;  %vm6114_vm8 = vcmp.lt.s32.totalorder %v3310_v1, 4  ;;  %v6127_v31 = vld [vmem:[#allocation44_spill] sm:$0xff] }
 0x1a1   : > { %v1248_v3 = vsel %vm1199_vm0, %v1229_v9, %v921_v4  ;;  %vm4904_vm10 = vmand %vm6114_vm8, %vm5751_vm14  ;;  %v5750_v4 = vrot.slane %v6074_v30, 2  ;;  %vm1343_vm0 = vcmp.eq.s32.totalorder %v1313_v32, 1  ;;  %v6132_v9 = vrot.slane %v6037_v61, 3 }
 0x1a2   : > { %v1575_v54 = vsel %vm1526_vm15, %v1556_v2, %v1248_v3  ;;  %vm6117_vm4 = vmmov %vm6114_vm8  ;;  %v6120_v3 = vrot.slane %v6037_v61, 1  ;;  %v4964_v26 = vpop.permute.xlu2 %1648 }
 0x1a3   : > { %v1716_v14 = vpack.c.bf16 %v1575_v54, %v1574_v58  ;;  %vm4913_vm15 = vmand %vm6117_vm4, %vm5743_vm12  ;;  %v6122_v54 = vld [vmem:[#allocation54_spill] sm:$0xff]  ;;  %vm6126_vm4 = vcmp.lt.s32.totalorder %v3320_v28, 6  ;;  %vm1344_vm12 = vcmp.eq.s32.totalorder %v1316_v19, 1  ;;  %2471 = vrot.lane.b32.xlu2 %v6127_v31, %s2835_s19  ;;  %v6135_v19 = vld [vmem:[#allocation8_spill] sm:$0xff] }
 0x1a4   : > { %v736_v18 = vsel %vm6121_vm2, %v6120_v3, %v722_v47  ;;  %vm4925_vm8 = vmand %vm3394_vm9, %vm1016_vm5  ;;  %v1063_v16 = vsel %vm6126_vm4, %v6125_v53, %v1049_v29  ;;  %v6128_v3 = vld [vmem:[#allocation37_spill] sm:$0xff]  ;;  %vm5753_vm14 = vcmp.eq.s32.totalorder %v6135_v19, 1 }
 0x1a5   : > { %2734 = vmatmul.msk.bf16.gmra.mxu2 %vm6111_vm7, %v1716_v14  ;;  %vm1017_vm7 = vcmp.eq.s32.totalorder %v6122_v54, 1  ;;  %v1376_v14 = vrot.slane %v6064_v51, 3  ;;  %v735_v54 = vsel %vm6121_vm2, %v722_v47, %v5747_v27  ;;  %vm4944_vm5 = vmand %vm3559_vm6, %vm1343_vm0  ;;  %2072 = vrot.lane.b32.xlu0 %v3425_v41, %s2834_s16  ;;  %v754_v53 = vsel %vm4913_vm15, %v736_v18, 0.0 }
 0x1a6   : > { %2469 = vrot.lane.b32.xlu1 %v6128_v3, %s2835_s19  ;;  %v4950_v31 = vpop.f32.mrf.mxu3  ;;  %vm1033_vm4 = vmand %vm3394_vm9, %vm1017_vm7  ;;  %vm6131_vm2 = vcmp.lt.s32.totalorder %v3320_v28, 6  ;;  %vm1670_vm0 = vcmp.eq.s32.totalorder %v4622_v45, 1  ;;  %v1158_v3 = vpop.permute.xlu1 %1157  ;;  %v1543_v27 = vrot.slane %v6074_v30, 4  ;;  %v1081_v15 = vsel %vm4925_vm8, %v1063_v16, %v754_v53 }
 0x1a7   : > { %v1062_v47 = vsel %vm6131_vm2, %v1049_v29, %v5750_v4  ;;  %vm1360_vm15 = vmand %vm3559_vm6, %vm1344_vm12  ;;  %vm6133_vm7 = vcmp.lt.s32.totalorder %v3320_v28, 5  ;;  %v755_v45 = vsel %vm4904_vm10, %v735_v54, 0.0  ;;  %v6136_v53 = vrot.slane %v6064_v51, 4 }
 0x1a8   : > { %v1390_v18 = vsel %vm6133_vm7, %v6132_v9, %v1376_v14  ;;  %v1643_v29 = vpop.permute.xlu0 %1642  ;;  %v1082_v16 = vsel %vm1033_vm4, %v1062_v47, %v755_v45  ;;  %vm1686_vm8 = vmand %vm3637_vm13, %vm1670_vm0  ;;  %vm6137_vm10 = vcmp.lt.s32.totalorder %v3320_v28, 4  ;;  %vm1184_vm0 = vcmp.eq.s32.totalorder %v1158_v3, 1 }
 0x1a9   : > { %v1408_v4 = vsel %vm4944_vm5, %v1390_v18, %v1081_v15  ;;  %vm1671_vm2 = vcmp.eq.s32.totalorder %v1643_v29, 1  ;;  %vm6134_vm12 = vmmov %vm6133_vm7  ;;  %v1555_v58 = vsel %vm6137_vm10, %v6136_v53, %v1543_v27  ;;  %v6138_v15 = vld [vmem:[#allocation40_spill] sm:$0xff]  ;;  %vm6139_vm7 = vcmp.lt.s32.totalorder %v3310_v1, 4 }
 0x1aa   : > { %v1389_v61 = vsel %vm6134_vm12, %v1376_v14, %v1377_v43  ;;  %vm1687_vm5 = vmand %vm3637_vm13, %vm1671_vm2  ;;  %vm857_vm4 = vcmp.eq.s32.totalorder %v6138_v15, 1  ;;  %v1702_v54 = vsel %vm1686_vm8, %v1556_v2, %v1408_v4  ;;  %v6140_v14 = vrot.slane %v6074_v30, 7  ;;  %v6149_v15 = vld [vmem:[#allocation14_spill] sm:$0xff] }
 0x1ab   : > { %v1409_v32 = vsel %vm1360_vm15, %v1389_v61, %v1082_v16  ;;  %vm544_vm12 = vmand %vm6139_vm7, %vm5753_vm14  ;;  %v6141_v9 = vrot.slane %v6064_v51, 7  ;;  %vm6142_vm15 = vcmp.lt.s32.totalorder %v3320_v28, 1  ;;  %v6143_v29 = vrot.slane %v6074_v30, 6 }
 0x1ac   : > { %v1703_v63 = vsel %vm1687_vm5, %v1555_v58, %v1409_v32  ;;  %vm873_vm2 = vmand %vm3394_vm9, %vm857_vm4  ;;  %v6144_v2 = vrot.slane %v6064_v51, 6  ;;  %vm6145_vm8 = vcmp.lt.s32.totalorder %v3320_v28, 2  ;;  %vm6146_vm10 = vcmask 130048  }
 0x1ad   : > { %v1896_v47 = vpack.c.bf16 %v1703_v63, %v1702_v54  ;;  %v574_v18 = vsel %vm6142_vm15, %v6141_v9, %v6140_v14  ;;  %vm5012_vm5 = vmand %vm3559_vm6, %vm1184_vm0  ;;  %v724_v53 = vrot.slane %v6082_v0, 1  ;;  %vm5752_vm15 = vcmp.eq.s32.totalorder %v6149_v15, 1  ;;  %v5020_v54 = vpop.permute.xlu2 %1327 }
 0x1ae   : > { %v901_v4 = vsel %vm6145_vm8, %v6144_v2, %v6143_v29  ;;  %v1488_v3 = vpop.permute.xlu1 %1487  ;;  %v5016_v61 = vpop.f32.mrf.mxu3  ;;  %v595_v32 = vsel %vm544_vm12, %v574_v18, 0.0  ;;  %v6151_v14 = vrot.slane %v6064_v51, 5  ;;  %vm6152_vm0 = vcmp.lt.s32.totalorder %v3320_v28, 3  ;;  %v6155_v2 = vld [vmem:[#allocation53_spill] sm:$0xff] }
 0x1af   : > { %2748 = vmatmul.msk.bf16.gmra.mxu3 %vm6146_vm10, %v1896_v47  ;;  %vm1512_vm7 = vcmp.eq.s32.totalorder %v1488_v3, 1  ;;  %v922_v63 = vsel %vm873_vm2, %v901_v4, %v595_v32  ;;  %v6150_v47 = vrot.slane %v6074_v30, 5  ;;  %v6153_v18 = vrot.slane %v6082_v0, 4 }
 0x1b0   : > { %v1485_v16 = vpop.permute.xlu0 %1484  ;;  %vm1528_vm8 = vmand %vm3637_vm13, %vm1512_vm7  ;;  %vm6154_vm12 = vcmp.lt.s32.totalorder %v3320_v28, 4  ;;  %vm1018_vm10 = vcmp.eq.s32.totalorder %v6155_v2, 1  ;;  %v6156_v51 = vsel %vm4763_vm11, %v4773_v10, %v6085_v42  ;;  %v1052_v32 = vrot.slane %v6109_v49, 2  ;;  %v6160_v42 = vld [vmem:[#allocation45_spill] sm:$0xff] }
 0x1b1   : > { %vm1511_vm4 = vcmp.eq.s32.totalorder %v1485_v16, 1  ;;  %v1228_v9 = vsel %vm6152_vm0, %v6151_v14, %v6150_v47  ;;  %v1554_v29 = vsel %vm6154_vm12, %v1543_v27, %v6153_v18  ;;  %v1051_v16 = vrot.slane %v6082_v0, 2  ;;  %vm1034_vm12 = vmand %vm3394_vm9, %vm1018_vm10 }
 0x1b2   : > { %v1249_v4 = vsel %vm5012_vm5, %v1228_v9, %v922_v63  ;;  %v1577_v3 = vsel %vm1528_vm8, %v1554_v29, %v6156_v51  ;;  %vm1527_vm2 = vmand %vm3637_vm13, %vm1511_vm4  ;;  %vm1345_vm7 = vcmp.eq.s32.totalorder %v4889_v59, 1  ;;  %vm6157_vm5 = vcmp.lt.s32.totalorder %v3310_v1, 4  ;;  %v6163_v59 = vld [vmem:[#allocation24_spill] sm:$0xff] }
 0x1b3   : > { %v1576_v27 = vsel %vm1527_vm2, %v1555_v58, %v1249_v4  ;;  %vm5051_vm0 = vmand %vm6157_vm5, %vm5752_vm15  ;;  %v725_v10 = vrot.slane %v6109_v49, 1  ;;  %vm1019_vm11 = vcmp.eq.s32.totalorder %v6160_v42, 1  ;;  %v6161_v45 = vrot.slane %v6074_v30, 1 }
 0x1b4   : > { %vm6162_vm4 = vcmp.lt.s32.totalorder %v3320_v28, 7  ;;  %v1717_v47 = vpack.c.bf16 %v1577_v3, %v1576_v27  ;;  %vm692_vm8 = vcmp.eq.s32.totalorder %v6163_v59, 1  ;;  %v6164_v58 = vrot.slane %v6074_v30, 2  ;;  %vm5072_vm15 = vmand %vm3559_vm6, %vm1345_vm7 }
 0x1b5   : > { %v734_v63 = vsel %vm6162_vm4, %v6161_v45, %v724_v53  ;;  %vm6165_vm2 = vcmp.lt.s32.totalorder %v3320_v28, 6  ;;  %vm6166_vm5 = vmmov %vm6162_vm4  ;;  %v1378_v2 = vrot.slane %v6082_v0, 3  ;;  %vm6169_vm4 = vcmask 130048  }
 0x1b6   : > { %v1061_v14 = vsel %vm6165_vm2, %v6164_v58, %v1051_v16  ;;  %v733_v9 = vsel %vm6166_vm5, %v724_v53, %v725_v10  ;;  %2735 = vmatmul.msk.bf16.gmra.mxu2 %vm6169_vm4, %v1717_v47  ;;  %v1646_v4 = vpop.permute.xlu1 %1645  ;;  %v1379_v51 = vrot.slane %v6109_v49, 3  ;;  %vm1035_vm10 = vmand %vm3394_vm9, %vm1019_vm11  ;;  %v1060_v53 = vsel %vm6165_vm2, %v1051_v16, %v1052_v32  ;;  %v1879_v45 = vpop.f32.mrf.mxu3 }
 0x1b7   : > { %v756_v3 = vsel %vm5051_vm0, %v734_v63, 0.0  ;;  %vm1672_vm7 = vcmp.eq.s32.totalorder %v1646_v4, 1  ;;  %vm6170_vm5 = vcmp.lt.s32.totalorder %v3310_v1, 4  ;;  %vm6171_vm11 = vcmp.lt.s32.totalorder %v3320_v28, 5 }
 0x1b8   : > { %v1322_v27 = vpop.permute.xlu0 %1321  ;;  %vm708_vm4 = vmand %vm6170_vm5, %vm692_vm8  ;;  %v1083_v0 = vsel %vm1034_vm12, %v1061_v14, %v756_v3  ;;  %v1388_v42 = vsel %vm6171_vm11, %v1377_v43, %v1378_v2  ;;  %vm1673_vm14 = vcmp.eq.s32.totalorder %v4964_v26, 1  ;;  %v5105_v43 = vadd.f32 %v1879_v45, %v4791_v52  ;;  %v5109_v26 = vpop.permute.xlu2 %1003  ;;  %v6173_v14 = vld [vmem:[#allocation57_spill] sm:$0xff]  ;;  %v6181_v45 = vld [vmem:[#allocation55_spill] sm:$0xff] }
 0x1b9   : > { %vm1346_vm3 = vcmp.eq.s32.totalorder %v1322_v27, 1  ;;  %v757_v16 = vsel %vm708_vm4, %v733_v9, 0.0  ;;  %v1410_v20 = vsel %vm5072_vm15, %v1388_v42, %v1083_v0  ;;  %vm1688_vm0 = vmand %vm3637_vm13, %vm1672_vm7  ;;  %v726_v18 = vrot.slane %v3341_v35, 1 }
 0x1ba   : > { %v1084_v63 = vsel %vm1035_vm10, %v1060_v53, %v757_v16  ;;  %v1704_v47 = vsel %vm1688_vm0, %v1554_v29, %v1410_v20  ;;  %vm1362_vm12 = vmand %vm3559_vm6, %vm1346_vm3  ;;  %v727_v29 = vrot.slane %v3425_v41, 1  ;;  %v6174_v53 = vld [vmem:[#allocation16_spill] sm:$0xff]  ;;  %vm6175_vm15 = vcmask 130048   ;;  %v6180_v16 = vld [vmem:[#allocation23_spill] sm:$0xff] }
 0x1bb   : > { %vm6172_vm2 = vmmov %vm6171_vm11  ;;  %vm694_vm3 = vcmp.eq.s32.totalorder %v6174_v53, 1  ;;  %v1054_v27 = vrot.slane %v3425_v41, 2  ;;  %vm6176_vm10 = vcmp.lt.s32.totalorder %v3310_v1, 4  ;;  %vm6179_vm4 = vcmp.lt.s32.totalorder %v3320_v28, 7 }
 0x1bc   : > { %v1387_v30 = vsel %vm6172_vm2, %v1378_v2, %v1379_v51  ;;  %vm1689_vm5 = vmand %vm3637_vm13, %vm1673_vm14  ;;  %v1053_v2 = vrot.slane %v3341_v35, 2  ;;  %v731_v42 = vsel %vm6179_vm4, %v726_v18, %v727_v29  ;;  %vm5755_vm11 = vcmp.eq.s32.totalorder %v6180_v16, 1 }
 0x1bd   : > { %v1411_v58 = vsel %vm1362_vm12, %v1387_v30, %v1084_v63  ;;  %vm5122_vm7 = vmand %vm6176_vm10, %vm694_vm3  ;;  %vm1020_vm0 = vcmp.eq.s32.totalorder %v6181_v45, 1  ;;  %v1381_v30 = vrot.slane %v3425_v41, 3 }
 0x1be   : > { %v1705_v9 = vsel %vm1689_vm5, %v6173_v14, %v1411_v58  ;;  %v1325_v3 = vpop.permute.xlu1 %1324  ;;  %v1881_v20 = vpop.f32.mrf.mxu3  ;;  %v759_v58 = vsel %vm5122_vm7, %v731_v42, 0.0  ;;  %vm6182_vm5 = vmmov %vm6176_vm10  ;;  %vm1348_vm10 = vcmp.eq.s32.totalorder %v5020_v54, 1  ;;  %v6192_v14 = vld [vmem:[#allocation56_spill] sm:$0xff] }
 0x1bf   : > { %v1897_v4 = vpack.c.bf16 %v1705_v9, %v1704_v47  ;;  %v5135_v63 = vadd.f32 %v1881_v20, %v4883_v44  ;;  %vm1347_vm2 = vcmp.eq.s32.totalorder %v1325_v3, 1  ;;  %v1380_v47 = vrot.slane %v3341_v35, 3  ;;  %vm1036_vm7 = vmand %vm3394_vm9, %vm1020_vm0 }
 0x1c0   : > { %v1001_v52 = vpop.permute.xlu0 %1000  ;;  %v1334_v9 = vpop.permute.xlu2 %1333  ;;  %vm1364_vm0 = vmand %vm3559_vm6, %vm1348_vm10  ;;  %v6197_v3 = vrot.slane %v3203_v50, 1 }
 0x1c1   : > { %2749 = vmatmul.msk.bf16.gmra.mxu3 %vm6175_vm15, %v1897_v4  ;;  %vm1021_vm14 = vcmp.eq.s32.totalorder %v1001_v52, 1  ;;  %vm5145_vm15 = vmand %vm6182_vm5, %vm5755_vm11 }
 0x1c2   : > { %vm1037_vm12 = vmand %vm3394_vm9, %vm1021_vm14 }
 0x1c3   : > { %vm6185_vm14 = vmmov %vm6179_vm4  ;;  %vm6186_vm4 = vcmp.lt.s32.totalorder %v3320_v28, 6 }
 0x1c4   : > { %v732_v44 = vsel %vm6185_vm14, %v725_v10, %v726_v18  ;;  %v1058_v35 = vsel %vm6186_vm4, %v1053_v2, %v1054_v27  ;;  %vm5160_vm5 = vmand %vm3559_vm6, %vm1347_vm2 }
 0x1c5   : > { %v1086_v4 = vsel %vm1037_vm12, %v1058_v35, %v759_v58  ;;  %v758_v54 = vsel %vm5145_vm15, %v732_v44, 0.0  ;;  %vm6189_vm14 = vmmov %vm6186_vm4  ;;  %vm6190_vm12 = vcmp.lt.s32.totalorder %v3320_v28, 5  ;;  %v728_v58 = vrot.slane %v3427_v48, 1 }
 0x1c6   : > { %v1655_v52 = vpop.permute.xlu1 %1654  ;;  %v1059_v10 = vsel %vm6189_vm14, %v1052_v32, %v1053_v2  ;;  %v1385_v18 = vsel %vm6190_vm12, %v1380_v47, %v1381_v30  ;;  %vm6191_vm4 = vmmov %vm6190_vm12  ;;  %v1884_v2 = vpop.f32.mrf.mxu3  ;;  %vm6199_vm12 = vcmask 130048  }
 0x1c7   : > { %vm1675_vm2 = vcmp.eq.s32.totalorder %v1655_v52, 1  ;;  %v1085_v42 = vsel %vm1036_vm7, %v1059_v10, %v758_v54  ;;  %v1386_v20 = vsel %vm6191_vm4, %v1379_v51, %v1380_v47  ;;  %v1413_v45 = vsel %vm1364_vm0, %v1385_v18, %v1086_v4  ;;  %v6193_v47 = vld [vmem:[#allocation26_spill] sm:$0xff] }
 0x1c8   : > { %v1652_v0 = vpop.permute.xlu0 %1651  ;;  %vm1691_vm15 = vmand %vm3637_vm13, %vm1675_vm2  ;;  %v1412_v49 = vsel %vm5160_vm5, %v1386_v20, %v1085_v42  ;;  %v5188_v51 = vadd.f32 %v1884_v2, %v4950_v31  ;;  %vm696_vm7 = vcmp.eq.s32.totalorder %v6193_v47, 1  ;;  %v1055_v4 = vrot.slane %v3427_v48, 2  ;;  %v5205_v10 = vpop.permute.xlu2 %2044  ;;  %v6200_v42 = vld [vmem:[#allocation28_spill] sm:$0xff] }
 0x1c9   : > { %vm1674_vm11 = vcmp.eq.s32.totalorder %v1652_v0, 1  ;;  %v1707_v32 = vsel %vm1691_vm15, %v3850_v34, %v1413_v45  ;;  %vm6194_vm5 = vcmp.lt.s32.totalorder %v3310_v1, 4  ;;  %v1382_v54 = vrot.slane %v3427_v48, 3 }
 0x1ca   : > { %vm1690_vm10 = vmand %vm3637_vm13, %vm1674_vm11  ;;  %vm6198_vm11 = vcmp.lt.s32.totalorder %v3320_v28, 7  ;;  %vm1350_vm0 = vcmp.eq.s32.totalorder %v1334_v9, 1  ;;  %vm695_vm4 = vcmp.eq.s32.totalorder %v6200_v42, 1  ;;  %v6201_v20 = vrot.slane %v3203_v50, 2 }
 0x1cb   : > { %v1706_v44 = vsel %vm1690_vm10, %v6192_v14, %v1412_v49  ;;  %vm5196_vm14 = vmand %vm6194_vm5, %vm696_vm7  ;;  %v745_v52 = vsel %vm6198_vm11, %v728_v58, %v6197_v3  ;;  %vm6202_vm10 = vcmp.lt.s32.totalorder %v3320_v28, 6  ;;  %vm1022_vm5 = vcmp.eq.s32.totalorder %v5109_v26, 1  ;;  %v1770_v3 = vpop.f32.mrf.mxu1 }
 0x1cc   : > { %v1898_v35 = vpack.c.bf16 %v1707_v32, %v1706_v44  ;;  %v761_v0 = vsel %vm5196_vm14, %v745_v52, 0.0  ;;  %v1072_v48 = vsel %vm6202_vm10, %v1055_v4, %v6201_v20  ;;  %vm5220_vm11 = vmand %vm3559_vm6, %vm1350_vm0  ;;  %v6205_v32 = vrot.slane %v3203_v50, 3 }
 0x1cd   : > { %vm6206_vm14 = vcmp.lt.s32.totalorder %v3320_v28, 5  ;;  %vm6207_vm0 = vcmp.lt.s32.totalorder %v3310_v1, 4  ;;  %vm1038_vm10 = vmand %vm3394_vm9, %vm1022_vm5 }
 0x1ce   : > { %v1331_v31 = vpop.permute.xlu1 %1330  ;;  %v1886_v9 = vpop.f32.mrf.mxu3  ;;  %v1399_v2 = vsel %vm6206_vm14, %v1382_v54, %v6205_v32 }
 0x1cf   : > { %v5229_v14 = vadd.f32 %v1886_v9, %v5016_v61 }
 0x1d0   : > { %v1007_v18 = vpop.permute.xlu0 %1006  ;;  %v5259_v38 = vpop.permute.xlu2 %2048 }
 0x1d1   : > { %2750 = vmatmul.msk.bf16.gmra.mxu3 %vm6199_vm12, %v1898_v35  ;;  %vm1023_vm2 = vcmp.eq.s32.totalorder %v1007_v18, 1  ;;  %vm1349_vm12 = vcmp.eq.s32.totalorder %v1331_v31, 1  ;;  %v1849_v26 = vpop.f32.mrf.mxu2  ;;  %v2140_v18 = vrot.slane %v5205_v10, 1 }
 0x1d2   : > { %vm1039_vm15 = vmand %vm3394_vm9, %vm1023_vm2  ;;  %vm6212_vm9 = vcmp.lt.s32.totalorder %v3320_v28, 5 }
 0x1d3   : > { %v1088_v49 = vsel %vm1039_vm15, %v1072_v48, %v761_v0  ;;  %vm711_vm2 = vmand %vm6207_vm0, %vm695_vm4  ;;  %vm6208_vm15 = vcmp.lt.s32.totalorder %v3320_v28, 7  ;;  %v1384_v57 = vsel %vm6212_vm9, %v1381_v30, %v1382_v54  ;;  %v2092_v30 = vrot.slane %v5205_v10, 7 }
 0x1d4   : > { %v1415_v44 = vsel %vm5220_vm11, %v1399_v2, %v1088_v49  ;;  %v730_v50 = vsel %vm6208_vm15, %v727_v29, %v728_v58  ;;  %vm5245_vm14 = vmand %vm3559_vm6, %vm1349_vm12  ;;  %vm6211_vm11 = vcmp.lt.s32.totalorder %v3320_v28, 6  ;;  %v1850_v0 = vadd.f32 %v1849_v26, %v1770_v3  ;;  %v1772_v49 = vpop.f32.mrf.mxu1  ;;  %v5278_v2 = vld [vmem:[%s5646_s5 + $0x1] ss:$0 sm:$0xff] }
 0x1d5   : > { %v760_v34 = vsel %vm711_vm2, %v730_v50, 0.0  ;;  %v1057_v1 = vsel %vm6211_vm11, %v1054_v27, %v1055_v4  ;;  %vm6213_vm2 = vcmask 130048  }
 0x1d6   : > { %v1661_v35 = vpop.permute.xlu1 %1660  ;;  %v1087_v58 = vsel %vm1038_vm10, %v1057_v1, %v760_v34  ;;  %vm6215_vm10 = vcmp.eq.s32.totalorder %v3092_v25, 1 }
 0x1d7   : > { %vm1677_vm0 = vcmp.eq.s32.totalorder %v1661_v35, 1  ;;  %v1414_v52 = vsel %vm5245_vm14, %v1384_v57, %v1087_v58 }
 0x1d8   : > { %v1658_v29 = vpop.permute.xlu0 %1657  ;;  %vm1693_vm6 = vmand %vm3637_vm13, %vm1677_vm0  ;;  %v2051_v34 = vpop.permute.xlu2 %2050 }
 0x1d9   : > { %vm1676_vm5 = vcmp.eq.s32.totalorder %v1658_v29, 1  ;;  %v1709_v31 = vsel %vm1693_vm6, %v3976_v24, %v1415_v44  ;;  %v1851_v55 = vpop.f32.mrf.mxu2  ;;  %v6217_v29 = vld [vmem:[#allocation5_spill] sm:$0xff]  ;;  %vm6219_vm0 = vmmov %vm6208_vm15  ;;  %vm2292_vm6 = vcmask 31744  }
 0x1da   : > { %vm1692_vm12 = vmand %vm3637_vm13, %vm1676_vm5  ;;  %v1939_v27 = vpop.f32.mrf.mxu3  ;;  %vm6214_vm13 = vcmp.lt.s32.totalorder %v3320_v28, 1  ;;  %v1852_v3 = vadd.f32 %v1851_v55, %v1772_v49  ;;  %vm6218_vm11 = vcmp.eq.s32.totalorder %v6217_v29, 1  ;;  %vm6221_vm5 = vcmp.eq.s32.totalorder %v3152_v22, 1 }
 0x1db   : > { %v1708_v41 = vsel %vm1692_vm12, %v3856_v23, %v1414_v52  ;;  %v2142_v23 = vrot.slane %v5259_v38, 1  ;;  %v1979_v32 = vadd.f32 %v1939_v27, %v1850_v0  ;;  %vm6216_vm14 = vmmov %vm6214_vm13  ;;  %v2094_v52 = vrot.slane %v5259_v38, 7 }
 0x1dc   : > { %v1899_v4 = vpack.c.bf16 %v1709_v31, %v1708_v41  ;;  %vm6220_vm9 = vmmov %vm6219_vm0  ;;  %vm6222_vm12 = vcmp.eq.s32.totalorder %v3112_v40, 1 }
 0x1dd   : > { %v1996_v27 = vadd.f32 %v5278_v2, %v1979_v32 }
 0x1de   : > { %v5268_v54 = vpop.permute.xlu1 %2074 }
 0x1df   : > { %v2107_v20 = vrot.slane %v5268_v54, 7  ;;  %v2155_v24 = vrot.slane %v5268_v54, 1  ;;  %v2012_v32 = vmax.f32 %v1996_v27, 0.0 }
 0x1e0   : > { %v2047_v48 = vpop.permute.xlu0 %2046 }
 0x1e1   : > { %2751 = vmatmul.msk.bf16.gmra.mxu3 %vm6213_vm2, %v1899_v4  ;;  %v2093_v9 = vrot.slane %v2047_v48, 7  ;;  %v2141_v45 = vrot.slane %v2047_v48, 1  ;;  %v2123_v44 = vsel %vm6214_vm13, %v2107_v20, %v2092_v30  ;;  %v5288_v50 = vsel %vm6208_vm15, %v2155_v24, %v2140_v18  ;;  %vm6223_vm2 = vmmov %vm6214_vm13 }
 0x1e2   : > { %v2124_v61 = vsel %vm6215_vm10, %v2123_v44, -inf  ;;  %v1941_v35 = vpop.f32.mrf.mxu3  ;;  %v2095_v44 = vrot.slane %v2051_v34, 7  ;;  %vm6224_vm13 = vcmp.eq.s32.totalorder %v3088_v21, 1  ;;  %vm6225_vm15 = vmmov %vm6223_vm2  ;;  %v5324_v21 = vpop.permute.xlu2 %2054 }
 0x1e3   : > { %v2122_v26 = vsel %vm6216_vm14, %v2092_v30, %v2093_v9  ;;  %v2188_v1 = vmax.f32 %v2124_v61, %v5205_v10  ;;  %v2169_v57 = vsel %vm6219_vm0, %v2141_v45, %v2142_v23  ;;  %v2170_v25 = vsel %vm6220_vm9, %v2140_v18, %v2141_v45  ;;  %vm6226_vm10 = vmmov %vm6219_vm0 }
 0x1e4   : > { %v2125_v58 = vsel %vm6218_vm11, %v2122_v26, -inf  ;;  %v2172_v41 = vsel %vm6221_vm5, %v2170_v25, -inf  ;;  %v2173_v10 = vsel %vm6222_vm12, %v2169_v57, -inf  ;;  %v1980_v4 = vadd.f32 %v1941_v35, %v1852_v3  ;;  %v1775_v3 = vpop.f32.mrf.mxu1 }
 0x1e5   : > { %v2189_v31 = vmax.f32 %v2125_v58, %v2047_v48  ;;  %v2121_v30 = vsel %vm6223_vm2, %v2093_v9, %v2094_v52  ;;  %v2204_v0 = vmax.f32 %v2188_v1, %v2172_v41  ;;  %v2143_v45 = vrot.slane %v2051_v34, 1  ;;  %v1854_v58 = vpop.f32.mrf.mxu2 }
 0x1e6   : > { %v2458_v49 = vpop.permute.xlu1 %2457  ;;  %v1997_v18 = vadd.f32 %v5278_v2, %v1980_v4  ;;  %v2126_v61 = vsel %vm6224_vm13, %v2121_v30, -inf  ;;  %v2120_v1 = vsel %vm6225_vm15, %v2094_v52, %v2095_v44  ;;  %vm6227_vm14 = vcmask 130048   ;;  %vm6234_vm13 = vmmov %vm6219_vm0 }
 0x1e7   : > { %v2205_v55 = vmax.f32 %v2189_v31, %v2173_v10  ;;  %2772 = vmatmul.msk.bf16.vlgmr.msrb.gmra.mxu2 %vm2292_vm6, %v2458_v49  ;;  %v2221_v40 = vmul.f32 %v4432_v39, %v2204_v0  ;;  %v2168_v57 = vsel %vm6226_vm10, %v2142_v23, %v2143_v45  ;;  %v2190_v25 = vmax.f32 %v2126_v61, %v5259_v38  ;;  %vm6235_vm15 = vmmov %vm6219_vm0 }
 0x1e8   : > { %v5310_v48 = vpop.permute.xlu0 %2238  ;;  %v2013_v9 = vmax.f32 %v1997_v18, 0.0  ;;  %v2127_v10 = vsel %vm521_vm1, %v2120_v1, -inf  ;;  %vm6228_vm11 = vcmp.eq.s32.totalorder %v3170_v12, 1  ;;  %vm6229_vm9 = vcmp.eq.s32.totalorder %v3166_v11, 1  ;;  %vm6230_vm1 = vmmov %vm6223_vm2 }
 0x1e9   : > { %v2222_v22 = vmul.f32 %v4432_v39, %v2205_v55  ;;  %v2241_v26 = vadd.f32 %v5310_v48, %v2221_v40  ;;  %v2174_v52 = vsel %vm6228_vm11, %v2168_v57, -inf  ;;  %v2191_v38 = vmax.f32 %v2127_v10, %v2051_v34  ;;  %vm6231_vm5 = vmmov %vm6230_vm1 }
 0x1ea   : > { %v2276_v29 = vpack.c.bf16 %v2013_v9, %v2012_v32  ;;  %v2206_v23 = vmax.f32 %v2190_v25, %v2174_v52  ;;  %v2097_v12 = vrot.slane %v5324_v21, 7  ;;  %v1855_v57 = vadd.f32 %v1854_v58, %v1775_v3  ;;  %vm6238_vm11 = vmmov %vm6230_vm1 }
 0x1eb   : > { %v2242_v35 = vadd.f32 %v5310_v48, %v2222_v22  ;;  %v2257_v31 = vmax.f32 %v2241_v26, 0.0  ;;  %v5339_v26 = vpop.permute.xlu2 %2058  ;;  %vm6232_vm12 = vcmp.eq.s32.totalorder %v3062_v62, 1  ;;  %vm6233_vm2 = vcmp.eq.s32.totalorder %v3070_v6, 1 }
 0x1ec   : > { %2764 = vmatmul.msk.bf16.vlgmr.msrb.gmra.mxu1 %vm6227_vm14, %v2276_v29  ;;  %v2223_v33 = vmul.f32 %v4432_v39, %v2206_v23  ;;  %v1777_v40 = vpop.f32.mrf.mxu1  ;;  %vm6236_vm10 = vcmp.eq.s32.totalorder %v6006_v37, 1  ;;  %vm6237_vm14 = vcmp.eq.s32.totalorder %v5992_v60, 1  ;;  %v2099_v60 = vrot.slane %v5339_v26, 7 }
 0x1ed   : > { %v2258_v27 = vmax.f32 %v2242_v35, 0.0  ;;  %v1856_v32 = vpop.f32.mrf.mxu2  ;;  %v2145_v35 = vrot.slane %v5324_v21, 1 }
 0x1ee   : > { %v2243_v29 = vadd.f32 %v5310_v48, %v2223_v33 }
 0x1ef   : > { %v2284_v41 = vpack.c.bf16 %v2258_v27, %v2257_v31 }
 0x1f0   : > { %v2053_v4 = vpop.permute.xlu0 %2052  ;;  %v2460_v61 = vpop.permute.xlu1 %2459  ;;  %v2259_v58 = vmax.f32 %v2243_v29, 0.0 }
 0x1f1   : > { %v2144_v30 = vrot.slane %v2053_v4, 1  ;;  %2752 = vmatmul.msk.bf16.vlgmr.msrb.gmra.mxu0 %vm2292_vm6, %v2284_v41  ;;  %v2096_v49 = vrot.slane %v2053_v4, 7  ;;  %v1857_v41 = vadd.f32 %v1856_v32, %v1777_v40 }
 0x1f2   : > { %v1944_v0 = vpop.f32.mrf.mxu3 }
 0x1f3   : > { %v2167_v55 = vsel %vm6219_vm0, %v2143_v45, %v2144_v30  ;;  %v2118_v34 = vsel %vm6230_vm1, %v2096_v49, %v2097_v12  ;;  %v2119_v45 = vsel %vm6231_vm5, %v2095_v44, %v2096_v49  ;;  %v1981_v10 = vadd.f32 %v1944_v0, %v1855_v57  ;;  %vm6239_vm0 = vmmov %vm6230_vm1 }
 0x1f4   : > { %v2175_v18 = vsel %vm6229_vm9, %v2167_v55, -inf  ;;  %v2128_v31 = vsel %vm6232_vm12, %v2119_v45, -inf  ;;  %v2129_v44 = vsel %vm6233_vm2, %v2118_v34, -inf  ;;  %v2166_v52 = vsel %vm6235_vm15, %v2144_v30, %v2145_v35  ;;  %v1780_v6 = vpop.f32.mrf.mxu1  ;;  %v5369_v30 = vpop.permute.xlu2 %2062  ;;  %v5376_v34 = vld [vmem:[%s5646_s5 + $0x2] ss:$0 sm:$0xff]  ;;  %vm6241_vm1 = vmmov %vm6234_vm13 }
 0x1f5   : > { %v2207_v22 = vmax.f32 %v2191_v38, %v2175_v18  ;;  %v2192_v23 = vmax.f32 %v2128_v31, %v2053_v4  ;;  %v2193_v38 = vmax.f32 %v2129_v44, %v5324_v21  ;;  %v1998_v18 = vadd.f32 %v5278_v2, %v1981_v10 }
 0x1f6   : > { %v2176_v37 = vsel %vm6237_vm14, %v2166_v52, -inf  ;;  %vm6240_vm9 = vcmask 130048   ;;  %vm6242_vm5 = vcmp.eq.s32.totalorder %v6020_v46, 1  ;;  %vm6243_vm12 = vcmp.eq.s32.totalorder %v6023_v13, 1  ;;  %vm6248_vm14 = vmmov %vm6239_vm0 }
 0x1f7   : > { %v2224_v9 = vmul.f32 %v4432_v39, %v2207_v22  ;;  %2773 = vmatmul.msk.bf16.gmra.mxu2 %vm2292_vm6, %v2460_v61  ;;  %v2208_v4 = vmax.f32 %v2192_v23, %v2176_v37  ;;  %v2014_v61 = vmax.f32 %v1998_v18, 0.0  ;;  %vm6244_vm2 = vcmp.eq.s32.totalorder %v6039_v7, 1 }
 0x1f8   : > { %v5345_v11 = vpop.permute.xlu0 %2056  ;;  %vm6246_vm15 = vcmp.eq.s32.totalorder %v6040_v5, 1 }
 0x1f9   : > { %v2146_v1 = vrot.slane %v5345_v11, 1  ;;  %v2244_v25 = vadd.f32 %v5310_v48, %v2224_v9  ;;  %v2098_v9 = vrot.slane %v5345_v11, 7 }
 0x1fa   : > { %v1946_v39 = vpop.f32.mrf.mxu3 }
 0x1fb   : > { %v2165_v27 = vsel %vm6234_vm13, %v2145_v35, %v2146_v1  ;;  %v1859_v62 = vpop.f32.mrf.mxu2  ;;  %v1982_v55 = vadd.f32 %v1946_v39, %v1857_v41  ;;  %v2260_v49 = vmax.f32 %v2244_v25, 0.0  ;;  %v2225_v35 = vmul.f32 %v5376_v34, %v2208_v4  ;;  %v2462_v39 = vpop.permute.xlu1 %2461  ;;  %vm6245_vm13 = vmmov %vm6241_vm1 }
 0x1fc   : > { %v2177_v3 = vsel %vm6236_vm10, %v2165_v27, -inf  ;;  %v2147_v25 = vrot.slane %v5339_v26, 1  ;;  %v2116_v31 = vsel %vm6238_vm11, %v2098_v9, %v2099_v60  ;;  %v2117_v44 = vsel %vm6239_vm0, %v2097_v12, %v2098_v9  ;;  %v1782_v52 = vpop.f32.mrf.mxu1  ;;  %v5401_v18 = vpop.permute.xlu2 %2066  ;;  %vm6247_vm10 = vmmov %vm6239_vm0 }
 0x1fd   : > { %v2209_v22 = vmax.f32 %v2193_v38, %v2177_v3  ;;  %v1999_v33 = vadd.f32 %v5278_v2, %v1982_v55  ;;  %v2285_v40 = vpack.c.bf16 %v2260_v49, %v2259_v58  ;;  %v1860_v3 = vadd.f32 %v1859_v62, %v1780_v6  ;;  %vm6249_vm11 = vmmov %vm6240_vm9 }
 0x1fe   : > { %v2245_v23 = vadd.f32 %v5310_v48, %v2225_v35  ;;  %v2130_v12 = vsel %vm6242_vm5, %v2117_v44, -inf  ;;  %v2131_v38 = vsel %vm6243_vm12, %v2116_v31, -inf  ;;  %vm6250_vm0 = vcmp.eq.s32.totalorder %v6061_v56, 1  ;;  %vm6253_vm5 = vmmov %vm6247_vm10 }
 0x1ff   : > { %v2015_v32 = vmax.f32 %v1999_v33, 0.0  ;;  %v2226_v45 = vmul.f32 %v5376_v34, %v2209_v22  ;;  %v2194_v37 = vmax.f32 %v2130_v12, %v5345_v11  ;;  %v2195_v46 = vmax.f32 %v2131_v38, %v5339_v26 }
 0x200   : > { %v5365_v0 = vpop.permute.xlu0 %2060  ;;  %v2261_v4 = vmax.f32 %v2245_v23, 0.0 }
 0x201   : > { %2753 = vmatmul.msk.bf16.gmra.mxu0 %vm2292_vm6, %v2285_v40  ;;  %v2148_v29 = vrot.slane %v5365_v0, 1  ;;  %v2277_v57 = vpack.c.bf16 %v2015_v32, %v2014_v61  ;;  %v2246_v10 = vadd.f32 %v5310_v48, %v2226_v45  ;;  %v2164_v40 = vsel %vm6245_vm13, %v2146_v1, %v2147_v25 }
 0x202   : > { %v2178_v7 = vsel %vm6246_vm15, %v2164_v40, -inf  ;;  %v2100_v11 = vrot.slane %v5365_v0, 7 }
 0x203   : > { %v1861_v27 = vpop.f32.mrf.mxu2  ;;  %2765 = vmatmul.msk.bf16.gmra.mxu1 %vm6240_vm9, %v2277_v57  ;;  %v2163_v58 = vsel %vm6241_vm1, %v2147_v25, %v2148_v29  ;;  %v2262_v33 = vmax.f32 %v2246_v10, 0.0  ;;  %v2210_v45 = vmax.f32 %v2194_v37, %v2178_v7  ;;  %v2101_v25 = vrot.slane %v5369_v30, 7  ;;  %vm6251_vm9 = vmmov %vm6241_vm1  ;;  %v6257_v37 = vld [vmem:[#allocation4_spill] sm:$0xff] }
 0x204   : > { %v1862_v55 = vadd.f32 %v1861_v27, %v1782_v52  ;;  %v2179_v62 = vsel %vm6244_vm2, %v2163_v58, -inf  ;;  %v5420_v44 = vpop.permute.xlu2 %2070  ;;  %v2115_v10 = vsel %vm6247_vm10, %v2099_v60, %v2100_v11  ;;  %v2464_v52 = vpop.permute.xlu1 %2463  ;;  %vm6252_vm1 = vcmp.eq.s32.totalorder %v6066_v8, 1  ;;  %vm6255_vm12 = vmmov %vm6251_vm9 }
 0x205   : > { %v2211_v32 = vmax.f32 %v2195_v46, %v2179_v62  ;;  %v2227_v31 = vmul.f32 %v5376_v34, %v2210_v45  ;;  %v2114_v58 = vsel %vm6248_vm14, %v2100_v11, %v2101_v25  ;;  %v2105_v38 = vrot.slane %v5420_v44, 7  ;;  %vm6256_vm2 = vmmov %vm6251_vm9  ;;  %v6259_v46 = vld [vmem:[#allocation15_spill] sm:$0xff] }
 0x206   : > { %v1949_v21 = vpop.f32.mrf.mxu3  ;;  %v2133_v40 = vsel %vm6252_vm1, %v2114_v58, -inf  ;;  %vm6258_vm13 = vcmp.eq.s32.totalorder %v6257_v37, 1  ;;  %vm6260_vm15 = vcmp.eq.s32.totalorder %v6259_v46, 1  ;;  %vm6261_vm10 = vcmp.eq.s32.totalorder %v6110_v17, 1 }
 0x207   : > { %2774 = vmatmul.msk.bf16.gmra.mxu2 %vm2292_vm6, %v2462_v39  ;;  %v1983_v22 = vadd.f32 %v1949_v21, %v1860_v3  ;;  %v2286_v21 = vpack.c.bf16 %v2262_v33, %v2261_v4  ;;  %v2228_v57 = vmul.f32 %v5376_v34, %v2211_v32  ;;  %v1785_v39 = vpop.f32.mrf.mxu1  ;;  %v2149_v3 = vrot.slane %v5369_v30, 1 }
 0x208   : > { %v5388_v41 = vpop.permute.xlu0 %2064  ;;  %v2197_v45 = vmax.f32 %v2133_v40, %v5369_v30  ;;  %vm6262_vm14 = vcmp.eq.s32.totalorder %v6112_v36, 1  ;;  %v2103_v36 = vrot.slane %v5401_v18, 7 }
 0x209   : > { %v2000_v61 = vadd.f32 %v5278_v2, %v1983_v22  ;;  %v2150_v5 = vrot.slane %v5388_v41, 1  ;;  %v2248_v12 = vadd.f32 %v5310_v48, %v2228_v57  ;;  %v2132_v22 = vsel %vm6250_vm0, %v2115_v10, -inf  ;;  %vm6265_vm0 = vmmov %vm6256_vm2 }
 0x20a   : > { %v2162_v8 = vsel %vm6256_vm2, %v2148_v29, %v2149_v3  ;;  %v2196_v7 = vmax.f32 %v2132_v22, %v5365_v0 }
 0x20b   : > { %v2016_v1 = vmax.f32 %v2000_v61, 0.0  ;;  %v2161_v33 = vsel %vm6251_vm9, %v2149_v3, %v2150_v5  ;;  %vm6266_vm9 = vcmp.eq.s32.totalorder %v6135_v19, 1 }
 0x20c   : > { %v2181_v32 = vsel %vm6261_vm10, %v2161_v33, -inf }
 0x20d   : > { %v2213_v17 = vmax.f32 %v2197_v45, %v2181_v32 }
 0x20e   : > { %v1951_v49 = vpop.f32.mrf.mxu3 }
 0x20f   : > { %v1984_v6 = vadd.f32 %v1951_v49, %v1862_v55  ;;  %v2187_v49 = vsel %vm696_vm7, %v5288_v50, -inf  ;;  %vm6254_vm7 = vmmov %vm6253_vm5 }
 0x210   : > { %v5411_v9 = vpop.permute.xlu0 %2068 }
 0x211   : > { %v2001_v13 = vadd.f32 %v5278_v2, %v1984_v6  ;;  %2754 = vmatmul.msk.bf16.gmra.mxu0 %vm2292_vm6, %v2286_v21  ;;  %v2247_v6 = vadd.f32 %v5310_v48, %v2227_v31  ;;  %v2152_v33 = vrot.slane %v5411_v9, 1 }
 0x213   : > { %v2017_v35 = vmax.f32 %v2001_v13, 0.0  ;;  %v1864_v26 = vpop.f32.mrf.mxu2  ;;  %v2264_v13 = vmax.f32 %v2248_v12, 0.0  ;;  %v2263_v11 = vmax.f32 %v2247_v6, 0.0  ;;  %v2102_v12 = vrot.slane %v5388_v41, 7  ;;  %v2466_v6 = vpop.permute.xlu1 %2465 }
 0x214   : > { %v1865_v61 = vadd.f32 %v1864_v26, %v1785_v39  ;;  %v2180_v26 = vsel %vm6262_vm14, %v2162_v8, -inf  ;;  %vm6279_vm14 = vmmov %vm6265_vm0 }
 0x215   : > { %v2278_v27 = vpack.c.bf16 %v2017_v35, %v2016_v1  ;;  %v2287_v10 = vpack.c.bf16 %v2264_v13, %v2263_v11  ;;  %v2212_v0 = vmax.f32 %v2196_v7, %v2180_v26 }
 0x217   : > { %2766 = vmatmul.msk.bf16.gmra.mxu1 %vm6249_vm11, %v2278_v27  ;;  %2775 = vmatmul.msk.bf16.gmra.mxu2 %vm2292_vm6, %v2464_v52  ;;  %v1787_v27 = vpop.f32.mrf.mxu1  ;;  %v2229_v22 = vmul.f32 %v5376_v34, %v2212_v0 }
 0x218   : > { %v5431_v23 = vpop.permute.xlu0 %2072 }
 0x219   : > { %v2106_v60 = vrot.slane %v5431_v23, 7  ;;  %v2154_v55 = vrot.slane %v5431_v23, 1  ;;  %v2249_v13 = vadd.f32 %v5310_v48, %v2229_v22 }
 0x21b   : > { %v2108_v47 = vsel %vm6253_vm5, %v2106_v60, %v2107_v20  ;;  %v2109_v56 = vsel %vm6254_vm7, %v2105_v38, %v2106_v60  ;;  %v2156_v50 = vsel %vm6255_vm12, %v2154_v55, %v2155_v24  ;;  %v1866_v35 = vpop.f32.mrf.mxu2  ;;  %v2230_v60 = vmul.f32 %v5376_v34, %v2213_v17  ;;  %vm6270_vm7 = vmmov %vm6265_vm0  ;;  %v2468_v0 = vpop.permute.xlu1 %2467 }
 0x21c   : > { %v1954_v62 = vpop.f32.mrf.mxu3  ;;  %v2138_v20 = vsel %vm6258_vm13, %v2109_v56, -inf  ;;  %v2139_v4 = vsel %vm6260_vm15, %v2108_v47, -inf  ;;  %v2186_v29 = vsel %vm695_vm4, %v2156_v50, -inf  ;;  %v1867_v39 = vadd.f32 %v1866_v35, %v1787_v27  ;;  %vm6263_vm4 = vmmov %vm6253_vm5 }
 0x21d   : > { %v2202_v21 = vmax.f32 %v2138_v20, %v5431_v23  ;;  %v2203_v24 = vmax.f32 %v2139_v4, %v5268_v54  ;;  %v1985_v31 = vadd.f32 %v1954_v62, %v1865_v61  ;;  %v2151_v62 = vrot.slane %v5401_v18, 1  ;;  %vm6264_vm11 = vmmov %vm6263_vm4 }
 0x21e   : > { %v2112_v56 = vsel %vm6263_vm4, %v2102_v12, %v2103_v36  ;;  %v2113_v50 = vsel %vm6264_vm11, %v2101_v25, %v2102_v12  ;;  %v2250_v8 = vadd.f32 %v5310_v48, %v2230_v60  ;;  %v6267_v25 = vld [vmem:[#allocation3_spill] sm:$0xff]  ;;  %vm6269_vm5 = vcmask 130048   ;;  %vm6273_vm2 = vmmov %vm6263_vm4 }
 0x21f   : > { %v2218_v1 = vmax.f32 %v2202_v21, %v2186_v29  ;;  %v2219_v57 = vmax.f32 %v2203_v24, %v2187_v49  ;;  %v2002_v3 = vadd.f32 %v5278_v2, %v1985_v31  ;;  %v2159_v46 = vsel %vm6265_vm0, %v2151_v62, %v2152_v33  ;;  %v1790_v61 = vpop.f32.mrf.mxu1  ;;  %vm6274_vm13 = vmmov %vm6265_vm0 }
 0x220   : > { %v2134_v30 = vsel %vm6266_vm9, %v2113_v50, -inf  ;;  %vm6268_vm1 = vcmp.eq.s32.totalorder %v6267_v25, 1  ;;  %v2266_v7 = vmax.f32 %v2250_v8, 0.0  ;;  %v2160_v29 = vsel %vm6270_vm7, %v2150_v5, %v2151_v62  ;;  %v6275_v62 = vld [vmem:[#allocation13_spill] sm:$0xff] }
 0x221   : > { %v2235_v54 = vmul.f32 %v5376_v34, %v2218_v1  ;;  %2755 = vmatmul.msk.bf16.gmra.mxu0 %vm2292_vm6, %v2287_v10  ;;  %v2018_v40 = vmax.f32 %v2002_v3, 0.0  ;;  %v2236_v37 = vmul.f32 %v5376_v34, %v2219_v57  ;;  %v2135_v21 = vsel %vm6268_vm1, %v2112_v56, -inf }
 0x222   : > { %v2183_v35 = vsel %vm692_vm8, %v2159_v46, -inf  ;;  %v2198_v11 = vmax.f32 %v2134_v30, %v5388_v41  ;;  %v2199_v19 = vmax.f32 %v2135_v21, %v5401_v18  ;;  %v2265_v1 = vmax.f32 %v2249_v13, 0.0  ;;  %vm6272_vm8 = vmmov %vm6263_vm4 }
 0x223   : > { %v2255_v42 = vadd.f32 %v5310_v48, %v2235_v54  ;;  %v2256_v32 = vadd.f32 %v5310_v48, %v2236_v37  ;;  %vm6271_vm12 = vcmp.eq.s32.totalorder %v6149_v15, 1  ;;  %v2104_v5 = vrot.slane %v5411_v9, 7 }
 0x224   : > { %v1956_v52 = vpop.f32.mrf.mxu3  ;;  %v2215_v31 = vmax.f32 %v2199_v19, %v2183_v35  ;;  %v2288_v27 = vpack.c.bf16 %v2266_v7, %v2265_v1  ;;  %v2182_v17 = vsel %vm6271_vm12, %v2160_v29, -inf  ;;  %vm6276_vm15 = vcmp.eq.s32.totalorder %v6275_v62, 1 }
 0x225   : > { %v1986_v58 = vadd.f32 %v1956_v52, %v1867_v39  ;;  %v2271_v4 = vmax.f32 %v2255_v42, 0.0  ;;  %v2272_v45 = vmax.f32 %v2256_v32, 0.0  ;;  %v2214_v10 = vmax.f32 %v2198_v11, %v2182_v17 }
 0x226   : > { %v2232_v59 = vmul.f32 %v5376_v34, %v2215_v31  ;;  %v2153_v42 = vrot.slane %v5420_v44, 1  ;;  %v2110_v15 = vsel %vm6272_vm8, %v2104_v5, %v2105_v38  ;;  %v2111_v3 = vsel %vm6273_vm2, %v2103_v36, %v2104_v5  ;;  %v6277_v38 = vld [vmem:[#allocation11_spill] sm:$0xff] }
 0x227   : > { %v2003_v49 = vadd.f32 %v5278_v2, %v1986_v58  ;;  %2776 = vmatmul.msk.bf16.gmra.mxu2 %vm2292_vm6, %v2466_v6  ;;  %v5519_v57 = vpack.c.bf16 %v2272_v45, %v2271_v4  ;;  %v1792_v54 = vpop.f32.mrf.mxu1  ;;  %v2231_v18 = vmul.f32 %v5376_v34, %v2214_v10  ;;  %v2136_v6 = vsel %vm6276_vm15, %v2111_v3, -inf }
 0x228   : > { %v1869_v24 = vpop.f32.mrf.mxu2  ;;  %v2252_v58 = vadd.f32 %v5310_v48, %v2232_v59  ;;  %v2157_v60 = vsel %vm6274_vm13, %v2153_v42, %v2154_v55  ;;  %vm6278_vm10 = vcmp.eq.s32.totalorder %v6277_v38, 1  ;;  %v2158_v55 = vsel %vm6279_vm14, %v2152_v33, %v2153_v42  ;;  %v2470_v33 = vpop.permute.xlu1 %2469 }
 0x229   : > { %v2019_v47 = vmax.f32 %v2003_v49, 0.0  ;;  %v1870_v41 = vadd.f32 %v1869_v24, %v1790_v61  ;;  %v2251_v22 = vadd.f32 %v5310_v48, %v2231_v18  ;;  %v2185_v50 = vsel %vm694_vm3, %v2157_v60, -inf  ;;  %vm6281_vm3 = vmmov %vm6269_vm5 }
 0x22a   : > { %v2268_v56 = vmax.f32 %v2252_v58, 0.0  ;;  %v2200_v37 = vmax.f32 %v2136_v6, %v5411_v9  ;;  %vm6280_vm4 = vcmp.eq.s32.totalorder %v6180_v16, 1  ;;  %vm6282_vm11 = vmmov %vm6281_vm3 }
 0x22b   : > { %v2279_v20 = vpack.c.bf16 %v2019_v47, %v2018_v40  ;;  %v2137_v40 = vsel %vm6278_vm10, %v2110_v15, -inf  ;;  %v2267_v46 = vmax.f32 %v2251_v22, 0.0  ;;  %v2184_v53 = vsel %vm6280_vm4, %v2158_v55, -inf  ;;  %vm6283_vm0 = vmmov %vm6281_vm3 }
 0x22c   : > { %v2216_v21 = vmax.f32 %v2200_v37, %v2184_v53  ;;  %vm6284_vm9 = vmmov %vm6283_vm0 }
 0x22d   : > { %2767 = vmatmul.msk.bf16.gmra.mxu1 %vm6269_vm5, %v2279_v20  ;;  %v2201_v20 = vmax.f32 %v2137_v40, %v5420_v44  ;;  %v2289_v30 = vpack.c.bf16 %v2268_v56, %v2267_v46 }
 0x22e   : > { %v2233_v9 = vmul.f32 %v5376_v34, %v2216_v21 }
 0x22f   : > { %v1795_v4 = vpop.f32.mrf.mxu1  ;;  %v2217_v61 = vmax.f32 %v2201_v20, %v2185_v50 }
 0x230   : > { %v1871_v39 = vpop.f32.mrf.mxu2  ;;  %v2253_v35 = vadd.f32 %v5310_v48, %v2233_v9 }
 0x231   : > { %2756 = vmatmul.msk.bf16.gmra.mxu0 %vm2292_vm6, %v2288_v27  ;;  %v1872_v12 = vadd.f32 %v1871_v39, %v1792_v54  ;;  %v2234_v28 = vmul.f32 %v5376_v34, %v2217_v61 }
 0x232   : > { %v1959_v26 = vpop.f32.mrf.mxu3  ;;  %v2269_v34 = vmax.f32 %v2253_v35, 0.0 }
 0x233   : > { %v1987_v52 = vadd.f32 %v1959_v26, %v1870_v41  ;;  %v2254_v16 = vadd.f32 %v5310_v48, %v2234_v28  ;;  %v2472_v41 = vpop.permute.xlu2 %2471 }
 0x235   : > { %v2004_v36 = vadd.f32 %v5278_v2, %v1987_v52  ;;  %v2270_v27 = vmax.f32 %v2254_v16, 0.0 }
 0x237   : > { %2777 = vmatmul.msk.bf16.gmra.mxu2 %vm2292_vm6, %v2468_v0  ;;  %v2020_v13 = vmax.f32 %v2004_v36, 0.0  ;;  %v1797_v29 = vpop.f32.mrf.mxu1  ;;  %v2290_v5 = vpack.c.bf16 %v2270_v27, %v2269_v34 }
 0x239   : > { %v1874_v23 = vpop.f32.mrf.mxu2 }
 0x23a   : > { %v1961_v49 = vpop.f32.mrf.mxu3  ;;  %v1875_v44 = vadd.f32 %v1874_v23, %v1795_v4 }
 0x23b   : > { %v1988_v47 = vadd.f32 %v1961_v49, %v1872_v12 }
 0x23d   : > { %v2005_v8 = vadd.f32 %v5278_v2, %v1988_v47 }
 0x23f   : > { %v2021_v32 = vmax.f32 %v2005_v8, 0.0 }
 0x241   : > { %v2280_v25 = vpack.c.bf16 %v2021_v32, %v2020_v13  ;;  %2757 = vmatmul.msk.bf16.gmra.mxu0 %vm2292_vm6, %v2289_v30  ;;  %v1876_v7 = vpop.f32.mrf.mxu2 }
 0x242   : > { %v1877_v11 = vadd.f32 %v1876_v7, %v1797_v29 }
 0x243   : > { %2768 = vmatmul.msk.bf16.gmra.mxu1 %vm6281_vm3, %v2280_v25 }
 0x244   : > { %v1964_v24 = vpop.f32.mrf.mxu3 }
 0x245   : > { %v1989_v45 = vadd.f32 %v1964_v24, %v1875_v44 }
 0x247   : > { %2778 = vmatmul.msk.bf16.gmra.mxu2 %vm2292_vm6, %v2470_v33  ;;  %v2006_v1 = vadd.f32 %v5278_v2, %v1989_v45 }
 0x249   : > { %v2022_v10 = vmax.f32 %v2006_v1, 0.0 }
 0x24c   : > { %v1966_v19 = vpop.f32.mrf.mxu3 }
 0x24d   : > { %v1990_v31 = vadd.f32 %v1966_v19, %v1877_v11 }
 0x24f   : > { %v2007_v17 = vadd.f32 %v5278_v2, %v1990_v31 }
 0x251   : > { %v2023_v26 = vmax.f32 %v2007_v17, 0.0  ;;  %2758 = vmatmul.msk.bf16.gmra.mxu0 %vm2292_vm6, %v2290_v5 }
 0x253   : > { %v2281_v59 = vpack.c.bf16 %v2023_v26, %v2022_v10 }
 0x254   : > { %v1969_v54 = vpop.f32.mrf.mxu3 }
 0x255   : > { %2769 = vmatmul.msk.bf16.gmra.mxu1 %vm6282_vm11, %v2281_v59  ;;  %v1991_v48 = vadd.f32 %v1969_v54, %v5105_v43 }
 0x257   : > { %2779 = vmatmul.msk.bf16.gmra.mxu2 %vm2292_vm6, %v2472_v41  ;;  %v2008_v18 = vadd.f32 %v5278_v2, %v1991_v48 }
 0x259   : > { %v2024_v42 = vmax.f32 %v2008_v18, 0.0 }
 0x25c   : > { %v1971_v39 = vpop.f32.mrf.mxu3 }
 0x25d   : > { %v1992_v0 = vadd.f32 %v1971_v39, %v5135_v63 }
 0x25f   : > { %v2009_v52 = vadd.f32 %v5278_v2, %v1992_v0 }
 0x261   : > { %v2025_v15 = vmax.f32 %v2009_v52, 0.0  ;;  %2759 = vmatmul.msk.bf16.gmra.mxu0 %vm2292_vm6, %v5519_v57  ;;  %v5582_v57 = vld [vmem:[%s5646_s5 + $0x3] ss:$0 sm:$0xff]  ;;  %vm2586_vm6 = vcmask 195584  }
 0x263   : > { %v2282_v3 = vpack.c.bf16 %v2025_v15, %v2024_v42 }
 0x264   : > { %v1974_v58 = vpop.f32.mrf.mxu3 }
 0x265   : > { %2770 = vmatmul.msk.bf16.gmra.mxu1 %vm6283_vm0, %v2282_v3  ;;  %v1993_v43 = vadd.f32 %v1974_v58, %v5188_v51 }
 0x267   : > { %v2010_v60 = vadd.f32 %v5278_v2, %v1993_v43 }
 0x269   : > { %v2409_v49 = vpop.f32.mrf.mxu1  ;;  %v2026_v40 = vmax.f32 %v2010_v60, 0.0 }
 0x26a   : > { %v2513_v22 = vpop.f32.mrf.mxu2 }
 0x26c   : > { %v1976_v12 = vpop.f32.mrf.mxu3 }
 0x26d   : > { %v1994_v63 = vadd.f32 %v1976_v12, %v5229_v14 }
 0x26e   : > { %v2330_v6 = vpop.f32.mrf.mxu0 }
 0x26f   : > { %v2011_v62 = vadd.f32 %v5278_v2, %v1994_v63  ;;  %v2410_v38 = vadd.f32 %v2409_v49, %v2330_v6 }
 0x271   : > { %v2027_v36 = vmax.f32 %v2011_v62, 0.0  ;;  %v2553_v51 = vadd.f32 %v2513_v22, %v2410_v38  ;;  %v2411_v56 = vpop.f32.mrf.mxu1 }
 0x272   : > { %v2515_v2 = vpop.f32.mrf.mxu2 }
 0x273   : > { %v2283_v47 = vpack.c.bf16 %v2027_v36, %v2026_v40  ;;  %v2570_v14 = vadd.f32 %v5582_v57, %v2553_v51 }
 0x275   : > { %2771 = vmatmul.msk.bf16.gmra.mxu1 %vm6284_vm9, %v2283_v47  ;;  %2587 = vst.msk [vmem:[%s5587_s12] sm:$0xff] %vm2586_vm6, %v2570_v14 }
 0x276   : > { %v2332_v50 = vpop.f32.mrf.mxu0 }
 0x277   : > { %v2412_v23 = vadd.f32 %v2411_v56, %v2332_v50 }
 0x279   : > { %v2554_v8 = vadd.f32 %v2515_v2, %v2412_v23 }
 0x27a   : > { %v2518_v37 = vpop.f32.mrf.mxu2 }
 0x27b   : > { %v2571_v55 = vadd.f32 %v5582_v57, %v2554_v8 }
 0x27d   : > { %2588 = vst.msk [vmem:[%s5587_s12 + $0x8] sm:$0xff] %vm2586_vm6, %v2571_v55 }
 0x27e   : > { %v2335_v20 = vpop.f32.mrf.mxu0 }
 0x280   : > { %v2414_v4 = vpop.f32.mrf.mxu1 }
 0x281   : > { %v2415_v13 = vadd.f32 %v2414_v4, %v2335_v20 }
 0x282   : > { %v2520_v46 = vpop.f32.mrf.mxu2 }
 0x283   : > { %v2555_v61 = vadd.f32 %v2518_v37, %v2415_v13 }
 0x285   : > { %v2572_v30 = vadd.f32 %v5582_v57, %v2555_v61 }
 0x286   : > { %v2337_v32 = vpop.f32.mrf.mxu0 }
 0x287   : > { %2589 = vst.msk [vmem:[%s5587_s12 + $0x10] sm:$0xff] %vm2586_vm6, %v2572_v30 }
 0x288   : > { %v2416_v53 = vpop.f32.mrf.mxu1 }
 0x289   : > { %v2417_v21 = vadd.f32 %v2416_v53, %v2337_v32 }
 0x28a   : > { %v2523_v25 = vpop.f32.mrf.mxu2 }
 0x28b   : > { %v2556_v28 = vadd.f32 %v2520_v46, %v2417_v21 }
 0x28d   : > { %v2573_v9 = vadd.f32 %v5582_v57, %v2556_v28 }
 0x28e   : > { %v2340_v24 = vpop.f32.mrf.mxu0 }
 0x28f   : > { %2590 = vst.msk [vmem:[%s5587_s12 + $0x18] sm:$0xff] %vm2586_vm6, %v2573_v9 }
 0x292   : > { %v2525_v7 = vpop.f32.mrf.mxu2 }
 0x294   : > { %v2419_v44 = vpop.f32.mrf.mxu1 }
 0x295   : > { %v2420_v33 = vadd.f32 %v2419_v44, %v2340_v24 }
 0x296   : > { %v2342_v45 = vpop.f32.mrf.mxu0 }
 0x297   : > { %v2557_v16 = vadd.f32 %v2523_v25, %v2420_v33 }
 0x299   : > { %v2574_v29 = vadd.f32 %v5582_v57, %v2557_v16 }
 0x29a   : > { %v2528_v31 = vpop.f32.mrf.mxu2 }
 0x29b   : > { %2591 = vst.msk [vmem:[%s5587_s12 + $0x20] sm:$0xff] %vm2586_vm6, %v2574_v29 }
 0x29c   : > { %v2421_v35 = vpop.f32.mrf.mxu1 }
 0x29d   : > { %v2422_v11 = vadd.f32 %v2421_v35, %v2342_v45 }
 0x29e   : > { %v2345_v19 = vpop.f32.mrf.mxu0 }
 0x29f   : > { %v2558_v1 = vadd.f32 %v2525_v7, %v2422_v11 }
 0x2a1   : > { %v2575_v27 = vadd.f32 %v5582_v57, %v2558_v1 }
 0x2a2   : > { %v2530_v26 = vpop.f32.mrf.mxu2 }
 0x2a3   : > { %2592 = vst.msk [vmem:[%s5587_s12 + $0x28] sm:$0xff] %vm2586_vm6, %v2575_v27 }
 0x2a6   : > { %v2347_v34 = vpop.f32.mrf.mxu0 }
 0x2aa   : > { %v2424_v17 = vpop.f32.mrf.mxu1  ;;  %v2533_v18 = vpop.f32.mrf.mxu2 }
 0x2ab   : > { %v2425_v10 = vadd.f32 %v2424_v17, %v2345_v19 }
 0x2ad   : > { %v2559_v5 = vadd.f32 %v2528_v31, %v2425_v10 }
 0x2ae   : > { %v2350_v48 = vpop.f32.mrf.mxu0 }
 0x2af   : > { %v2576_v59 = vadd.f32 %v5582_v57, %v2559_v5 }
 0x2b1   : > { %2593 = vst.msk [vmem:[%s5587_s12 + $0x30] sm:$0xff] %vm2586_vm6, %v2576_v59 }
 0x2b2   : > { %v2426_v54 = vpop.f32.mrf.mxu1  ;;  %v2535_v42 = vpop.f32.mrf.mxu2 }
 0x2b3   : > { %v2427_v41 = vadd.f32 %v2426_v54, %v2347_v34 }
 0x2b5   : > { %v2560_v39 = vadd.f32 %v2530_v26, %v2427_v41 }
 0x2b6   : > { %v2352_v52 = vpop.f32.mrf.mxu0 }
 0x2b7   : > { %v2577_v0 = vadd.f32 %v5582_v57, %v2560_v39 }
 0x2b9   : > { %2594 = vst.msk [vmem:[%s5587_s12 + $0x38] sm:$0xff] %vm2586_vm6, %v2577_v0 }
 0x2ba   : > { %v2538_v49 = vpop.f32.mrf.mxu2 }
 0x2be   : > { %v2355_v12 = vpop.f32.mrf.mxu0 }
 0x2c0   : > { %v2429_v15 = vpop.f32.mrf.mxu1 }
 0x2c1   : > { %v2430_v3 = vadd.f32 %v2429_v15, %v2350_v48 }
 0x2c2   : > { %v2540_v36 = vpop.f32.mrf.mxu2 }
 0x2c3   : > { %v2561_v58 = vadd.f32 %v2533_v18, %v2430_v3 }
 0x2c5   : > { %v2578_v43 = vadd.f32 %v5582_v57, %v2561_v58 }
 0x2c6   : > { %v2357_v6 = vpop.f32.mrf.mxu0 }
 0x2c7   : > { %2595 = vst.msk [vmem:[%s5587_s12 + $0x40] sm:$0xff] %vm2586_vm6, %v2578_v43 }
 0x2c8   : > { %v2431_v60 = vpop.f32.mrf.mxu1 }
 0x2c9   : > { %v2432_v63 = vadd.f32 %v2431_v60, %v2352_v52 }
 0x2ca   : > { %v2543_v23 = vpop.f32.mrf.mxu2 }
 0x2cb   : > { %v2562_v22 = vadd.f32 %v2535_v42, %v2432_v63 }
 0x2cd   : > { %v2579_v62 = vadd.f32 %v5582_v57, %v2562_v22 }
 0x2ce   : > { %v2360_v56 = vpop.f32.mrf.mxu0 }
 0x2cf   : > { %2596 = vst.msk [vmem:[%s5587_s12 + $0x48] sm:$0xff] %vm2586_vm6, %v2579_v62 }
 0x2d2   : > { %v2434_v38 = vpop.f32.mrf.mxu1  ;;  %v2545_v13 = vpop.f32.mrf.mxu2 }
 0x2d3   : > { %v2435_v40 = vadd.f32 %v2434_v38, %v2355_v12 }
 0x2d5   : > { %v2563_v51 = vadd.f32 %v2538_v49, %v2435_v40 }
 0x2d6   : > { %v2362_v46 = vpop.f32.mrf.mxu0 }
 0x2d7   : > { %v2580_v47 = vadd.f32 %v5582_v57, %v2563_v51 }
 0x2d9   : > { %2597 = vst.msk [vmem:[%s5587_s12 + $0x50] sm:$0xff] %vm2586_vm6, %v2580_v47 }
 0x2da   : > { %v2436_v14 = vpop.f32.mrf.mxu1  ;;  %v2548_v21 = vpop.f32.mrf.mxu2 }
 0x2db   : > { %v2437_v2 = vadd.f32 %v2436_v14, %v2357_v6 }
 0x2dd   : > { %v2564_v50 = vadd.f32 %v2540_v36, %v2437_v2 }
 0x2de   : > { %v2365_v25 = vpop.f32.mrf.mxu0 }
 0x2df   : > { %v2581_v8 = vadd.f32 %v5582_v57, %v2564_v50 }
 0x2e1   : > { %2598 = vst.msk [vmem:[%s5587_s12 + $0x58] sm:$0xff] %vm2586_vm6, %v2581_v8 }
 0x2e2   : > { %v2439_v55 = vpop.f32.mrf.mxu1  ;;  %v2550_v16 = vpop.f32.mrf.mxu2 }
 0x2e3   : > { %v2440_v37 = vadd.f32 %v2439_v55, %v2360_v56 }
 0x2e5   : > { %v2565_v20 = vadd.f32 %v2543_v23, %v2440_v37 }
 0x2e6   : > { %v2367_v33 = vpop.f32.mrf.mxu0 }
 0x2e7   : > { %v2582_v4 = vadd.f32 %v5582_v57, %v2565_v20 }
 0x2e9   : > { %2599 = vst.msk [vmem:[%s5587_s12 + $0x60] sm:$0xff] %vm2586_vm6, %v2582_v4 }
 0x2ea   : > { %v2441_v32 = vpop.f32.mrf.mxu1 }
 0x2eb   : > { %v2442_v61 = vadd.f32 %v2441_v32, %v2362_v46 }
 0x2ed   : > { %v2566_v30 = vadd.f32 %v2545_v13, %v2442_v61 }
 0x2ef   : > { %v2583_v53 = vadd.f32 %v5582_v57, %v2566_v30 }
 0x2f1   : > { %2600 = vst.msk [vmem:[%s5587_s12 + $0x68] sm:$0xff] %vm2586_vm6, %v2583_v53 }
 0x2f2   : > { %v2444_v24 = vpop.f32.mrf.mxu1 }
 0x2f3   : > { %v2445_v28 = vadd.f32 %v2444_v24, %v2365_v25 }
 0x2f5   : > { %v2567_v9 = vadd.f32 %v2548_v21, %v2445_v28 }
 0x2f7   : > { %v2584_v44 = vadd.f32 %v5582_v57, %v2567_v9 }
 0x2f9   : > { %2601 = vst.msk [vmem:[%s5587_s12 + $0x70] sm:$0xff] %vm2586_vm6, %v2584_v44 }
 0x2fa   : > { %v2446_v7 = vpop.f32.mrf.mxu1 }
 0x2fb   : > { %v2447_v45 = vadd.f32 %v2446_v7, %v2367_v33 }
 0x2fd   : > { %v2568_v29 = vadd.f32 %v2550_v16, %v2447_v45 }
 0x2ff   : > { %v2585_v35 = vadd.f32 %v5582_v57, %v2568_v29 }
 0x301   : > { %2602 = vst.msk [vmem:[%s5587_s12 + $0x78] sm:$0xff] %vm2586_vm6, %v2585_v35 }
 0x302 PF: > { %s16_s21 = sadd.s32 1, %s2831_s21  }
 0x303   : > { %p13_p4 = scmp.ge.s32.totalorder %s16_s21, 6  }
 0x305   :  { %15 = sbr.rel (!%p13_p4) target bundleno = 1 (0x1), region = 76 }

</bundles_post_ra>
